<compile_context>
chip_gen: v7x
topology: tpu7x:2x2x1
jax: 0.10.0
libtpu: 0.0.40
codegen_flags: <defaults>
</compile_context>

<pallas_src>
import functools

import jax
import jax.numpy as jnp
from jax import lax
from jax.experimental import pallas as pl
from jax.experimental.pallas import tpu as pltpu


# ------------------------------- in-kernel math ------------------------------

def _layernorm(x, w, b, eps=1e-5):
    mu = jnp.mean(x, axis=-1, keepdims=True)
    var = jnp.mean(jnp.square(x - mu), axis=-1, keepdims=True)
    return (x - mu) * lax.rsqrt(var + eps) * w + b


def _gelu(x):
    # FT / GPT-2 tanh-approx GELU (f32 VPU/EUP math)
    return 0.5 * x * (1.0 + jnp.tanh(0.7978845608028654 * (x + 0.044715 * x * x * x)))


def _attn_core(q, k, v, mask, head_num, size_per_head):
    """Head-batched attention.  q:(Tq,H) k,v:(Tk,H), mask broadcastable to (1,Tq,Tk)."""
    Tq, Tk = q.shape[0], k.shape[0]
    nh, dh = head_num, size_per_head
    q3 = q.reshape(Tq, nh, dh).astype(jnp.bfloat16)
    k3 = k.reshape(Tk, nh, dh).astype(jnp.bfloat16)
    v3 = v.reshape(Tk, nh, dh).astype(jnp.bfloat16)
    # scores batched over heads: (nh, Tq, Tk); Q already carries the 1/sqrt(d) scale.
    s = jnp.einsum('qnd,knd->nqk', q3, k3, preferred_element_type=jnp.float32)
    s = jnp.where(mask, s, jnp.float32(-1e30))
    s = s - jnp.max(s, axis=-1, keepdims=True)
    p = jnp.exp(s)
    p = p * pl.reciprocal(jnp.sum(p, axis=-1, keepdims=True), approx=True)
    ctx = jnp.einsum('nqk,knd->qnd', p.astype(jnp.bfloat16), v3,
                     preferred_element_type=jnp.float32)          # (Tq, nh, dh)
    return ctx.reshape(Tq, nh * dh)


def _decoder_tail(x, ctx, wproj_ref, bproj_ref, ln2w_ref, ln2b_ref,
                  wfc1_ref, bfc1_ref, wfc2_ref, bfc2_ref):
    """attention projection + residual + GELU MLP + residual (shared prefill/decode)."""
    attn = (jnp.dot(ctx.astype(jnp.bfloat16), wproj_ref[0],
                    preferred_element_type=jnp.float32) + bproj_ref[0])
    x = x + attn
    h2 = _layernorm(x, ln2w_ref[0], ln2b_ref[0])
    ff = _gelu(jnp.dot(h2.astype(jnp.bfloat16), wfc1_ref[0],
                       preferred_element_type=jnp.float32) + bfc1_ref[0])
    ff = (jnp.dot(ff.astype(jnp.bfloat16), wfc2_ref[0],
                  preferred_element_type=jnp.float32) + bfc2_ref[0])
    return x + ff


# ------------------------------- kernels --------------------------------------

def gpt_prefill_kernel(x_ref,
                       ln1w_ref, ln1b_ref, wqkv_ref, bqkv_ref,
                       wproj_ref, bproj_ref, ln2w_ref, ln2b_ref,
                       wfc1_ref, bfc1_ref, wfc2_ref, bfc2_ref,
                       xout_ref, kpre_ref, vpre_ref,
                       x_scr, *, head_num, size_per_head):
    l = pl.program_id(1)

    @pl.when(l == 0)
    def _():
        x_scr[...] = x_ref[0].astype(jnp.float32)

    x = x_scr[...]                                   # (T, H) f32 residual stream
    T, H = x.shape

    # --- attention block ---
    h = _layernorm(x, ln1w_ref[0], ln1b_ref[0])
    qkv = (jnp.dot(h.astype(jnp.bfloat16), wqkv_ref[0],
                   preferred_element_type=jnp.float32) + bqkv_ref[0])     # (T, 3H)
    q, k, v = qkv[:, :H], qkv[:, H:2 * H], qkv[:, 2 * H:]

    # emit per-layer K/V for the KV cache (bf16 -> half the cache DMA traffic)
    kpre_ref[0, 0] = k.astype(kpre_ref.dtype)
    vpre_ref[0, 0] = v.astype(vpre_ref.dtype)

    rows = lax.broadcasted_iota(jnp.int32, (1, T, T), 1)
    cols = lax.broadcasted_iota(jnp.int32, (1, T, T), 2)
    ctx = _attn_core(q, k, v, cols <= rows, head_num, size_per_head)

    x = _decoder_tail(x, ctx, wproj_ref, bproj_ref, ln2w_ref, ln2b_ref,
                      wfc1_ref, bfc1_ref, wfc2_ref, bfc2_ref)
    x_scr[...] = x

    @pl.when(l == pl.num_programs(1) - 1)
    def _():
        # only the last position's hidden state is needed (greedy sampling)
        xout_ref[0] = x[-1:, :].astype(xout_ref.dtype)


def gpt_decode_kernel(cur_ref,                                   # SMEM (1,) int32
                      x_ref,
                      ln1w_ref, ln1b_ref, wqkv_ref, bqkv_ref,
                      wproj_ref, bproj_ref, ln2w_ref, ln2b_ref,
                      wfc1_ref, bfc1_ref, wfc2_ref, bfc2_ref,
                      kc_ref, vc_ref,
                      xout_ref, knew_ref, vnew_ref,
                      x_scr, *, head_num, size_per_head):
    l = pl.program_id(1)
    cur = cur_ref[0]                                 # position of the fed token

    @pl.when(l == 0)
    def _():
        x_scr[...] = x_ref[0].astype(jnp.float32)

    x = x_scr[...]                                   # (1, H)
    H = x.shape[-1]
    S = kc_ref.shape[2]

    h = _layernorm(x, ln1w_ref[0], ln1b_ref[0])
    qkv = (jnp.dot(h.astype(jnp.bfloat16), wqkv_ref[0],
                   preferred_element_type=jnp.float32) + bqkv_ref[0])     # (1, 3H)
    qn, kn, vn = qkv[:, :H], qkv[:, H:2 * H], qkv[:, 2 * H:]

    # emit only the NEW K/V row (cache row-scatter done outside with an in-place
    # dynamic_update_slice on the loop carry) instead of re-writing the whole cache.
    kn_b = kn.astype(knew_ref.dtype)
    vn_b = vn.astype(vnew_ref.dtype)
    knew_ref[0, 0] = kn_b
    vnew_ref[0, 0] = vn_b

    # merge the new row into the (stale-at-cur) cached history for this step's attention
    row = lax.broadcasted_iota(jnp.int32, (S, 1), 0) == cur
    k_full = jnp.where(row, kn_b, kc_ref[0, 0])      # (S, H) bf16
    v_full = jnp.where(row, vn_b, vc_ref[0, 0])

    mask = lax.broadcasted_iota(jnp.int32, (1, 1, S), 2) <= cur
    ctx = _attn_core(qn, k_full, v_full, mask, head_num, size_per_head)   # (1, H)

    x = _decoder_tail(x, ctx, wproj_ref, bproj_ref, ln2w_ref, ln2b_ref,
                      wfc1_ref, bfc1_ref, wfc2_ref, bfc2_ref)
    x_scr[...] = x

    @pl.when(l == pl.num_programs(1) - 1)
    def _():
        xout_ref[0] = x.astype(xout_ref.dtype)


def logits_kernel(x_ref, lnw_ref, lnb_ref, wt_ref, o_ref):
    x = _layernorm(x_ref[0].astype(jnp.float32), lnw_ref[...], lnb_ref[...])
    o_ref[0] = jnp.dot(x.astype(jnp.bfloat16), wt_ref[...],
                       preferred_element_type=jnp.float32)


# ------------------------------- pallas wrappers ------------------------------

def _layer_weight_specs(H):
    def wspec(shape):
        nd = len(shape)
        return pl.BlockSpec((1,) + shape, lambda b, l, nd=nd: (l,) + (0,) * nd)
    return [
        wspec((1, H)), wspec((1, H)),            # ln1 w/b
        wspec((H, 3 * H)), wspec((1, 3 * H)),    # qkv w/b
        wspec((H, H)), wspec((1, H)),            # attn proj w/b
        wspec((1, H)), wspec((1, H)),            # ln2 w/b
        wspec((H, 4 * H)), wspec((1, 4 * H)),    # fc1 w/b
        wspec((4 * H, H)), wspec((1, H)),        # fc2 w/b
    ]


def build_prefill_fn(B, L, T, H, head_num, size_per_head):
    kernel = functools.partial(gpt_prefill_kernel,
                               head_num=head_num, size_per_head=size_per_head)
    return pl.pallas_call(
        kernel,
        out_shape=(
            jax.ShapeDtypeStruct((B, 1, H), jnp.float32),       # last-position hidden
            jax.ShapeDtypeStruct((L, B, T, H), jnp.bfloat16),   # K (prefill part)
            jax.ShapeDtypeStruct((L, B, T, H), jnp.bfloat16),   # V (prefill part)
        ),
        grid=(B, L),
        in_specs=[pl.BlockSpec((1, T, H), lambda b, l: (b, 0, 0))] + _layer_weight_specs(H),
        out_specs=(
            pl.BlockSpec((1, 1, H), lambda b, l: (b, 0, 0)),
            pl.BlockSpec((1, 1, T, H), lambda b, l: (l, b, 0, 0)),
            pl.BlockSpec((1, 1, T, H), lambda b, l: (l, b, 0, 0)),
        ),
        scratch_shapes=[pltpu.VMEM((T, H), jnp.float32)],
        compiler_params=pltpu.CompilerParams(
            dimension_semantics=("parallel", "arbitrary")),
    )


def build_decode_fn(B, L, S, H, head_num, size_per_head):
    kernel = functools.partial(gpt_decode_kernel,
                               head_num=head_num, size_per_head=size_per_head)
    cache_spec = pl.BlockSpec((1, 1, S, H), lambda b, l: (l, b, 0, 0))
    new_row_spec = pl.BlockSpec((1, 1, 1, H), lambda b, l: (l, b, 0, 0))
    return pl.pallas_call(
        kernel,
        out_shape=(
            jax.ShapeDtypeStruct((B, 1, H), jnp.float32),
            jax.ShapeDtypeStruct((L, B, 1, H), jnp.bfloat16),   # new K rows
            jax.ShapeDtypeStruct((L, B, 1, H), jnp.bfloat16),   # new V rows
        ),
        grid=(B, L),
        in_specs=([pl.BlockSpec(memory_space=pltpu.MemorySpace.SMEM),        # cur pos
                   pl.BlockSpec((1, 1, H), lambda b, l: (b, 0, 0))]          # x
                  + _layer_weight_specs(H)
                  + [cache_spec, cache_spec]),
        out_specs=(
            pl.BlockSpec((1, 1, H), lambda b, l: (b, 0, 0)),
            new_row_spec, new_row_spec,
        ),
        scratch_shapes=[pltpu.VMEM((1, H), jnp.float32)],
        compiler_params=pltpu.CompilerParams(
            dimension_semantics=("parallel", "arbitrary")),
    )


def build_logits_fn(B, T, H, Vp, TV):
    return pl.pallas_call(
        logits_kernel,
        out_shape=jax.ShapeDtypeStruct((B, T, Vp), jnp.float32),
        grid=(B, Vp // TV),
        in_specs=[
            pl.BlockSpec((1, T, H), lambda b, v: (b, 0, 0)),
            pl.BlockSpec((1, H), lambda b, v: (0, 0)),
            pl.BlockSpec((1, H), lambda b, v: (0, 0)),
            pl.BlockSpec((H, TV), lambda b, v: (0, v)),      # (H, V) pre-transposed LM head
        ],
        out_specs=pl.BlockSpec((1, T, TV), lambda b, v: (b, 0, v)),
        compiler_params=pltpu.CompilerParams(
            dimension_semantics=("parallel", "parallel")),
    )


# ------------------------------- model ----------------------------------------

class GPTPallas:
    """Synthetic-weight JAX/Pallas reimplementation of the FT GptOp forward."""

    def __init__(self, head_num, size_per_head, vocab_size, start_id, end_id,
                 layer_num, max_seq_len, seed=0):
        self.head_num = head_num
        self.size_per_head = size_per_head
        self.hidden = head_num * size_per_head
        self.inter = 4 * self.hidden
        self.vocab_size = vocab_size
        self.start_id = start_id
        self.end_id = end_id
        self.layer_num = layer_num
        self.max_seq_len = max_seq_len

        H, I, V, L = self.hidden, self.inter, vocab_size, layer_num
        key = jax.random.PRNGKey(seed)
        keys = iter(jax.random.split(key, 12 * L + 6))

        def nrm(shape):
            return jax.random.normal(next(keys), shape, dtype=jnp.float32)

        q_scale = 1.0 / float(size_per_head) ** 0.5
        names = ("ln1_w", "ln1_b", "w_qkv", "b_qkv", "w_proj", "b_proj",
                 "ln2_w", "ln2_b", "w_fc1", "b_fc1", "w_fc2", "b_fc2")
        stacks = {n: [] for n in names}
        for _ in range(L):
            ln1_w, ln1_b = nrm((H,)), nrm((H,))
            w_qkv, b_qkv = nrm((H, 3 * H)), nrm((3 * H,))
            w_proj, b_proj = nrm((H, H)), nrm((H,))
            ln2_w, ln2_b = nrm((H,)), nrm((H,))
            w_fc1, b_fc1 = nrm((H, I)), nrm((I,))
            w_fc2, b_fc2 = nrm((I, H)), nrm((H,))
            # fold 1/sqrt(d_head) attention scale into the Q projection (host-side)
            w_qkv = w_qkv.at[:, :H].multiply(q_scale)
            b_qkv = b_qkv.at[:H].multiply(q_scale)
            stacks["ln1_w"].append(ln1_w.reshape(1, H))
            stacks["ln1_b"].append(ln1_b.reshape(1, H))
            stacks["w_qkv"].append(w_qkv)
            stacks["b_qkv"].append(b_qkv.reshape(1, 3 * H))
            stacks["w_proj"].append(w_proj)
            stacks["b_proj"].append(b_proj.reshape(1, H))
            stacks["ln2_w"].append(ln2_w.reshape(1, H))
            stacks["ln2_b"].append(ln2_b.reshape(1, H))
            stacks["w_fc1"].append(w_fc1)
            stacks["b_fc1"].append(b_fc1.reshape(1, I))
            stacks["w_fc2"].append(w_fc2)
            stacks["b_fc2"].append(b_fc2.reshape(1, H))

        # stacked along L; weight matrices in bf16 (MXU-native), LN/bias in f32
        self.ln1_w = jnp.stack(stacks["ln1_w"])
        self.ln1_b = jnp.stack(stacks["ln1_b"])
        self.w_qkv = jnp.stack(stacks["w_qkv"]).astype(jnp.bfloat16)
        self.b_qkv = jnp.stack(stacks["b_qkv"])
        self.w_proj = jnp.stack(stacks["w_proj"]).astype(jnp.bfloat16)
        self.b_proj = jnp.stack(stacks["b_proj"])
        self.ln2_w = jnp.stack(stacks["ln2_w"])
        self.ln2_b = jnp.stack(stacks["ln2_b"])
        self.w_fc1 = jnp.stack(stacks["w_fc1"]).astype(jnp.bfloat16)
        self.b_fc1 = jnp.stack(stacks["b_fc1"])
        self.w_fc2 = jnp.stack(stacks["w_fc2"]).astype(jnp.bfloat16)
        self.b_fc2 = jnp.stack(stacks["b_fc2"])

        self.final_ln_w = nrm((H,)).reshape(1, H)
        self.final_ln_b = nrm((H,)).reshape(1, H)
        self.wpe = nrm((max_seq_len, H))
        self.wte_embed = nrm((V, H))
        wte_lm = nrm((V, H))
        self.bpe = nrm((max_seq_len, H))

        # LM head: pre-transpose to (H, V) and pad V to a 128-lane multiple
        # TODO(synk): FT ties wte_embed and the LM head; synthetic weights keep them separate.
        Vp = ((V + 127) // 128) * 128
        self.vocab_padded = Vp
        lm_t = jnp.zeros((H, Vp), jnp.float32).at[:, :V].set(wte_lm.T)
        self.wte_lm_t = lm_t.astype(jnp.bfloat16)

        self._gen_cache = {}

    # -- helpers ---------------------------------------------------------------

    def _weights_tuple(self):
        return (self.ln1_w, self.ln1_b, self.w_qkv, self.b_qkv,
                self.w_proj, self.b_proj, self.ln2_w, self.ln2_b,
                self.w_fc1, self.b_fc1, self.w_fc2, self.b_fc2)

    def _build_generate(self, B, input_len, output_len):
        L, H = self.layer_num, self.hidden
        V, Vp = self.vocab_size, self.vocab_padded
        S = input_len + output_len
        nh, dh = self.head_num, self.size_per_head
        TV = 256 if Vp % 256 == 0 else 128

        prefill_fn = build_prefill_fn(B, L, input_len, H, nh, dh)
        decode_fn = build_decode_fn(B, L, S, H, nh, dh)
        logits_fn = build_logits_fn(B, 1, H, Vp, TV)

        weights = self._weights_tuple()
        fln_w, fln_b, lm_w = self.final_ln_w, self.final_ln_b, self.wte_lm_t
        wte_embed, wpe, bpe = self.wte_embed, self.wpe, self.bpe

        def embed(tok, pos, bpos):
            # TODO(synk): embedding gather stays in XLA (jnp.take); no Pallas gather here.
            return (jnp.take(wte_embed, tok, axis=0)
                    + jnp.take(wpe, pos, axis=0)
                    + jnp.take(bpe, bpos, axis=0)).astype(jnp.float32)

        def sample(x_last):                       # (B, 1, H) -> greedy next token (B,)
            logits = logits_fn(x_last, fln_w, fln_b, lm_w)[:, 0, :V]
            return jnp.argmax(logits, axis=-1).astype(jnp.int32)

        def generate(start_ids, positions, block_positions):
            tokens = jnp.zeros((B, S), jnp.int32)
            tokens = tokens.at[:, :input_len].set(start_ids)

            # ---- prefill (full context, fused over layers) ----
            x0 = embed(start_ids, positions[:, :input_len], block_positions[:, :input_len])
            x_last, k_pre, v_pre = prefill_fn(x0, *weights)
            k_cache = jnp.zeros((L, B, S, H), jnp.bfloat16).at[:, :, :input_len, :].set(k_pre)
            v_cache = jnp.zeros((L, B, S, H), jnp.bfloat16).at[:, :, :input_len, :].set(v_pre)

            first = sample(x_last)
            tokens = tokens.at[:, input_len].set(first)

            # ---- decode (single token per step, bf16 KV cache, fori_loop) ----
            def body(j, carry):
                tokens, kc, vc = carry
                pos = input_len + j - 1                       # position of fed token
                tok = lax.dynamic_slice_in_dim(tokens, pos, 1, axis=1)
                p_ids = lax.dynamic_slice_in_dim(positions, pos, 1, axis=1)
                bp_ids = lax.dynamic_slice_in_dim(block_positions, pos, 1, axis=1)
                x = embed(tok, p_ids, bp_ids)                 # (B, 1, H)
                cur = jnp.full((1,), pos, jnp.int32)
                x_out, k_new, v_new = decode_fn(cur, x, *weights, kc, vc)
                # row-scatter the new K/V into the carried cache (in-place DUS)
                kc = lax.dynamic_update_slice(kc, k_new, (0, 0, pos, 0))
                vc = lax.dynamic_update_slice(vc, v_new, (0, 0, pos, 0))
                nxt = sample(x_out)
                tokens = lax.dynamic_update_slice_in_dim(tokens, nxt[:, None], pos + 1, axis=1)
                return tokens, kc, vc

            if output_len > 1:
                tokens, _, _ = lax.fori_loop(1, output_len, body, (tokens, k_cache, v_cache))
            return tokens

        return jax.jit(generate)

    # -- public API (mirrors GPT.forward) ---------------------------------------

    def forward(self, start_ids, start_lengths, start_context_lengths,
                start_position_ids, start_block_position_ids, output_len,
                beam_width=1, top_k=1, top_p=0.0, beam_search_diversity_rate=0.0,
                temperature=1.0, len_penalty=1.0, repetition_penalty=1.0,
                random_seed=0, return_output_length=False, return_cum_log_probs=0):
        assert start_ids.shape[1] > 0, "input len must be larger than zero."
        assert output_len >= 1
        B, input_len = start_ids.shape
        S = input_len + output_len
        assert S <= self.max_seq_len

        gen_pos = jnp.broadcast_to(
            jnp.arange(input_len, S, dtype=jnp.int32)[None, :], (B, output_len))
        positions = jnp.concatenate([start_position_ids.astype(jnp.int32), gen_pos], axis=1)
        block_positions = jnp.concatenate(
            [start_block_position_ids.astype(jnp.int32),
             jnp.zeros((B, output_len), jnp.int32)], axis=1)

        key = (B, input_len, output_len)
        if key not in self._gen_cache:
            self._gen_cache[key] = self._build_generate(B, input_len, output_len)
        tokens = self._gen_cache[key](start_ids.astype(jnp.int32), positions, block_positions)

        output_ids = tokens[:, None, :]                         # (B, beam_width=1, S)
        output_lengths = jnp.full((B, beam_width), S, jnp.int32)
        if return_output_length:
            return output_ids, output_lengths
        return output_ids


# ------------------------------- main ------------------------------------------

if __name__ == "__main__":
    head_num = 4
    size_per_head = 8          # hidden = 32
    vocab_size = 64
    layer_num = 2
    max_seq_len = 32
    start_id, end_id = 1, 2

    batch = 2
    input_len = 8
    output_len = 4

    model = GPTPallas(head_num, size_per_head, vocab_size, start_id, end_id,
                      layer_num, max_seq_len, seed=0)

    key = jax.random.PRNGKey(0)
    start_ids = jax.random.randint(key, (batch, input_len), 0, vocab_size, dtype=jnp.int32)
    start_lengths = jnp.full((batch,), input_len, jnp.int32)
    start_context_lengths = jnp.full((batch,), input_len, jnp.int32)
    start_position_ids = jnp.broadcast_to(
        jnp.arange(input_len, dtype=jnp.int32)[None, :], (batch, input_len))
    start_block_position_ids = jnp.zeros((batch, input_len), jnp.int32)

    output_ids, output_lengths = model.forward(
        start_ids, start_lengths, start_context_lengths,
        start_position_ids, start_block_position_ids, output_len,
        return_output_length=True)

    jax.block_until_ready(output_ids)
    jax.block_until_ready(output_lengths)
    assert output_ids.shape == (batch, 1, input_len + output_len)
    assert output_lengths.shape == (batch, 1)
    print("KERNEL_OK")
</pallas_src>

<mosaic_0001>
module attributes {stable_mosaic.version = 11 : i64} {
  func.func @gpt_prefill_kernel(%arg0: i32, %arg1: i32, %arg2: memref<1x8x32xf32, #tpu.memory_space<vmem>>, %arg3: memref<1x1x32xf32, #tpu.memory_space<vmem>>, %arg4: memref<1x1x32xf32, #tpu.memory_space<vmem>>, %arg5: memref<1x32x96xbf16, #tpu.memory_space<vmem>>, %arg6: memref<1x1x96xf32, #tpu.memory_space<vmem>>, %arg7: memref<1x32x32xbf16, #tpu.memory_space<vmem>>, %arg8: memref<1x1x32xf32, #tpu.memory_space<vmem>>, %arg9: memref<1x1x32xf32, #tpu.memory_space<vmem>>, %arg10: memref<1x1x32xf32, #tpu.memory_space<vmem>>, %arg11: memref<1x32x128xbf16, #tpu.memory_space<vmem>>, %arg12: memref<1x1x128xf32, #tpu.memory_space<vmem>>, %arg13: memref<1x128x32xbf16, #tpu.memory_space<vmem>>, %arg14: memref<1x1x32xf32, #tpu.memory_space<vmem>>, %arg15: memref<1x1x32xf32, #tpu.memory_space<vmem>>, %arg16: memref<1x1x8x32xbf16, #tpu.memory_space<vmem>>, %arg17: memref<1x1x8x32xbf16, #tpu.memory_space<vmem>>, %arg18: memref<8x32xf32, #tpu.memory_space<vmem>>) attributes {dimension_semantics = [#tpu.dimension_semantics<parallel>, #tpu.dimension_semantics<arbitrary>], iteration_bounds = array<i64: 2, 2>, scalar_prefetch = 0 : i64, scratch_operands = 1 : i64, tpu.core_type = #tpu.core_type<tc>, window_params = [{transform_indices = @transform_0, window_bounds = array<i64: 1, 8, 32>}, {transform_indices = @transform_1, window_bounds = array<i64: 1, 1, 32>}, {transform_indices = @transform_2, window_bounds = array<i64: 1, 1, 32>}, {transform_indices = @transform_3, window_bounds = array<i64: 1, 32, 96>}, {transform_indices = @transform_4, window_bounds = array<i64: 1, 1, 96>}, {transform_indices = @transform_5, window_bounds = array<i64: 1, 32, 32>}, {transform_indices = @transform_6, window_bounds = array<i64: 1, 1, 32>}, {transform_indices = @transform_7, window_bounds = array<i64: 1, 1, 32>}, {transform_indices = @transform_8, window_bounds = array<i64: 1, 1, 32>}, {transform_indices = @transform_9, window_bounds = array<i64: 1, 32, 128>}, {transform_indices = @transform_10, window_bounds = array<i64: 1, 1, 128>}, {transform_indices = @transform_11, window_bounds = array<i64: 1, 128, 32>}, {transform_indices = @transform_12, window_bounds = array<i64: 1, 1, 32>}, {transform_indices = @transform_13, window_bounds = array<i64: 1, 1, 32>}, {transform_indices = @transform_14, window_bounds = array<i64: 1, 1, 8, 32>}, {transform_indices = @transform_15, window_bounds = array<i64: 1, 1, 8, 32>}]} {
    %c0_i32 = arith.constant 0 : i32
    %0 = arith.cmpi eq, %arg1, %c0_i32 : i32
    %1 = arith.extui %0 : i1 to i32
    %c0_i32_0 = arith.constant 0 : i32
    %2 = arith.cmpi ne, %1, %c0_i32_0 : i32
    scf.if %2 {
      %c0_71 = arith.constant 0 : index
      %c0_72 = arith.constant 0 : index
      %c0_73 = arith.constant 0 : index
      %146 = vector.load %arg2[%c0_71, %c0_72, %c0_73] : memref<1x8x32xf32, #tpu.memory_space<vmem>>, vector<1x8x32xf32>
      %147 = vector.shape_cast %146 : vector<1x8x32xf32> to vector<8x32xf32>
      %c0_74 = arith.constant 0 : index
      %c0_75 = arith.constant 0 : index
      %148 = vector.load %arg18[%c0_74, %c0_75] : memref<8x32xf32, #tpu.memory_space<vmem>>, vector<8x32xf32>
      tpu.vector_store %arg18[%c0_74, %c0_75], %147 {strides = array<i32>} : memref<8x32xf32, #tpu.memory_space<vmem>>, vector<8x32xf32>,
    } else {
    }
    %c0 = arith.constant 0 : index
    %c0_1 = arith.constant 0 : index
    %3 = vector.load %arg18[%c0, %c0_1] : memref<8x32xf32, #tpu.memory_space<vmem>>, vector<8x32xf32>
    %c0_2 = arith.constant 0 : index
    %c0_3 = arith.constant 0 : index
    %c0_4 = arith.constant 0 : index
    %4 = vector.load %arg3[%c0_2, %c0_3, %c0_4] : memref<1x1x32xf32, #tpu.memory_space<vmem>>, vector<1x1x32xf32>
    %5 = vector.shape_cast %4 : vector<1x1x32xf32> to vector<1x32xf32>
    %c0_5 = arith.constant 0 : index
    %c0_6 = arith.constant 0 : index
    %c0_7 = arith.constant 0 : index
    %6 = vector.load %arg4[%c0_5, %c0_6, %c0_7] : memref<1x1x32xf32, #tpu.memory_space<vmem>>, vector<1x1x32xf32>
    %7 = vector.shape_cast %6 : vector<1x1x32xf32> to vector<1x32xf32>
    %cst = arith.constant dense<0.000000e+00> : vector<8xf32>
    %8 = vector.multi_reduction <add>, %3, %cst [1] : vector<8x32xf32> to vector<8xf32>
    %9 = vector.shape_cast %8 : vector<8xf32> to vector<8x1xf32>
    %cst_8 = arith.constant 3.200000e+01 : f32
    %10 = vector.broadcast %cst_8 : f32 to vector<8x1xf32>
    %11 = arith.divf %9, %10 : vector<8x1xf32>
    %12 = vector.broadcast %11 : vector<8x1xf32> to vector<8x32xf32>
    %13 = arith.subf %3, %12 : vector<8x32xf32>
    %14 = arith.mulf %13, %13 : vector<8x32xf32>
    %cst_9 = arith.constant dense<0.000000e+00> : vector<8xf32>
    %15 = vector.multi_reduction <add>, %14, %cst_9 [1] : vector<8x32xf32> to vector<8xf32>
    %16 = vector.shape_cast %15 : vector<8xf32> to vector<8x1xf32>
    %cst_10 = arith.constant 3.200000e+01 : f32
    %17 = vector.broadcast %cst_10 : f32 to vector<8x1xf32>
    %18 = arith.divf %16, %17 : vector<8x1xf32>
    %19 = vector.broadcast %11 : vector<8x1xf32> to vector<8x32xf32>
    %20 = arith.subf %3, %19 : vector<8x32xf32>
    %cst_11 = arith.constant 9.99999974E-6 : f32
    %21 = vector.broadcast %cst_11 : f32 to vector<8x1xf32>
    %22 = arith.addf %18, %21 : vector<8x1xf32>
    %23 = math.rsqrt %22 : vector<8x1xf32>
    %24 = vector.broadcast %23 : vector<8x1xf32> to vector<8x32xf32>
    %25 = arith.mulf %20, %24 : vector<8x32xf32>
    %26 = vector.broadcast %5 : vector<1x32xf32> to vector<8x32xf32>
    %27 = arith.mulf %25, %26 : vector<8x32xf32>
    %28 = vector.broadcast %7 : vector<1x32xf32> to vector<8x32xf32>
    %29 = arith.addf %27, %28 : vector<8x32xf32>
    %30 = arith.truncf %29 : vector<8x32xf32> to vector<8x32xbf16>
    %c0_12 = arith.constant 0 : index
    %c0_13 = arith.constant 0 : index
    %c0_14 = arith.constant 0 : index
    %31 = vector.load %arg5[%c0_12, %c0_13, %c0_14] : memref<1x32x96xbf16, #tpu.memory_space<vmem>>, vector<1x32x96xbf16>
    %32 = vector.shape_cast %31 : vector<1x32x96xbf16> to vector<32x96xbf16>
    %cst_15 = arith.constant dense<0.000000e+00> : vector<8x96xf32>
    %33 = tpu.matmul %30, %32, %cst_15 {dimension_numbers = #tpu.dot_dimension_numbers<[1], [0], [0], [1], [0, 0, 1, 1], [], []>} : vector<8x32xbf16>, vector<32x96xbf16>, vector<8x96xf32> -> vector<8x96xf32>
    %c0_16 = arith.constant 0 : index
    %c0_17 = arith.constant 0 : index
    %c0_18 = arith.constant 0 : index
    %34 = vector.load %arg6[%c0_16, %c0_17, %c0_18] : memref<1x1x96xf32, #tpu.memory_space<vmem>>, vector<1x1x96xf32>
    %35 = vector.shape_cast %34 : vector<1x1x96xf32> to vector<1x96xf32>
    %36 = vector.broadcast %35 : vector<1x96xf32> to vector<8x96xf32>
    %37 = arith.addf %33, %36 : vector<8x96xf32>
    %38 = vector.extract_strided_slice %37 {offsets = [0, 0], sizes = [8, 32], strides = [1, 1]} : vector<8x96xf32> to vector<8x32xf32>
    %39 = vector.extract_strided_slice %37 {offsets = [0, 32], sizes = [8, 32], strides = [1, 1]} : vector<8x96xf32> to vector<8x32xf32>
    %40 = vector.extract_strided_slice %37 {offsets = [0, 64], sizes = [8, 32], strides = [1, 1]} : vector<8x96xf32> to vector<8x32xf32>
    %41 = arith.truncf %39 : vector<8x32xf32> to vector<8x32xbf16>
    %c0_19 = arith.constant 0 : index
    %c0_20 = arith.constant 0 : index
    %c0_21 = arith.constant 0 : index
    %c0_22 = arith.constant 0 : index
    %42 = vector.load %arg16[%c0_19, %c0_20, %c0_21, %c0_22] : memref<1x1x8x32xbf16, #tpu.memory_space<vmem>>, vector<1x1x8x32xbf16>
    %43 = vector.shape_cast %42 : vector<1x1x8x32xbf16> to vector<8x32xbf16>
    %44 = vector.shape_cast %41 : vector<8x32xbf16> to vector<1x1x8x32xbf16>
    tpu.vector_store %arg16[%c0_19, %c0_20, %c0_21, %c0_22], %44 {strides = array<i32>} : memref<1x1x8x32xbf16, #tpu.memory_space<vmem>>, vector<1x1x8x32xbf16>,
    %45 = arith.truncf %40 : vector<8x32xf32> to vector<8x32xbf16>
    %c0_23 = arith.constant 0 : index
    %c0_24 = arith.constant 0 : index
    %c0_25 = arith.constant 0 : index
    %c0_26 = arith.constant 0 : index
    %46 = vector.load %arg17[%c0_23, %c0_24, %c0_25, %c0_26] : memref<1x1x8x32xbf16, #tpu.memory_space<vmem>>, vector<1x1x8x32xbf16>
    %47 = vector.shape_cast %46 : vector<1x1x8x32xbf16> to vector<8x32xbf16>
    %48 = vector.shape_cast %45 : vector<8x32xbf16> to vector<1x1x8x32xbf16>
    tpu.vector_store %arg17[%c0_23, %c0_24, %c0_25, %c0_26], %48 {strides = array<i32>} : memref<1x1x8x32xbf16, #tpu.memory_space<vmem>>, vector<1x1x8x32xbf16>,
    %49 = tpu.iota {dimensions = array<i32: 1>} : vector<1x8x8xi32>
    %50 = tpu.iota {dimensions = array<i32: 2>} : vector<1x8x8xi32>
    %51 = arith.cmpi sle, %50, %49 : vector<1x8x8xi32>
    %52 = vector.shape_cast %38 : vector<8x32xf32> to vector<8x4x8xf32>
    %53 = arith.truncf %52 : vector<8x4x8xf32> to vector<8x4x8xbf16>
    %54 = vector.shape_cast %39 : vector<8x32xf32> to vector<8x4x8xf32>
    %55 = arith.truncf %54 : vector<8x4x8xf32> to vector<8x4x8xbf16>
    %56 = vector.shape_cast %40 : vector<8x32xf32> to vector<8x4x8xf32>
    %57 = arith.truncf %56 : vector<8x4x8xf32> to vector<8x4x8xbf16>
    "tpu.trace_start"() <{level = 10 : i32, message = "qnd,knd->nqk"}> : () -> ()
    %cst_27 = arith.constant dense<0.000000e+00> : vector<4x8x8xf32>
    %58 = tpu.matmul %53, %55, %cst_27 {dimension_numbers = #tpu.dot_dimension_numbers<[2], [2], [0], [0], [0, 1, 0, 0, 1, 0], [1], [1]>} : vector<8x4x8xbf16>, vector<8x4x8xbf16>, vector<4x8x8xf32> -> vector<4x8x8xf32>
    %cst_28 = arith.constant -1.000000e+30 : f32
    "tpu.trace_stop"() : () -> ()
    %59 = vector.shape_cast %51 : vector<1x8x8xi1> to vector<1x8x8xi1>
    %60 = vector.broadcast %59 : vector<1x8x8xi1> to vector<4x8x8xi1>
    %61 = vector.broadcast %cst_28 : f32 to vector<4x8x8xf32>
    %62 = arith.select %60, %58, %61 : vector<4x8x8xi1>, vector<4x8x8xf32>
    %cst_29 = arith.constant dense<0xFF800000> : vector<4x8xf32>
    %63 = vector.multi_reduction <maximumf>, %62, %cst_29 [2] : vector<4x8x8xf32> to vector<4x8xf32>
    %64 = vector.shape_cast %63 : vector<4x8xf32> to vector<4x8x1xf32>
    %65 = vector.broadcast %64 : vector<4x8x1xf32> to vector<4x8x8xf32>
    %66 = arith.subf %62, %65 : vector<4x8x8xf32>
    %67 = math.exp %66 : vector<4x8x8xf32>
    %cst_30 = arith.constant dense<0.000000e+00> : vector<4x8xf32>
    %68 = vector.multi_reduction <add>, %67, %cst_30 [2] : vector<4x8x8xf32> to vector<4x8xf32>
    %69 = vector.shape_cast %68 : vector<4x8xf32> to vector<4x8x1xf32>
    %70 = tpu.reciprocal %69 {approx = true} : vector<4x8x1xf32> -> vector<4x8x1xf32>
    %71 = vector.broadcast %70 : vector<4x8x1xf32> to vector<4x8x8xf32>
    %72 = arith.mulf %67, %71 : vector<4x8x8xf32>
    %73 = arith.truncf %72 : vector<4x8x8xf32> to vector<4x8x8xbf16>
    "tpu.trace_start"() <{level = 10 : i32, message = "nqk,knd->qnd"}> : () -> ()
    %cst_31 = arith.constant dense<0.000000e+00> : vector<4x8x8xf32>
    %74 = tpu.matmul %57, %73, %cst_31 {dimension_numbers = #tpu.dot_dimension_numbers<[0], [2], [2], [1], [0, 1, 0, 2, 1, 1], [1], [0]>} : vector<8x4x8xbf16>, vector<4x8x8xbf16>, vector<4x8x8xf32> -> vector<4x8x8xf32>
    %75 = tpu.transpose %74, [2, 0, 1] : vector<4x8x8xf32> -> vector<8x4x8xf32>
    "tpu.trace_stop"() : () -> ()
    %76 = vector.shape_cast %75 : vector<8x4x8xf32> to vector<8x32xf32>
    %77 = arith.truncf %76 : vector<8x32xf32> to vector<8x32xbf16>
    %c0_32 = arith.constant 0 : index
    %c0_33 = arith.constant 0 : index
    %c0_34 = arith.constant 0 : index
    %78 = vector.load %arg7[%c0_32, %c0_33, %c0_34] : memref<1x32x32xbf16, #tpu.memory_space<vmem>>, vector<1x32x32xbf16>
    %79 = vector.shape_cast %78 : vector<1x32x32xbf16> to vector<32x32xbf16>
    %cst_35 = arith.constant dense<0.000000e+00> : vector<8x32xf32>
    %80 = tpu.matmul %77, %79, %cst_35 {dimension_numbers = #tpu.dot_dimension_numbers<[1], [0], [0], [1], [0, 0, 1, 1], [], []>} : vector<8x32xbf16>, vector<32x32xbf16>, vector<8x32xf32> -> vector<8x32xf32>
    %c0_36 = arith.constant 0 : index
    %c0_37 = arith.constant 0 : index
    %c0_38 = arith.constant 0 : index
    %81 = vector.load %arg8[%c0_36, %c0_37, %c0_38] : memref<1x1x32xf32, #tpu.memory_space<vmem>>, vector<1x1x32xf32>
    %82 = vector.shape_cast %81 : vector<1x1x32xf32> to vector<1x32xf32>
    %83 = vector.broadcast %82 : vector<1x32xf32> to vector<8x32xf32>
    %84 = arith.addf %80, %83 : vector<8x32xf32>
    %85 = arith.addf %3, %84 : vector<8x32xf32>
    %c0_39 = arith.constant 0 : index
    %c0_40 = arith.constant 0 : index
    %c0_41 = arith.constant 0 : index
    %86 = vector.load %arg9[%c0_39, %c0_40, %c0_41] : memref<1x1x32xf32, #tpu.memory_space<vmem>>, vector<1x1x32xf32>
    %87 = vector.shape_cast %86 : vector<1x1x32xf32> to vector<1x32xf32>
    %c0_42 = arith.constant 0 : index
    %c0_43 = arith.constant 0 : index
    %c0_44 = arith.constant 0 : index
    %88 = vector.load %arg10[%c0_42, %c0_43, %c0_44] : memref<1x1x32xf32, #tpu.memory_space<vmem>>, vector<1x1x32xf32>
    %89 = vector.shape_cast %88 : vector<1x1x32xf32> to vector<1x32xf32>
    %cst_45 = arith.constant dense<0.000000e+00> : vector<8xf32>
    %90 = vector.multi_reduction <add>, %85, %cst_45 [1] : vector<8x32xf32> to vector<8xf32>
    %91 = vector.shape_cast %90 : vector<8xf32> to vector<8x1xf32>
    %cst_46 = arith.constant 3.200000e+01 : f32
    %92 = vector.broadcast %cst_46 : f32 to vector<8x1xf32>
    %93 = arith.divf %91, %92 : vector<8x1xf32>
    %94 = vector.broadcast %93 : vector<8x1xf32> to vector<8x32xf32>
    %95 = arith.subf %85, %94 : vector<8x32xf32>
    %96 = arith.mulf %95, %95 : vector<8x32xf32>
    %cst_47 = arith.constant dense<0.000000e+00> : vector<8xf32>
    %97 = vector.multi_reduction <add>, %96, %cst_47 [1] : vector<8x32xf32> to vector<8xf32>
    %98 = vector.shape_cast %97 : vector<8xf32> to vector<8x1xf32>
    %cst_48 = arith.constant 3.200000e+01 : f32
    %99 = vector.broadcast %cst_48 : f32 to vector<8x1xf32>
    %100 = arith.divf %98, %99 : vector<8x1xf32>
    %101 = vector.broadcast %93 : vector<8x1xf32> to vector<8x32xf32>
    %102 = arith.subf %85, %101 : vector<8x32xf32>
    %cst_49 = arith.constant 9.99999974E-6 : f32
    %103 = vector.broadcast %cst_49 : f32 to vector<8x1xf32>
    %104 = arith.addf %100, %103 : vector<8x1xf32>
    %105 = math.rsqrt %104 : vector<8x1xf32>
    %106 = vector.broadcast %105 : vector<8x1xf32> to vector<8x32xf32>
    %107 = arith.mulf %102, %106 : vector<8x32xf32>
    %108 = vector.broadcast %87 : vector<1x32xf32> to vector<8x32xf32>
    %109 = arith.mulf %107, %108 : vector<8x32xf32>
    %110 = vector.broadcast %89 : vector<1x32xf32> to vector<8x32xf32>
    %111 = arith.addf %109, %110 : vector<8x32xf32>
    %112 = arith.truncf %111 : vector<8x32xf32> to vector<8x32xbf16>
    %c0_50 = arith.constant 0 : index
    %c0_51 = arith.constant 0 : index
    %c0_52 = arith.constant 0 : index
    %113 = vector.load %arg11[%c0_50, %c0_51, %c0_52] : memref<1x32x128xbf16, #tpu.memory_space<vmem>>, vector<1x32x128xbf16>
    %114 = vector.shape_cast %113 : vector<1x32x128xbf16> to vector<32x128xbf16>
    %cst_53 = arith.constant dense<0.000000e+00> : vector<8x128xf32>
    %115 = tpu.matmul %112, %114, %cst_53 {dimension_numbers = #tpu.dot_dimension_numbers<[1], [0], [0], [1], [0, 0, 1, 1], [], []>} : vector<8x32xbf16>, vector<32x128xbf16>, vector<8x128xf32> -> vector<8x128xf32>
    %c0_54 = arith.constant 0 : index
    %c0_55 = arith.constant 0 : index
    %c0_56 = arith.constant 0 : index
    %116 = vector.load %arg12[%c0_54, %c0_55, %c0_56] : memref<1x1x128xf32, #tpu.memory_space<vmem>>, vector<1x1x128xf32>
    %117 = vector.shape_cast %116 : vector<1x1x128xf32> to vector<1x128xf32>
    %118 = vector.broadcast %117 : vector<1x128xf32> to vector<8x128xf32>
    %119 = arith.addf %115, %118 : vector<8x128xf32>
    %cst_57 = arith.constant 5.000000e-01 : f32
    %120 = vector.broadcast %cst_57 : f32 to vector<8x128xf32>
    %121 = arith.mulf %120, %119 : vector<8x128xf32>
    %cst_58 = arith.constant 4.471500e-02 : f32
    %122 = vector.broadcast %cst_58 : f32 to vector<8x128xf32>
    %123 = arith.mulf %122, %119 : vector<8x128xf32>
    %124 = arith.mulf %123, %119 : vector<8x128xf32>
    %125 = arith.mulf %124, %119 : vector<8x128xf32>
    %126 = arith.addf %119, %125 : vector<8x128xf32>
    %cst_59 = arith.constant 0.797884583 : f32
    %127 = vector.broadcast %cst_59 : f32 to vector<8x128xf32>
    %128 = arith.mulf %127, %126 : vector<8x128xf32>
    %129 = math.tanh %128 : vector<8x128xf32>
    %cst_60 = arith.constant 1.000000e+00 : f32
    %130 = vector.broadcast %cst_60 : f32 to vector<8x128xf32>
    %131 = arith.addf %130, %129 : vector<8x128xf32>
    %132 = arith.mulf %121, %131 : vector<8x128xf32>
    %133 = arith.truncf %132 : vector<8x128xf32> to vector<8x128xbf16>
    %c0_61 = arith.constant 0 : index
    %c0_62 = arith.constant 0 : index
    %c0_63 = arith.constant 0 : index
    %134 = vector.load %arg13[%c0_61, %c0_62, %c0_63] : memref<1x128x32xbf16, #tpu.memory_space<vmem>>, vector<1x128x32xbf16>
    %135 = vector.shape_cast %134 : vector<1x128x32xbf16> to vector<128x32xbf16>
    %cst_64 = arith.constant dense<0.000000e+00> : vector<8x32xf32>
    %136 = tpu.matmul %133, %135, %cst_64 {dimension_numbers = #tpu.dot_dimension_numbers<[1], [0], [0], [1], [0, 0, 1, 1], [], []>} : vector<8x128xbf16>, vector<128x32xbf16>, vector<8x32xf32> -> vector<8x32xf32>
    %c0_65 = arith.constant 0 : index
    %c0_66 = arith.constant 0 : index
    %c0_67 = arith.constant 0 : index
    %137 = vector.load %arg14[%c0_65, %c0_66, %c0_67] : memref<1x1x32xf32, #tpu.memory_space<vmem>>, vector<1x1x32xf32>
    %138 = vector.shape_cast %137 : vector<1x1x32xf32> to vector<1x32xf32>
    %139 = vector.broadcast %138 : vector<1x32xf32> to vector<8x32xf32>
    %140 = arith.addf %136, %139 : vector<8x32xf32>
    %141 = arith.addf %85, %140 : vector<8x32xf32>
    %c0_68 = arith.constant 0 : index
    %c0_69 = arith.constant 0 : index
    %142 = vector.load %arg18[%c0_68, %c0_69] : memref<8x32xf32, #tpu.memory_space<vmem>>, vector<8x32xf32>
    tpu.vector_store %arg18[%c0_68, %c0_69], %141 {strides = array<i32>} : memref<8x32xf32, #tpu.memory_space<vmem>>, vector<8x32xf32>,
    %c1_i32 = arith.constant 1 : i32
    %143 = arith.cmpi eq, %arg1, %c1_i32 : i32
    %144 = arith.extui %143 : i1 to i32
    %c0_i32_70 = arith.constant 0 : i32
    %145 = arith.cmpi ne, %144, %c0_i32_70 : i32
    scf.if %145 {
      %146 = vector.extract_strided_slice %141 {offsets = [7, 0], sizes = [1, 32], strides = [1, 1]} : vector<8x32xf32> to vector<1x32xf32>
      %c0_71 = arith.constant 0 : index
      %c0_72 = arith.constant 0 : index
      %c0_73 = arith.constant 0 : index
      %147 = vector.load %arg15[%c0_71, %c0_72, %c0_73] : memref<1x1x32xf32, #tpu.memory_space<vmem>>, vector<1x1x32xf32>
      %148 = vector.shape_cast %147 : vector<1x1x32xf32> to vector<1x32xf32>
      %149 = vector.shape_cast %146 : vector<1x32xf32> to vector<1x1x32xf32>
      tpu.vector_store %arg15[%c0_71, %c0_72, %c0_73], %149 {strides = array<i32>} : memref<1x1x32xf32, #tpu.memory_space<vmem>>, vector<1x1x32xf32>,
    } else {
    }
    return
  }
  func.func @transform_0(%arg0: i32, %arg1: i32) -> (i32, i32, i32) {
    %c0_i32 = arith.constant 0 : i32
    %c0_i32_0 = arith.constant 0 : i32
    %c0_i32_1 = arith.constant 0 : i32
    return %arg0, %c0_i32, %c0_i32_0 : i32, i32, i32
  }
  func.func @transform_1(%arg0: i32, %arg1: i32) -> (i32, i32, i32) {
    %c0_i32 = arith.constant 0 : i32
    %c0_i32_0 = arith.constant 0 : i32
    %c0_i32_1 = arith.constant 0 : i32
    return %arg1, %c0_i32, %c0_i32_0 : i32, i32, i32
  }
  func.func @transform_2(%arg0: i32, %arg1: i32) -> (i32, i32, i32) {
    %c0_i32 = arith.constant 0 : i32
    %c0_i32_0 = arith.constant 0 : i32
    %c0_i32_1 = arith.constant 0 : i32
    return %arg1, %c0_i32, %c0_i32_0 : i32, i32, i32
  }
  func.func @transform_3(%arg0: i32, %arg1: i32) -> (i32, i32, i32) {
    %c0_i32 = arith.constant 0 : i32
    %c0_i32_0 = arith.constant 0 : i32
    %c0_i32_1 = arith.constant 0 : i32
    return %arg1, %c0_i32, %c0_i32_0 : i32, i32, i32
  }
  func.func @transform_4(%arg0: i32, %arg1: i32) -> (i32, i32, i32) {
    %c0_i32 = arith.constant 0 : i32
    %c0_i32_0 = arith.constant 0 : i32
    %c0_i32_1 = arith.constant 0 : i32
    return %arg1, %c0_i32, %c0_i32_0 : i32, i32, i32
  }
  func.func @transform_5(%arg0: i32, %arg1: i32) -> (i32, i32, i32) {
    %c0_i32 = arith.constant 0 : i32
    %c0_i32_0 = arith.constant 0 : i32
    %c0_i32_1 = arith.constant 0 : i32
    return %arg1, %c0_i32, %c0_i32_0 : i32, i32, i32
  }
  func.func @transform_6(%arg0: i32, %arg1: i32) -> (i32, i32, i32) {
    %c0_i32 = arith.constant 0 : i32
    %c0_i32_0 = arith.constant 0 : i32
    %c0_i32_1 = arith.constant 0 : i32
    return %arg1, %c0_i32, %c0_i32_0 : i32, i32, i32
  }
  func.func @transform_7(%arg0: i32, %arg1: i32) -> (i32, i32, i32) {
    %c0_i32 = arith.constant 0 : i32
    %c0_i32_0 = arith.constant 0 : i32
    %c0_i32_1 = arith.constant 0 : i32
    return %arg1, %c0_i32, %c0_i32_0 : i32, i32, i32
  }
  func.func @transform_8(%arg0: i32, %arg1: i32) -> (i32, i32, i32) {
    %c0_i32 = arith.constant 0 : i32
    %c0_i32_0 = arith.constant 0 : i32
    %c0_i32_1 = arith.constant 0 : i32
    return %arg1, %c0_i32, %c0_i32_0 : i32, i32, i32
  }
  func.func @transform_9(%arg0: i32, %arg1: i32) -> (i32, i32, i32) {
    %c0_i32 = arith.constant 0 : i32
    %c0_i32_0 = arith.constant 0 : i32
    %c0_i32_1 = arith.constant 0 : i32
    return %arg1, %c0_i32, %c0_i32_0 : i32, i32, i32
  }
  func.func @transform_10(%arg0: i32, %arg1: i32) -> (i32, i32, i32) {
    %c0_i32 = arith.constant 0 : i32
    %c0_i32_0 = arith.constant 0 : i32
    %c0_i32_1 = arith.constant 0 : i32
    return %arg1, %c0_i32, %c0_i32_0 : i32, i32, i32
  }
  func.func @transform_11(%arg0: i32, %arg1: i32) -> (i32, i32, i32) {
    %c0_i32 = arith.constant 0 : i32
    %c0_i32_0 = arith.constant 0 : i32
    %c0_i32_1 = arith.constant 0 : i32
    return %arg1, %c0_i32, %c0_i32_0 : i32, i32, i32
  }
  func.func @transform_12(%arg0: i32, %arg1: i32) -> (i32, i32, i32) {
    %c0_i32 = arith.constant 0 : i32
    %c0_i32_0 = arith.constant 0 : i32
    %c0_i32_1 = arith.constant 0 : i32
    return %arg1, %c0_i32, %c0_i32_0 : i32, i32, i32
  }
  func.func @transform_13(%arg0: i32, %arg1: i32) -> (i32, i32, i32) {
    %c0_i32 = arith.constant 0 : i32
    %c0_i32_0 = arith.constant 0 : i32
    %c0_i32_1 = arith.constant 0 : i32
    return %arg0, %c0_i32, %c0_i32_0 : i32, i32, i32
  }
  func.func @transform_14(%arg0: i32, %arg1: i32) -> (i32, i32, i32, i32) {
    %c0_i32 = arith.constant 0 : i32
    %c0_i32_0 = arith.constant 0 : i32
    %c0_i32_1 = arith.constant 0 : i32
    return %arg1, %arg0, %c0_i32, %c0_i32_0 : i32, i32, i32, i32
  }
  func.func @transform_15(%arg0: i32, %arg1: i32) -> (i32, i32, i32, i32) {
    %c0_i32 = arith.constant 0 : i32
    %c0_i32_0 = arith.constant 0 : i32
    %c0_i32_1 = arith.constant 0 : i32
    return %arg1, %arg0, %c0_i32, %c0_i32_0 : i32, i32, i32, i32
  }
}

module attributes {stable_mosaic.version = 11 : i64} {
  func.func @logits_kernel(%arg0: i32, %arg1: i32, %arg2: memref<1x1x32xf32, #tpu.memory_space<vmem>>, %arg3: memref<1x32xf32, #tpu.memory_space<vmem>>, %arg4: memref<1x32xf32, #tpu.memory_space<vmem>>, %arg5: memref<32x128xbf16, #tpu.memory_space<vmem>>, %arg6: memref<1x1x128xf32, #tpu.memory_space<vmem>>) attributes {dimension_semantics = [#tpu.dimension_semantics<parallel>, #tpu.dimension_semantics<parallel>], iteration_bounds = array<i64: 2, 1>, scalar_prefetch = 0 : i64, scratch_operands = 0 : i64, tpu.core_type = #tpu.core_type<tc>, window_params = [{transform_indices = @transform_0, window_bounds = array<i64: 1, 1, 32>}, {pipeline_mode = #tpu.pipeline_mode<synchronous>, transform_indices = @transform_1, window_bounds = array<i64: 1, 32>}, {pipeline_mode = #tpu.pipeline_mode<synchronous>, transform_indices = @transform_2, window_bounds = array<i64: 1, 32>}, {transform_indices = @transform_3, window_bounds = array<i64: 32, 128>}, {transform_indices = @transform_4, window_bounds = array<i64: 1, 1, 128>}]} {
    %c0 = arith.constant 0 : index
    %c0_0 = arith.constant 0 : index
    %c0_1 = arith.constant 0 : index
    %0 = vector.load %arg2[%c0, %c0_0, %c0_1] : memref<1x1x32xf32, #tpu.memory_space<vmem>>, vector<1x1x32xf32>
    %1 = vector.shape_cast %0 : vector<1x1x32xf32> to vector<1x32xf32>
    %c0_2 = arith.constant 0 : index
    %c0_3 = arith.constant 0 : index
    %2 = vector.load %arg3[%c0_2, %c0_3] : memref<1x32xf32, #tpu.memory_space<vmem>>, vector<1x32xf32>
    %c0_4 = arith.constant 0 : index
    %c0_5 = arith.constant 0 : index
    %3 = vector.load %arg4[%c0_4, %c0_5] : memref<1x32xf32, #tpu.memory_space<vmem>>, vector<1x32xf32>
    %cst = arith.constant dense<0.000000e+00> : vector<1xf32>
    %4 = vector.multi_reduction <add>, %1, %cst [1] : vector<1x32xf32> to vector<1xf32>
    %5 = vector.shape_cast %4 : vector<1xf32> to vector<1x1xf32>
    %cst_6 = arith.constant 3.200000e+01 : f32
    %6 = vector.broadcast %cst_6 : f32 to vector<1x1xf32>
    %7 = arith.divf %5, %6 : vector<1x1xf32>
    %8 = vector.broadcast %7 : vector<1x1xf32> to vector<1x32xf32>
    %9 = arith.subf %1, %8 : vector<1x32xf32>
    %10 = arith.mulf %9, %9 : vector<1x32xf32>
    %cst_7 = arith.constant dense<0.000000e+00> : vector<1xf32>
    %11 = vector.multi_reduction <add>, %10, %cst_7 [1] : vector<1x32xf32> to vector<1xf32>
    %12 = vector.shape_cast %11 : vector<1xf32> to vector<1x1xf32>
    %cst_8 = arith.constant 3.200000e+01 : f32
    %13 = vector.broadcast %cst_8 : f32 to vector<1x1xf32>
    %14 = arith.divf %12, %13 : vector<1x1xf32>
    %15 = vector.broadcast %7 : vector<1x1xf32> to vector<1x32xf32>
    %16 = arith.subf %1, %15 : vector<1x32xf32>
    %cst_9 = arith.constant 9.99999974E-6 : f32
    %17 = vector.broadcast %cst_9 : f32 to vector<1x1xf32>
    %18 = arith.addf %14, %17 : vector<1x1xf32>
    %19 = math.rsqrt %18 : vector<1x1xf32>
    %20 = vector.broadcast %19 : vector<1x1xf32> to vector<1x32xf32>
    %21 = arith.mulf %16, %20 : vector<1x32xf32>
    %22 = arith.mulf %21, %2 : vector<1x32xf32>
    %23 = arith.addf %22, %3 : vector<1x32xf32>
    %24 = arith.truncf %23 : vector<1x32xf32> to vector<1x32xbf16>
    %c0_10 = arith.constant 0 : index
    %c0_11 = arith.constant 0 : index
    %25 = vector.load %arg5[%c0_10, %c0_11] : memref<32x128xbf16, #tpu.memory_space<vmem>>, vector<32x128xbf16>
    %cst_12 = arith.constant dense<0.000000e+00> : vector<1x128xf32>
    %26 = tpu.matmul %24, %25, %cst_12 {dimension_numbers = #tpu.dot_dimension_numbers<[1], [0], [0], [1], [0, 0, 1, 1], [], []>} : vector<1x32xbf16>, vector<32x128xbf16>, vector<1x128xf32> -> vector<1x128xf32>
    %c0_13 = arith.constant 0 : index
    %c0_14 = arith.constant 0 : index
    %c0_15 = arith.constant 0 : index
    %27 = vector.load %arg6[%c0_13, %c0_14, %c0_15] : memref<1x1x128xf32, #tpu.memory_space<vmem>>, vector<1x1x128xf32>
    %28 = vector.shape_cast %27 : vector<1x1x128xf32> to vector<1x128xf32>
    %29 = vector.shape_cast %26 : vector<1x128xf32> to vector<1x1x128xf32>
    tpu.vector_store %arg6[%c0_13, %c0_14, %c0_15], %29 {strides = array<i32>} : memref<1x1x128xf32, #tpu.memory_space<vmem>>, vector<1x1x128xf32>,
    return
  }
  func.func @transform_0(%arg0: i32, %arg1: i32) -> (i32, i32, i32) {
    %c0_i32 = arith.constant 0 : i32
    %c0_i32_0 = arith.constant 0 : i32
    %c0_i32_1 = arith.constant 0 : i32
    return %arg0, %c0_i32, %c0_i32_0 : i32, i32, i32
  }
  func.func @transform_1(%arg0: i32, %arg1: i32) -> (i32, i32) {
    %c0_i32 = arith.constant 0 : i32
    %c0_i32_0 = arith.constant 0 : i32
    %c0_i32_1 = arith.constant 0 : i32
    return %c0_i32, %c0_i32_0 : i32, i32
  }
  func.func @transform_2(%arg0: i32, %arg1: i32) -> (i32, i32) {
    %c0_i32 = arith.constant 0 : i32
    %c0_i32_0 = arith.constant 0 : i32
    %c0_i32_1 = arith.constant 0 : i32
    return %c0_i32, %c0_i32_0 : i32, i32
  }
  func.func @transform_3(%arg0: i32, %arg1: i32) -> (i32, i32) {
    %c0_i32 = arith.constant 0 : i32
    %c0_i32_0 = arith.constant 0 : i32
    return %c0_i32, %arg1 : i32, i32
  }
  func.func @transform_4(%arg0: i32, %arg1: i32) -> (i32, i32, i32) {
    %c0_i32 = arith.constant 0 : i32
    %c0_i32_0 = arith.constant 0 : i32
    return %arg0, %c0_i32, %arg1 : i32, i32, i32
  }
}

module attributes {stable_mosaic.version = 11 : i64} {
  func.func @gpt_decode_kernel(%arg0: i32, %arg1: i32, %arg2: memref<1xi32, #tpu.memory_space<smem>>, %arg3: memref<1x1x32xf32, #tpu.memory_space<vmem>>, %arg4: memref<1x1x32xf32, #tpu.memory_space<vmem>>, %arg5: memref<1x1x32xf32, #tpu.memory_space<vmem>>, %arg6: memref<1x32x96xbf16, #tpu.memory_space<vmem>>, %arg7: memref<1x1x96xf32, #tpu.memory_space<vmem>>, %arg8: memref<1x32x32xbf16, #tpu.memory_space<vmem>>, %arg9: memref<1x1x32xf32, #tpu.memory_space<vmem>>, %arg10: memref<1x1x32xf32, #tpu.memory_space<vmem>>, %arg11: memref<1x1x32xf32, #tpu.memory_space<vmem>>, %arg12: memref<1x32x128xbf16, #tpu.memory_space<vmem>>, %arg13: memref<1x1x128xf32, #tpu.memory_space<vmem>>, %arg14: memref<1x128x32xbf16, #tpu.memory_space<vmem>>, %arg15: memref<1x1x32xf32, #tpu.memory_space<vmem>>, %arg16: memref<1x1x12x32xbf16, #tpu.memory_space<vmem>>, %arg17: memref<1x1x12x32xbf16, #tpu.memory_space<vmem>>, %arg18: memref<1x1x32xf32, #tpu.memory_space<vmem>>, %arg19: memref<1x1x1x32xbf16, #tpu.memory_space<vmem>>, %arg20: memref<1x1x1x32xbf16, #tpu.memory_space<vmem>>, %arg21: memref<1x32xf32, #tpu.memory_space<vmem>>) attributes {dimension_semantics = [#tpu.dimension_semantics<parallel>, #tpu.dimension_semantics<arbitrary>], iteration_bounds = array<i64: 2, 2>, scalar_prefetch = 0 : i64, scratch_operands = 1 : i64, tpu.core_type = #tpu.core_type<tc>, window_params = [{transform_indices = @transform_0, window_bounds = array<i64: 1>}, {transform_indices = @transform_1, window_bounds = array<i64: 1, 1, 32>}, {transform_indices = @transform_2, window_bounds = array<i64: 1, 1, 32>}, {transform_indices = @transform_3, window_bounds = array<i64: 1, 1, 32>}, {transform_indices = @transform_4, window_bounds = array<i64: 1, 32, 96>}, {transform_indices = @transform_5, window_bounds = array<i64: 1, 1, 96>}, {transform_indices = @transform_6, window_bounds = array<i64: 1, 32, 32>}, {transform_indices = @transform_7, window_bounds = array<i64: 1, 1, 32>}, {transform_indices = @transform_8, window_bounds = array<i64: 1, 1, 32>}, {transform_indices = @transform_9, window_bounds = array<i64: 1, 1, 32>}, {transform_indices = @transform_10, window_bounds = array<i64: 1, 32, 128>}, {transform_indices = @transform_11, window_bounds = array<i64: 1, 1, 128>}, {transform_indices = @transform_12, window_bounds = array<i64: 1, 128, 32>}, {transform_indices = @transform_13, window_bounds = array<i64: 1, 1, 32>}, {transform_indices = @transform_14, window_bounds = array<i64: 1, 1, 12, 32>}, {transform_indices = @transform_15, window_bounds = array<i64: 1, 1, 12, 32>}, {transform_indices = @transform_16, window_bounds = array<i64: 1, 1, 32>}, {transform_indices = @transform_17, window_bounds = array<i64: 1, 1, 1, 32>}, {transform_indices = @transform_18, window_bounds = array<i64: 1, 1, 1, 32>}]} {
    %c0 = arith.constant 0 : index
    %0 = memref.load %arg2[%c0] : memref<1xi32, #tpu.memory_space<smem>>
    %c0_i32 = arith.constant 0 : i32
    %1 = arith.cmpi eq, %arg1, %c0_i32 : i32
    %2 = arith.extui %1 : i1 to i32
    %c0_i32_0 = arith.constant 0 : i32
    %3 = arith.cmpi ne, %2, %c0_i32_0 : i32
    scf.if %3 {
      %c0_80 = arith.constant 0 : index
      %c0_81 = arith.constant 0 : index
      %c0_82 = arith.constant 0 : index
      %154 = vector.load %arg3[%c0_80, %c0_81, %c0_82] : memref<1x1x32xf32, #tpu.memory_space<vmem>>, vector<1x1x32xf32>
      %155 = vector.shape_cast %154 : vector<1x1x32xf32> to vector<1x32xf32>
      %c0_83 = arith.constant 0 : index
      %c0_84 = arith.constant 0 : index
      %156 = vector.load %arg21[%c0_83, %c0_84] : memref<1x32xf32, #tpu.memory_space<vmem>>, vector<1x32xf32>
      tpu.vector_store %arg21[%c0_83, %c0_84], %155 {strides = array<i32>} : memref<1x32xf32, #tpu.memory_space<vmem>>, vector<1x32xf32>,
    } else {
    }
    %c0_1 = arith.constant 0 : index
    %c0_2 = arith.constant 0 : index
    %4 = vector.load %arg21[%c0_1, %c0_2] : memref<1x32xf32, #tpu.memory_space<vmem>>, vector<1x32xf32>
    %c0_3 = arith.constant 0 : index
    %c0_4 = arith.constant 0 : index
    %c0_5 = arith.constant 0 : index
    %5 = vector.load %arg4[%c0_3, %c0_4, %c0_5] : memref<1x1x32xf32, #tpu.memory_space<vmem>>, vector<1x1x32xf32>
    %6 = vector.shape_cast %5 : vector<1x1x32xf32> to vector<1x32xf32>
    %c0_6 = arith.constant 0 : index
    %c0_7 = arith.constant 0 : index
    %c0_8 = arith.constant 0 : index
    %7 = vector.load %arg5[%c0_6, %c0_7, %c0_8] : memref<1x1x32xf32, #tpu.memory_space<vmem>>, vector<1x1x32xf32>
    %8 = vector.shape_cast %7 : vector<1x1x32xf32> to vector<1x32xf32>
    %cst = arith.constant dense<0.000000e+00> : vector<1xf32>
    %9 = vector.multi_reduction <add>, %4, %cst [1] : vector<1x32xf32> to vector<1xf32>
    %10 = vector.shape_cast %9 : vector<1xf32> to vector<1x1xf32>
    %cst_9 = arith.constant 3.200000e+01 : f32
    %11 = vector.broadcast %cst_9 : f32 to vector<1x1xf32>
    %12 = arith.divf %10, %11 : vector<1x1xf32>
    %13 = vector.broadcast %12 : vector<1x1xf32> to vector<1x32xf32>
    %14 = arith.subf %4, %13 : vector<1x32xf32>
    %15 = arith.mulf %14, %14 : vector<1x32xf32>
    %cst_10 = arith.constant dense<0.000000e+00> : vector<1xf32>
    %16 = vector.multi_reduction <add>, %15, %cst_10 [1] : vector<1x32xf32> to vector<1xf32>
    %17 = vector.shape_cast %16 : vector<1xf32> to vector<1x1xf32>
    %cst_11 = arith.constant 3.200000e+01 : f32
    %18 = vector.broadcast %cst_11 : f32 to vector<1x1xf32>
    %19 = arith.divf %17, %18 : vector<1x1xf32>
    %20 = vector.broadcast %12 : vector<1x1xf32> to vector<1x32xf32>
    %21 = arith.subf %4, %20 : vector<1x32xf32>
    %cst_12 = arith.constant 9.99999974E-6 : f32
    %22 = vector.broadcast %cst_12 : f32 to vector<1x1xf32>
    %23 = arith.addf %19, %22 : vector<1x1xf32>
    %24 = math.rsqrt %23 : vector<1x1xf32>
    %25 = vector.broadcast %24 : vector<1x1xf32> to vector<1x32xf32>
    %26 = arith.mulf %21, %25 : vector<1x32xf32>
    %27 = arith.mulf %26, %6 : vector<1x32xf32>
    %28 = arith.addf %27, %8 : vector<1x32xf32>
    %29 = arith.truncf %28 : vector<1x32xf32> to vector<1x32xbf16>
    %c0_13 = arith.constant 0 : index
    %c0_14 = arith.constant 0 : index
    %c0_15 = arith.constant 0 : index
    %30 = vector.load %arg6[%c0_13, %c0_14, %c0_15] : memref<1x32x96xbf16, #tpu.memory_space<vmem>>, vector<1x32x96xbf16>
    %31 = vector.shape_cast %30 : vector<1x32x96xbf16> to vector<32x96xbf16>
    %cst_16 = arith.constant dense<0.000000e+00> : vector<1x96xf32>
    %32 = tpu.matmul %29, %31, %cst_16 {dimension_numbers = #tpu.dot_dimension_numbers<[1], [0], [0], [1], [0, 0, 1, 1], [], []>} : vector<1x32xbf16>, vector<32x96xbf16>, vector<1x96xf32> -> vector<1x96xf32>
    %c0_17 = arith.constant 0 : index
    %c0_18 = arith.constant 0 : index
    %c0_19 = arith.constant 0 : index
    %33 = vector.load %arg7[%c0_17, %c0_18, %c0_19] : memref<1x1x96xf32, #tpu.memory_space<vmem>>, vector<1x1x96xf32>
    %34 = vector.shape_cast %33 : vector<1x1x96xf32> to vector<1x96xf32>
    %35 = arith.addf %32, %34 : vector<1x96xf32>
    %36 = vector.extract_strided_slice %35 {offsets = [0, 0], sizes = [1, 32], strides = [1, 1]} : vector<1x96xf32> to vector<1x32xf32>
    %37 = vector.extract_strided_slice %35 {offsets = [0, 32], sizes = [1, 32], strides = [1, 1]} : vector<1x96xf32> to vector<1x32xf32>
    %38 = vector.extract_strided_slice %35 {offsets = [0, 64], sizes = [1, 32], strides = [1, 1]} : vector<1x96xf32> to vector<1x32xf32>
    %39 = arith.truncf %37 : vector<1x32xf32> to vector<1x32xbf16>
    %40 = arith.truncf %38 : vector<1x32xf32> to vector<1x32xbf16>
    %c0_20 = arith.constant 0 : index
    %c0_21 = arith.constant 0 : index
    %c0_22 = arith.constant 0 : index
    %c0_23 = arith.constant 0 : index
    %41 = vector.load %arg19[%c0_20, %c0_21, %c0_22, %c0_23] : memref<1x1x1x32xbf16, #tpu.memory_space<vmem>>, vector<1x1x1x32xbf16>
    %42 = vector.shape_cast %41 : vector<1x1x1x32xbf16> to vector<1x32xbf16>
    %43 = vector.shape_cast %39 : vector<1x32xbf16> to vector<1x1x1x32xbf16>
    tpu.vector_store %arg19[%c0_20, %c0_21, %c0_22, %c0_23], %43 {strides = array<i32>} : memref<1x1x1x32xbf16, #tpu.memory_space<vmem>>, vector<1x1x1x32xbf16>,
    %c0_24 = arith.constant 0 : index
    %c0_25 = arith.constant 0 : index
    %c0_26 = arith.constant 0 : index
    %c0_27 = arith.constant 0 : index
    %44 = vector.load %arg20[%c0_24, %c0_25, %c0_26, %c0_27] : memref<1x1x1x32xbf16, #tpu.memory_space<vmem>>, vector<1x1x1x32xbf16>
    %45 = vector.shape_cast %44 : vector<1x1x1x32xbf16> to vector<1x32xbf16>
    %46 = vector.shape_cast %40 : vector<1x32xbf16> to vector<1x1x1x32xbf16>
    tpu.vector_store %arg20[%c0_24, %c0_25, %c0_26, %c0_27], %46 {strides = array<i32>} : memref<1x1x1x32xbf16, #tpu.memory_space<vmem>>, vector<1x1x1x32xbf16>,
    %47 = tpu.iota {dimensions = array<i32: 0>} : vector<12x1xi32>
    %48 = vector.broadcast %0 : i32 to vector<12x1xi32>
    %49 = arith.cmpi eq, %47, %48 : vector<12x1xi32>
    %c0_28 = arith.constant 0 : index
    %c0_29 = arith.constant 0 : index
    %c0_30 = arith.constant 0 : index
    %c0_31 = arith.constant 0 : index
    %50 = vector.load %arg16[%c0_28, %c0_29, %c0_30, %c0_31] : memref<1x1x12x32xbf16, #tpu.memory_space<vmem>>, vector<1x1x12x32xbf16>
    %51 = vector.shape_cast %50 : vector<1x1x12x32xbf16> to vector<12x32xbf16>
    %52 = vector.shape_cast %49 : vector<12x1xi1> to vector<12x1xi1>
    %53 = vector.broadcast %52 : vector<12x1xi1> to vector<12x32xi1>
    %54 = vector.shape_cast %39 : vector<1x32xbf16> to vector<1x32xbf16>
    %55 = vector.broadcast %54 : vector<1x32xbf16> to vector<12x32xbf16>
    %56 = arith.select %53, %55, %51 : vector<12x32xi1>, vector<12x32xbf16>
    %c0_32 = arith.constant 0 : index
    %c0_33 = arith.constant 0 : index
    %c0_34 = arith.constant 0 : index
    %c0_35 = arith.constant 0 : index
    %57 = vector.load %arg17[%c0_32, %c0_33, %c0_34, %c0_35] : memref<1x1x12x32xbf16, #tpu.memory_space<vmem>>, vector<1x1x12x32xbf16>
    %58 = vector.shape_cast %57 : vector<1x1x12x32xbf16> to vector<12x32xbf16>
    %59 = vector.shape_cast %49 : vector<12x1xi1> to vector<12x1xi1>
    %60 = vector.broadcast %59 : vector<12x1xi1> to vector<12x32xi1>
    %61 = vector.shape_cast %40 : vector<1x32xbf16> to vector<1x32xbf16>
    %62 = vector.broadcast %61 : vector<1x32xbf16> to vector<12x32xbf16>
    %63 = arith.select %60, %62, %58 : vector<12x32xi1>, vector<12x32xbf16>
    %64 = tpu.iota {dimensions = array<i32: 2>} : vector<1x1x12xi32>
    %65 = vector.broadcast %0 : i32 to vector<1x1x12xi32>
    %66 = arith.cmpi sle, %64, %65 : vector<1x1x12xi32>
    %67 = vector.shape_cast %36 : vector<1x32xf32> to vector<1x4x8xf32>
    %68 = arith.truncf %67 : vector<1x4x8xf32> to vector<1x4x8xbf16>
    %69 = vector.shape_cast %56 : vector<12x32xbf16> to vector<12x4x8xbf16>
    %70 = vector.shape_cast %63 : vector<12x32xbf16> to vector<12x4x8xbf16>
    "tpu.trace_start"() <{level = 10 : i32, message = "qnd,knd->nqk"}> : () -> ()
    %cst_36 = arith.constant dense<0.000000e+00> : vector<4x1x12xf32>
    %71 = tpu.matmul %68, %69, %cst_36 {dimension_numbers = #tpu.dot_dimension_numbers<[2], [2], [0], [0], [0, 1, 0, 0, 1, 0], [1], [1]>} : vector<1x4x8xbf16>, vector<12x4x8xbf16>, vector<4x1x12xf32> -> vector<4x1x12xf32>
    %cst_37 = arith.constant -1.000000e+30 : f32
    "tpu.trace_stop"() : () -> ()
    %72 = vector.shape_cast %66 : vector<1x1x12xi1> to vector<1x1x12xi1>
    %73 = vector.broadcast %72 : vector<1x1x12xi1> to vector<4x1x12xi1>
    %74 = vector.broadcast %cst_37 : f32 to vector<4x1x12xf32>
    %75 = arith.select %73, %71, %74 : vector<4x1x12xi1>, vector<4x1x12xf32>
    %cst_38 = arith.constant dense<0xFF800000> : vector<4x1xf32>
    %76 = vector.multi_reduction <maximumf>, %75, %cst_38 [2] : vector<4x1x12xf32> to vector<4x1xf32>
    %77 = vector.shape_cast %76 : vector<4x1xf32> to vector<4x1x1xf32>
    %78 = vector.broadcast %77 : vector<4x1x1xf32> to vector<4x1x12xf32>
    %79 = arith.subf %75, %78 : vector<4x1x12xf32>
    %80 = math.exp %79 : vector<4x1x12xf32>
    %cst_39 = arith.constant dense<0.000000e+00> : vector<4x1xf32>
    %81 = vector.multi_reduction <add>, %80, %cst_39 [2] : vector<4x1x12xf32> to vector<4x1xf32>
    %82 = vector.shape_cast %81 : vector<4x1xf32> to vector<4x1x1xf32>
    %83 = tpu.reciprocal %82 {approx = true} : vector<4x1x1xf32> -> vector<4x1x1xf32>
    %84 = vector.broadcast %83 : vector<4x1x1xf32> to vector<4x1x12xf32>
    %85 = arith.mulf %80, %84 : vector<4x1x12xf32>
    %86 = arith.truncf %85 : vector<4x1x12xf32> to vector<4x1x12xbf16>
    "tpu.trace_start"() <{level = 10 : i32, message = "nqk,knd->qnd"}> : () -> ()
    %cst_40 = arith.constant dense<0.000000e+00> : vector<4x8x1xf32>
    %87 = tpu.matmul %70, %86, %cst_40 {dimension_numbers = #tpu.dot_dimension_numbers<[0], [2], [2], [1], [0, 1, 0, 2, 1, 1], [1], [0]>} : vector<12x4x8xbf16>, vector<4x1x12xbf16>, vector<4x8x1xf32> -> vector<4x8x1xf32>
    %88 = tpu.transpose %87, [2, 0, 1] : vector<4x8x1xf32> -> vector<1x4x8xf32>
    "tpu.trace_stop"() : () -> ()
    %89 = vector.shape_cast %88 : vector<1x4x8xf32> to vector<1x32xf32>
    %90 = arith.truncf %89 : vector<1x32xf32> to vector<1x32xbf16>
    %c0_41 = arith.constant 0 : index
    %c0_42 = arith.constant 0 : index
    %c0_43 = arith.constant 0 : index
    %91 = vector.load %arg8[%c0_41, %c0_42, %c0_43] : memref<1x32x32xbf16, #tpu.memory_space<vmem>>, vector<1x32x32xbf16>
    %92 = vector.shape_cast %91 : vector<1x32x32xbf16> to vector<32x32xbf16>
    %cst_44 = arith.constant dense<0.000000e+00> : vector<1x32xf32>
    %93 = tpu.matmul %90, %92, %cst_44 {dimension_numbers = #tpu.dot_dimension_numbers<[1], [0], [0], [1], [0, 0, 1, 1], [], []>} : vector<1x32xbf16>, vector<32x32xbf16>, vector<1x32xf32> -> vector<1x32xf32>
    %c0_45 = arith.constant 0 : index
    %c0_46 = arith.constant 0 : index
    %c0_47 = arith.constant 0 : index
    %94 = vector.load %arg9[%c0_45, %c0_46, %c0_47] : memref<1x1x32xf32, #tpu.memory_space<vmem>>, vector<1x1x32xf32>
    %95 = vector.shape_cast %94 : vector<1x1x32xf32> to vector<1x32xf32>
    %96 = arith.addf %93, %95 : vector<1x32xf32>
    %97 = arith.addf %4, %96 : vector<1x32xf32>
    %c0_48 = arith.constant 0 : index
    %c0_49 = arith.constant 0 : index
    %c0_50 = arith.constant 0 : index
    %98 = vector.load %arg10[%c0_48, %c0_49, %c0_50] : memref<1x1x32xf32, #tpu.memory_space<vmem>>, vector<1x1x32xf32>
    %99 = vector.shape_cast %98 : vector<1x1x32xf32> to vector<1x32xf32>
    %c0_51 = arith.constant 0 : index
    %c0_52 = arith.constant 0 : index
    %c0_53 = arith.constant 0 : index
    %100 = vector.load %arg11[%c0_51, %c0_52, %c0_53] : memref<1x1x32xf32, #tpu.memory_space<vmem>>, vector<1x1x32xf32>
    %101 = vector.shape_cast %100 : vector<1x1x32xf32> to vector<1x32xf32>
    %cst_54 = arith.constant dense<0.000000e+00> : vector<1xf32>
    %102 = vector.multi_reduction <add>, %97, %cst_54 [1] : vector<1x32xf32> to vector<1xf32>
    %103 = vector.shape_cast %102 : vector<1xf32> to vector<1x1xf32>
    %cst_55 = arith.constant 3.200000e+01 : f32
    %104 = vector.broadcast %cst_55 : f32 to vector<1x1xf32>
    %105 = arith.divf %103, %104 : vector<1x1xf32>
    %106 = vector.broadcast %105 : vector<1x1xf32> to vector<1x32xf32>
    %107 = arith.subf %97, %106 : vector<1x32xf32>
    %108 = arith.mulf %107, %107 : vector<1x32xf32>
    %cst_56 = arith.constant dense<0.000000e+00> : vector<1xf32>
    %109 = vector.multi_reduction <add>, %108, %cst_56 [1] : vector<1x32xf32> to vector<1xf32>
    %110 = vector.shape_cast %109 : vector<1xf32> to vector<1x1xf32>
    %cst_57 = arith.constant 3.200000e+01 : f32
    %111 = vector.broadcast %cst_57 : f32 to vector<1x1xf32>
    %112 = arith.divf %110, %111 : vector<1x1xf32>
    %113 = vector.broadcast %105 : vector<1x1xf32> to vector<1x32xf32>
    %114 = arith.subf %97, %113 : vector<1x32xf32>
    %cst_58 = arith.constant 9.99999974E-6 : f32
    %115 = vector.broadcast %cst_58 : f32 to vector<1x1xf32>
    %116 = arith.addf %112, %115 : vector<1x1xf32>
    %117 = math.rsqrt %116 : vector<1x1xf32>
    %118 = vector.broadcast %117 : vector<1x1xf32> to vector<1x32xf32>
    %119 = arith.mulf %114, %118 : vector<1x32xf32>
    %120 = arith.mulf %119, %99 : vector<1x32xf32>
    %121 = arith.addf %120, %101 : vector<1x32xf32>
    %122 = arith.truncf %121 : vector<1x32xf32> to vector<1x32xbf16>
    %c0_59 = arith.constant 0 : index
    %c0_60 = arith.constant 0 : index
    %c0_61 = arith.constant 0 : index
    %123 = vector.load %arg12[%c0_59, %c0_60, %c0_61] : memref<1x32x128xbf16, #tpu.memory_space<vmem>>, vector<1x32x128xbf16>
    %124 = vector.shape_cast %123 : vector<1x32x128xbf16> to vector<32x128xbf16>
    %cst_62 = arith.constant dense<0.000000e+00> : vector<1x128xf32>
    %125 = tpu.matmul %122, %124, %cst_62 {dimension_numbers = #tpu.dot_dimension_numbers<[1], [0], [0], [1], [0, 0, 1, 1], [], []>} : vector<1x32xbf16>, vector<32x128xbf16>, vector<1x128xf32> -> vector<1x128xf32>
    %c0_63 = arith.constant 0 : index
    %c0_64 = arith.constant 0 : index
    %c0_65 = arith.constant 0 : index
    %126 = vector.load %arg13[%c0_63, %c0_64, %c0_65] : memref<1x1x128xf32, #tpu.memory_space<vmem>>, vector<1x1x128xf32>
    %127 = vector.shape_cast %126 : vector<1x1x128xf32> to vector<1x128xf32>
    %128 = arith.addf %125, %127 : vector<1x128xf32>
    %cst_66 = arith.constant 5.000000e-01 : f32
    %129 = vector.broadcast %cst_66 : f32 to vector<1x128xf32>
    %130 = arith.mulf %129, %128 : vector<1x128xf32>
    %cst_67 = arith.constant 4.471500e-02 : f32
    %131 = vector.broadcast %cst_67 : f32 to vector<1x128xf32>
    %132 = arith.mulf %131, %128 : vector<1x128xf32>
    %133 = arith.mulf %132, %128 : vector<1x128xf32>
    %134 = arith.mulf %133, %128 : vector<1x128xf32>
    %135 = arith.addf %128, %134 : vector<1x128xf32>
    %cst_68 = arith.constant 0.797884583 : f32
    %136 = vector.broadcast %cst_68 : f32 to vector<1x128xf32>
    %137 = arith.mulf %136, %135 : vector<1x128xf32>
    %138 = math.tanh %137 : vector<1x128xf32>
    %cst_69 = arith.constant 1.000000e+00 : f32
    %139 = vector.broadcast %cst_69 : f32 to vector<1x128xf32>
    %140 = arith.addf %139, %138 : vector<1x128xf32>
    %141 = arith.mulf %130, %140 : vector<1x128xf32>
    %142 = arith.truncf %141 : vector<1x128xf32> to vector<1x128xbf16>
    %c0_70 = arith.constant 0 : index
    %c0_71 = arith.constant 0 : index
    %c0_72 = arith.constant 0 : index
    %143 = vector.load %arg14[%c0_70, %c0_71, %c0_72] : memref<1x128x32xbf16, #tpu.memory_space<vmem>>, vector<1x128x32xbf16>
    %144 = vector.shape_cast %143 : vector<1x128x32xbf16> to vector<128x32xbf16>
    %cst_73 = arith.constant dense<0.000000e+00> : vector<1x32xf32>
    %145 = tpu.matmul %142, %144, %cst_73 {dimension_numbers = #tpu.dot_dimension_numbers<[1], [0], [0], [1], [0, 0, 1, 1], [], []>} : vector<1x128xbf16>, vector<128x32xbf16>, vector<1x32xf32> -> vector<1x32xf32>
    %c0_74 = arith.constant 0 : index
    %c0_75 = arith.constant 0 : index
    %c0_76 = arith.constant 0 : index
    %146 = vector.load %arg15[%c0_74, %c0_75, %c0_76] : memref<1x1x32xf32, #tpu.memory_space<vmem>>, vector<1x1x32xf32>
    %147 = vector.shape_cast %146 : vector<1x1x32xf32> to vector<1x32xf32>
    %148 = arith.addf %145, %147 : vector<1x32xf32>
    %149 = arith.addf %97, %148 : vector<1x32xf32>
    %c0_77 = arith.constant 0 : index
    %c0_78 = arith.constant 0 : index
    %150 = vector.load %arg21[%c0_77, %c0_78] : memref<1x32xf32, #tpu.memory_space<vmem>>, vector<1x32xf32>
    tpu.vector_store %arg21[%c0_77, %c0_78], %149 {strides = array<i32>} : memref<1x32xf32, #tpu.memory_space<vmem>>, vector<1x32xf32>,
    %c1_i32 = arith.constant 1 : i32
    %151 = arith.cmpi eq, %arg1, %c1_i32 : i32
    %152 = arith.extui %151 : i1 to i32
    %c0_i32_79 = arith.constant 0 : i32
    %153 = arith.cmpi ne, %152, %c0_i32_79 : i32
    scf.if %153 {
      %c0_80 = arith.constant 0 : index
      %c0_81 = arith.constant 0 : index
      %c0_82 = arith.constant 0 : index
      %154 = vector.load %arg18[%c0_80, %c0_81, %c0_82] : memref<1x1x32xf32, #tpu.memory_space<vmem>>, vector<1x1x32xf32>
      %155 = vector.shape_cast %154 : vector<1x1x32xf32> to vector<1x32xf32>
      %156 = vector.shape_cast %149 : vector<1x32xf32> to vector<1x1x32xf32>
      tpu.vector_store %arg18[%c0_80, %c0_81, %c0_82], %156 {strides = array<i32>} : memref<1x1x32xf32, #tpu.memory_space<vmem>>, vector<1x1x32xf32>,
    } else {
    }
    return
  }
  func.func @transform_0(%arg0: i32, %arg1: i32) -> i32 {
    %c0_i32 = arith.constant 0 : i32
    %c0_i32_0 = arith.constant 0 : i32
    return %c0_i32 : i32
  }
  func.func @transform_1(%arg0: i32, %arg1: i32) -> (i32, i32, i32) {
    %c0_i32 = arith.constant 0 : i32
    %c0_i32_0 = arith.constant 0 : i32
    %c0_i32_1 = arith.constant 0 : i32
    return %arg0, %c0_i32, %c0_i32_0 : i32, i32, i32
  }
  func.func @transform_2(%arg0: i32, %arg1: i32) -> (i32, i32, i32) {
    %c0_i32 = arith.constant 0 : i32
    %c0_i32_0 = arith.constant 0 : i32
    %c0_i32_1 = arith.constant 0 : i32
    return %arg1, %c0_i32, %c0_i32_0 : i32, i32, i32
  }
  func.func @transform_3(%arg0: i32, %arg1: i32) -> (i32, i32, i32) {
    %c0_i32 = arith.constant 0 : i32
    %c0_i32_0 = arith.constant 0 : i32
    %c0_i32_1 = arith.constant 0 : i32
    return %arg1, %c0_i32, %c0_i32_0 : i32, i32, i32
  }
  func.func @transform_4(%arg0: i32, %arg1: i32) -> (i32, i32, i32) {
    %c0_i32 = arith.constant 0 : i32
    %c0_i32_0 = arith.constant 0 : i32
    %c0_i32_1 = arith.constant 0 : i32
    return %arg1, %c0_i32, %c0_i32_0 : i32, i32, i32
  }
  func.func @transform_5(%arg0: i32, %arg1: i32) -> (i32, i32, i32) {
    %c0_i32 = arith.constant 0 : i32
    %c0_i32_0 = arith.constant 0 : i32
    %c0_i32_1 = arith.constant 0 : i32
    return %arg1, %c0_i32, %c0_i32_0 : i32, i32, i32
  }
  func.func @transform_6(%arg0: i32, %arg1: i32) -> (i32, i32, i32) {
    %c0_i32 = arith.constant 0 : i32
    %c0_i32_0 = arith.constant 0 : i32
    %c0_i32_1 = arith.constant 0 : i32
    return %arg1, %c0_i32, %c0_i32_0 : i32, i32, i32
  }
  func.func @transform_7(%arg0: i32, %arg1: i32) -> (i32, i32, i32) {
    %c0_i32 = arith.constant 0 : i32
    %c0_i32_0 = arith.constant 0 : i32
    %c0_i32_1 = arith.constant 0 : i32
    return %arg1, %c0_i32, %c0_i32_0 : i32, i32, i32
  }
  func.func @transform_8(%arg0: i32, %arg1: i32) -> (i32, i32, i32) {
    %c0_i32 = arith.constant 0 : i32
    %c0_i32_0 = arith.constant 0 : i32
    %c0_i32_1 = arith.constant 0 : i32
    return %arg1, %c0_i32, %c0_i32_0 : i32, i32, i32
  }
  func.func @transform_9(%arg0: i32, %arg1: i32) -> (i32, i32, i32) {
    %c0_i32 = arith.constant 0 : i32
    %c0_i32_0 = arith.constant 0 : i32
    %c0_i32_1 = arith.constant 0 : i32
    return %arg1, %c0_i32, %c0_i32_0 : i32, i32, i32
  }
  func.func @transform_10(%arg0: i32, %arg1: i32) -> (i32, i32, i32) {
    %c0_i32 = arith.constant 0 : i32
    %c0_i32_0 = arith.constant 0 : i32
    %c0_i32_1 = arith.constant 0 : i32
    return %arg1, %c0_i32, %c0_i32_0 : i32, i32, i32
  }
  func.func @transform_11(%arg0: i32, %arg1: i32) -> (i32, i32, i32) {
    %c0_i32 = arith.constant 0 : i32
    %c0_i32_0 = arith.constant 0 : i32
    %c0_i32_1 = arith.constant 0 : i32
    return %arg1, %c0_i32, %c0_i32_0 : i32, i32, i32
  }
  func.func @transform_12(%arg0: i32, %arg1: i32) -> (i32, i32, i32) {
    %c0_i32 = arith.constant 0 : i32
    %c0_i32_0 = arith.constant 0 : i32
    %c0_i32_1 = arith.constant 0 : i32
    return %arg1, %c0_i32, %c0_i32_0 : i32, i32, i32
  }
  func.func @transform_13(%arg0: i32, %arg1: i32) -> (i32, i32, i32) {
    %c0_i32 = arith.constant 0 : i32
    %c0_i32_0 = arith.constant 0 : i32
    %c0_i32_1 = arith.constant 0 : i32
    return %arg1, %c0_i32, %c0_i32_0 : i32, i32, i32
  }
  func.func @transform_14(%arg0: i32, %arg1: i32) -> (i32, i32, i32, i32) {
    %c0_i32 = arith.constant 0 : i32
    %c0_i32_0 = arith.constant 0 : i32
    %c0_i32_1 = arith.constant 0 : i32
    return %arg1, %arg0, %c0_i32, %c0_i32_0 : i32, i32, i32, i32
  }
  func.func @transform_15(%arg0: i32, %arg1: i32) -> (i32, i32, i32, i32) {
    %c0_i32 = arith.constant 0 : i32
    %c0_i32_0 = arith.constant 0 : i32
    %c0_i32_1 = arith.constant 0 : i32
    return %arg1, %arg0, %c0_i32, %c0_i32_0 : i32, i32, i32, i32
  }
  func.func @transform_16(%arg0: i32, %arg1: i32) -> (i32, i32, i32) {
    %c0_i32 = arith.constant 0 : i32
    %c0_i32_0 = arith.constant 0 : i32
    %c0_i32_1 = arith.constant 0 : i32
    return %arg0, %c0_i32, %c0_i32_0 : i32, i32, i32
  }
  func.func @transform_17(%arg0: i32, %arg1: i32) -> (i32, i32, i32, i32) {
    %c0_i32 = arith.constant 0 : i32
    %c0_i32_0 = arith.constant 0 : i32
    %c0_i32_1 = arith.constant 0 : i32
    return %arg1, %arg0, %c0_i32, %c0_i32_0 : i32, i32, i32, i32
  }
  func.func @transform_18(%arg0: i32, %arg1: i32) -> (i32, i32, i32, i32) {
    %c0_i32 = arith.constant 0 : i32
    %c0_i32_0 = arith.constant 0 : i32
    %c0_i32_1 = arith.constant 0 : i32
    return %arg1, %arg0, %c0_i32, %c0_i32_0 : i32, i32, i32, i32
  }
}

</mosaic_0001>

<bundles_post_ra>
// kernel: generate.3
= control target key start
LH: loop header
LB: loop body
LE: loop exit
PB: predicated region body
PF: predicated region fallthrough
CT: control target
= control target key end

     0   :  { %s489_s15 = smov 0   ;;  %s491_s16 = smov 0   ;;  %s538_s0 = inlined_call_operand.vmem [shape: f32[2,1,32], index: 0, kind: input, shape index: {}]   ;;  %s539_s1 = inlined_call_operand.vmem [shape: f32[1,32], index: 1, kind: input, shape index: {}]   ;;  %s540_s2 = inlined_call_operand.vmem [shape: f32[1,32], index: 2, kind: input, shape index: {}]   ;;  %s541_s3 = inlined_call_operand.vmem [shape: bf16[32,128], index: 3, kind: input, shape index: {}]   ;;  %s542_s4 = inlined_call_operand.vmem [shape: f32[2,1,128], index: 4, kind: output, shape index: {}]  }
   0x1   :  { %s493_s17 = smov 0  }
   0x2 LB: > { %s26_s18 = sadd.s32 1, %s456_s16  ;;  %p391_p0 = scmp.ge.s32.totalorder %s460_s17, 1  ;;  %s460_s17 = sphi %s493_s17, %s14_s17   ;;  %s456_s16 = sphi %s491_s16, %s544_s16   ;;  %s452_s15 = sphi %s489_s15, %s543_s15  }
   0x3   : > { %p28_p1 = scmp.ge.s32.totalorder %s26_s18, 2  ;;  %p183_p2 = scmp.lt.s32.totalorder %s460_s17, 3 }
   0x5   : > { %s546_s18 = smov (%p28_p1, %s26_s18), 0  ;;  %p184_p3 = pnand %p391_p0, %p183_p2 }
   0x6   : > { %p212_p4 = scmp.lt.s32.totalorder (!%p184_p3), %s452_s15, 1  ;;  %vm229_vm0 = vcmask (!%p184_p3), 253952   ;;  %v434_v7 = vld [vmem:[%s541_s3] sm:$0xff] (!%p184_p3)   ;;  %v462_v8 = vmov (!%p184_p3), 0.0   ;;  %v435_v9 = vld [vmem:[%s541_s3 + $0x8] sm:$0xff] (!%p184_p3)   ;;  %vm463_vm1 = vmmov (!%p184_p3), 0  }
   0x7   : > { %187 = sbr.rel (%p184_p3) target bundleno = 547 (0x223), region = 36  ;;  %400 = vmatprep.subr.bf16.mxu0 (!%p184_p3), %v462_v8  ;;  %404 = vmatprep.mubr.msk.bf16.mxu0 (!%p184_p3), %vm463_vm1, %v462_v8  ;;  %v227_v14 = vld [vmem:[%s539_s1] sm:$0x1] (!%p184_p3)  ;;  %vm263_vm2 = vcmask (!%p184_p3), 261120  }
   0x8   : > { %401 = vmatpush3.bf16.msra.mxu0 (!%p184_p3), %v434_v7  ;;  %v228_v16 = vld [vmem:[%s540_s2] sm:$0x1] (!%p184_p3) }
   0x9   : > { %402 = vmatprep.subr.bf16.mxu0 (!%p184_p3), %v462_v8 }
   0xc   : > { %403 = vmatpush3.bf16.msra.mxu0 (!%p184_p3), %v435_v9 }
   0xe   : > { %s548_s15 = smov (!%p212_p4, %s452_s15), 1 }
   0xf   : > { %s214_s21 = scalar_lea.vmem %s538_s0, %s548_s15  ;;  %s224_s6 = scalar_lea.vmem %s542_s4, %s548_s15 }
  0x10   : > { %v226_v0 = vld [vmem:[%s214_s21] sm:$0x1] }
  0x11   : > { %v230_v1 = vsel %vm229_vm0, %v226_v0, 0.0 }
  0x12   : > { %231 = vadd.xlane.f32.xlu0 %v230_v1 }
  0x9f   : > { %v232_v2 = vpop.xlane.xlu0 %231 }
  0xa0   : > { %v234_v3 = vmul.f32 0.03125, %v232_v2 }
  0xa2   : > { %v235_v4 = vsub.f32 %v226_v0, %v234_v3 }
  0xa4   : > { %v236_v5 = vmul.f32 %v235_v4, %v235_v4 }
  0xa6   : > { %v237_v6 = vsel %vm229_vm0, %v236_v5, 0.0 }
  0xa7   : > { %238 = vadd.xlane.f32.xlu0 %v237_v6 }
 0x134   : > { %v239_v10 = vpop.xlane.xlu0 %238 }
 0x135   : > { %v240_v11 = vmul.f32 0.03125, %v239_v10 }
 0x137   : > { %v241_v12 = vadd.f32 1e-05, %v240_v11 }
 0x139   : > { %436 = vrsqrt.f32 %v241_v12 }
 0x143   : > { %v437_v13 = vpop.eup %436 }
 0x144   : > { %v243_v15 = vmul.f32 %v437_v13, %v235_v4 }
 0x146   : > { %v244_v17 = vmul.f32 %v243_v15, %v227_v14 }
 0x148   : > { %v245_v18 = vadd.f32 %v244_v17, %v228_v16 }
 0x14a   : > { %v246_v19 = vpack.c.bf16 %v245_v18, %v245_v18 }
 0x14c   : > { %405 = vmatmul.mubr.msk.bf16.vlgmr.msra.gmra.mrb[0].mxu0 %vm263_vm2, %v246_v19 }
 0x21f   : > { %v301_v20 = vpop.f32.mrb[0].mxu0 }
 0x220   : > { %307 = vst [vmem:[%s224_s6] sm:$0x1] %v301_v20  ;;  %v406_v21 = vpop.f32.mrb[1].mxu0 }
 0x221   : > { %v304_v22 = vpop.f32.mrb[2].mxu0 }
 0x222   : > { %v407_v23 = vpop.f32.mrb[3].mxu0 }
 0x223 PF: > { %s14_s17 = sadd.s32 1, %s460_s17   ;;  %s543_s15 = smov %s456_s16 }
 0x224   : > { %p11_p5 = scmp.ge.s32.totalorder %s14_s17, 4   ;;  %s544_s16 = smov %s546_s18 }
 0x226   :  { %13 = sbr.rel (!%p11_p5) target bundleno = 2 (0x2), region = 69 }

// kernel: generate.2
= control target key start
LH: loop header
LB: loop body
LE: loop exit
PB: predicated region body
PF: predicated region fallthrough
CT: control target
= control target key end

     0   :  { %s3704_s18 = smov 0   ;;  %s3706_s19 = smov 0   ;;  %s4157_s0 = inlined_call_operand.vmem [shape: f32[2,8,32], index: 0, kind: input, shape index: {}]   ;;  %s4158_s1 = inlined_call_operand.vmem [shape: f32[2,1,32], index: 1, kind: input, shape index: {}]   ;;  %s4159_s2 = inlined_call_operand.vmem [shape: f32[2,1,32], index: 2, kind: input, shape index: {}]   ;;  %s4160_s3 = inlined_call_operand.vmem [shape: bf16[2,32,96], index: 3, kind: input, shape index: {}]   ;;  %s4161_s4 = inlined_call_operand.vmem [shape: f32[2,1,96], index: 4, kind: input, shape index: {}]   ;;  %s4162_s5 = inlined_call_operand.vmem [shape: bf16[2,32,32], index: 5, kind: input, shape index: {}]   ;;  %s4163_s6 = inlined_call_operand.vmem [shape: f32[2,1,32], index: 6, kind: input, shape index: {}]   ;;  %s4164_s7 = inlined_call_operand.vmem [shape: f32[2,1,32], index: 7, kind: input, shape index: {}]   ;;  %s4165_s8 = inlined_call_operand.vmem [shape: f32[2,1,32], index: 8, kind: input, shape index: {}]   ;;  %s4166_s9 = inlined_call_operand.vmem [shape: bf16[2,32,128], index: 9, kind: input, shape index: {}]   ;;  %s4167_s10 = inlined_call_operand.vmem [shape: f32[2,1,128], index: 10, kind: input, shape index: {}]   ;;  %s4168_s11 = inlined_call_operand.vmem [shape: bf16[2,128,32], index: 11, kind: input, shape index: {}]   ;;  %s4169_s12 = inlined_call_operand.vmem [shape: f32[2,1,32], index: 12, kind: input, shape index: {}]   ;;  %s4170_s13 = inlined_call_operand.vmem [shape: f32[2,1,32], index: 13, kind: output, shape index: {0}]   ;;  %s4171_s14 = inlined_call_operand.vmem [shape: bf16[2,2,8,32], index: 14, kind: output, shape index: {1}]   ;;  %s4172_s15 = inlined_call_operand.vmem [shape: bf16[2,2,8,32], index: 15, kind: output, shape index: {2}]  }
   0x1   :  { %4177 = sst [smem:[#allocation9_spill]] %s4157_s0  ;;  %s3708_s20 = smov 0  }
   0x2   :  { %4178 = sst [smem:[#allocation10_spill]] %s4160_s3  ;;  %s3710_s21 = smov 0  }
   0x3   :  { %4179 = sst [smem:[#allocation11_spill]] %s4162_s5  ;;  %s3712_s22 = smov 0  }
   0x4   :  { %4180 = sst [smem:[#allocation12_spill]] %s4164_s7 }
   0x5   :  { %4181 = sst [smem:[#allocation13_spill]] %s4166_s9 }
   0x6   :  { %4182 = sst [smem:[#allocation14_spill]] %s4167_s10 }
   0x7   :  { %4183 = sst [smem:[#allocation15_spill]] %s4168_s11 }
   0x8   :  { %4184 = sst [smem:[#allocation16_spill]] %s4170_s13 }
   0x9   :  { %4185 = sst [smem:[#allocation17_spill]] %s4171_s14 }
   0xa   :  { %4186 = sst [smem:[#allocation18_spill]] %s4172_s15 }
   0xb LB: > { %4187 = sst [smem:[#allocation3_spill]] %s3593_s18  ;;  %s35_s23 = sadd.s32 1, %s3601_s20  ;;  %s3609_s22 = sphi %s3712_s22, %s26_s22   ;;  %s3605_s21 = sphi %s3710_s21, %s4220_s21   ;;  %s3601_s20 = sphi %s3708_s20, %s4219_s20   ;;  %s3597_s19 = sphi %s3706_s19, %s4218_s19   ;;  %s3593_s18 = sphi %s3704_s18, %s4217_s18  }
   0xc   : > { %4188 = sst [smem:[#allocation4_spill]] %s3601_s20  ;;  %s38_s24 = sadd.s32 1, %s3605_s21 }
   0xd   : > { %4189 = sst [smem:[#allocation5_spill]] %s3605_s21  ;;  %p36_p0 = scmp.ge.s32.totalorder %s35_s23, 2 }
   0xe   : > { %4190 = sst [smem:[#allocation6_spill]] %s3609_s22  ;;  %p3292_p1 = scmp.ge.s32.totalorder %s3609_s22, 1 }
   0xf   : > { %p561_p2 = scmp.lt.s32.totalorder %s3609_s22, 5  ;;  %s4222_s23 = smov (%p36_p0, %s35_s23), 0 }
  0x10   : > { %4191 = sst [smem:[#allocation7_spill]] %s4222_s23  ;;  %s4224_s24 = smov (!%p36_p0, %s38_s24), %s3605_s21 }
  0x11   : > { %p562_p3 = pnand %p3292_p1, %p561_p2  ;;  %p40_p4 = scmp.ge.s32.totalorder %s4224_s24, 2 }
  0x12   : > { %p666_p5 = scmp.lt.s32.totalorder (!%p562_p3), %s3597_s19, 1  ;;  %p670_p6 = scmp.lt.s32.totalorder (!%p562_p3), %s3593_s18, 1 }
  0x13   : > { %s4226_s24 = smov (%p40_p4, %s4224_s24), 0  ;;  %565 = sbr.rel (%p562_p3) target bundleno = 3354 (0xd1a), region = 72 }
  0x14   : > { %4192 = sst [smem:[#allocation8_spill]] %s4226_s24  ;;  %s4194_s0 = sld [smem:[#allocation9_spill]] (!%p562_p3) }
  0x15   : > { %s4195_s3 = sld [smem:[#allocation10_spill]] (!%p562_p3)  ;;  %s4196_s5 = sld [smem:[#allocation11_spill]] (!%p562_p3) }
  0x16   : > { %s4198_s9 = sld [smem:[#allocation13_spill]] (!%p562_p3)  ;;  %s4201_s29 = sld [smem:[#allocation17_spill]] (!%p562_p3) }
  0x17   : > { %s4202_s30 = sld [smem:[#allocation18_spill]] (!%p562_p3)  ;;  %s4203_s21 = sld [smem:[#allocation3_spill]] (!%p562_p3) }
  0x1a   : > { %s4228_s19 = smov (!%p666_p5, %s3597_s19), 1 }
  0x1b   : > { %s3740_s25 = scalar_select %p670_p6, %s3593_s18, 1 }
  0x1c   : > { %s3293_s26 = sshll.u32 %s4228_s19, 3 }
  0x1d   : > { %s669_s17 = scalar_lea.vmem %s4194_s0, %s3293_s26  ;;  %s3350_s15 = sshll.u32 %s3740_s25, 4 }
  0x1e   : > { %s3762_s27 = scalar_lea.vmem %s4195_s3, %s3350_s15  ;;  %s3771_s23 = scalar_lea.vmem %s4196_s5, %s3350_s15 }
  0x1f   : > { %s3788_s28 = scalar_lea.vmem %s4198_s9, %s3350_s15  ;;  %s3353_s5 = sshll.u32 %s3740_s25, 6 }
  0x20   : > { %s713_s20 = scalar_lea.vmem %s4169_s12, %s3740_s25  ;;  %s4200_s0 = sld [smem:[#allocation15_spill]] }
  0x21   : > { %s3302_s11 = sshll.u32 %s3740_s25, 1  ;;  %p3306_p7 = scmp.ne.s32.totalorder %s4203_s21, 0 }
  0x22   : > { %s722_s14 = sadd.s32 %s3302_s11, %s4228_s19  ;;  %v738_v0 = vld [vmem:[%s669_s17] sm:$0xff] (!%p3306_p7)  ;;  %vm739_vm0 = vcmask (!%p3306_p7), 261120  }
  0x23   : > { %s3303_s3 = sshll.u32 %s722_s14, 2  ;;  %737 = sbr.rel (%p3306_p7) target bundleno = 42 (0x2a), region = 76  ;;  %740 = vst.msk [vmem:[#allocation2] sm:$0xff] (!%p3306_p7), %vm739_vm0, %v738_v0 }
  0x24   : > { %s3809_s9 = scalar_lea.vmem %s4201_s29, %s3303_s3  ;;  %s3814_s10 = scalar_lea.vmem %s4202_s30, %s3303_s3 }
  0x26   : > { %s3802_s7 = scalar_lea.vmem %s4200_s0, %s3353_s5 }
  0x2a PF: > { %v741_v1 = vld [vmem:[#allocation2] sm:$0xff]  ;;  %vm744_vm1 = vcmask 261120   ;;  %v3611_v9 = vmov 0.0   ;;  %vm3612_vm2 = vmmov 0   ;;  %v3535_v10 = vld [vmem:[%s3762_s27 + $0x8] sm:$0xff]   ;;  %s4204_s5 = scalar_lea.vmem %s4158_s1, %s3740_s25  ;;  %s4205_s30 = scalar_lea.vmem %s4159_s2, %s3740_s25  ;;  %v853_v31 = vlaneseq }
  0x2b   : > { %v745_v2 = vsel %vm744_vm1, %v741_v1, 0.0  ;;  %v3534_v8 = vld [vmem:[%s3762_s27] sm:$0xff]   ;;  %3389 = vmatprep.subr.bf16.mxu1 %v3611_v9  ;;  %3393 = vmatprep.mubr.msk.bf16.mxu1 %vm3612_vm2, %v3611_v9  ;;  %s4206_s22 = scalar_lea.vmem %s4161_s4, %s3740_s25  ;;  %s3613_s11 = smov 104   ;;  %v3617_v32 = vmov 1983009808   ;;  %vm1604_vm3 = vcmask 1043456  }
  0x2c   : > { %746 = vadd.xlane.f32.xlu0 %v745_v2  ;;  %3390 = vmatpush3.bf16.msra.mxu1 %v3534_v8  ;;  %v3307_v15 = vld [vmem:[%s4204_s5] ss:$0 sm:$0xff]  ;;  %s3614_s14 = smov 120   ;;  %s3615_s13 = smov 112   ;;  %v871_v33 = vunpack.c.l.s4 %v3617_v32  ;;  %v3867_v35 = vshrl.u32 %v853_v31, 7  ;;  %vm1600_vm4 = vcmask 64512  }
  0x2d   : > { %3409 = vmatprep.subr.bf16.mxu0 %v3611_v9  ;;  %3391 = vmatprep.subr.bf16.mxu1 %v3611_v9  ;;  %v3308_v17 = vld [vmem:[%s4205_s30] ss:$0 sm:$0xff]  ;;  %s3616_s15 = smov 96   ;;  %v3618_v38 = vmov 1934713408   ;;  %s3620_s29 = smov 64  }
  0x2e   : > { %3411 = vmatprep.mubr.msk.bf16.mxu0 %vm3612_vm2, %v3611_v9  ;;  %v3309_v21 = vld [vmem:[%s4206_s22] ss:$0 sm:$0xff]  ;;  %v872_v36 = vunpack.c.0.s8 %v871_v33  ;;  %v903_v39 = vunpack.c.l.s4 %v3618_v38  ;;  %s3622_s26 = smov 8   ;;  %s3623_s16 = smov 24   ;;  %vm2719_vm6 = vcmask 130048   ;;  %vm2721_vm7 = vcmask 195584  }
  0x2f   : > { %s4207_s3 = scalar_lea.vmem %s4163_s6, %s3740_s25  ;;  %vm847_vm8 = vcmask 257024   ;;  %s4208_s5 = sld [smem:[#allocation12_spill]] }
  0x30   : > { %3392 = vmatpush3.bf16.msra.mxu1 %v3535_v10  ;;  %v3870_v41 = vsub.s32 %v872_v36, %v3867_v35  ;;  %v904_v43 = vunpack.c.0.s8 %v903_v39  ;;  %s4210_s24 = scalar_lea.vmem %s4165_s8, %s3740_s25  ;;  %s4211_s22 = sld [smem:[#allocation14_spill]] }
  0x31   : > { %3397 = vmatprep.subr.bf16.mxu1 %v3611_v9 }
  0x32   : > { %v3876_v50 = vsub.s32 %v904_v43, %v3867_v35 }
  0x35   : > { %s4209_s17 = scalar_lea.vmem %s4208_s5, %s3740_s25 }
  0xb9   : > { %v747_v3 = vpop.xlane.xlu0 %746 }
  0xba   : > { %v749_v4 = vmul.f32 0.03125, %v747_v3 }
  0xbc   : > { %v750_v5 = vsub.f32 %v741_v1, %v749_v4 }
  0xbe   : > { %v751_v6 = vmul.f32 %v750_v5, %v750_v5 }
  0xc0   : > { %v752_v7 = vsel %vm744_vm1, %v751_v6, 0.0 }
  0xc1   : > { %753 = vadd.xlane.f32.xlu0 %v752_v7 }
 0x14e   : > { %v754_v11 = vpop.xlane.xlu0 %753 }
 0x14f   : > { %v755_v12 = vmul.f32 0.03125, %v754_v11 }
 0x151   : > { %v756_v13 = vadd.f32 1e-05, %v755_v12 }
 0x153   : > { %3548 = vrsqrt.f32 %v756_v13 }
 0x15d   : > { %v3549_v14 = vpop.eup %3548 }
 0x15e   : > { %v758_v16 = vmul.f32 %v3549_v14, %v750_v5 }
 0x160   : > { %v765_v18 = vmul.f32 %v3307_v15, %v758_v16 }
 0x162   : > { %v772_v19 = vadd.f32 %v3308_v17, %v765_v18 }
 0x164   : > { %v773_v20 = vpack.c.bf16 %v772_v19, %v772_v19 }
 0x166   : > { %3394 = vmatmul.mubr.msk.bf16.vlgmr.msra.gmra.mrb[0].mxu1 %vm744_vm1, %v773_v20 }
 0x167   : > { %3399 = vmatprep.mubr.msk.bf16.mxu1 %vm3612_vm2, %v3611_v9 }
 0x239   : > { %v834_v22 = vpop.f32.mrb[0].mxu1 }
 0x23a   : > { %v3847_v23 = vadd.f32 %v3309_v21, %v834_v22  ;;  %v3395_v24 = vpop.f32.mrb[1].mxu1 }
 0x23b   : > { %v837_v25 = vpop.f32.mrb[2].mxu1 }
 0x23c   : > { %865 = vrot.lane.b32.xlu0 %v3847_v23, %s3613_s11  ;;  %859 = vrot.lane.b32.xlu1 %v3847_v23, %s3614_s14  ;;  %v3396_v26 = vpop.f32.mrb[3].mxu1  ;;  %s4212_s11 = scalar_lea.vmem %s4211_s22, %s3740_s25 }
 0x240   : > { %862 = vrot.lane.b32.xlu1 %v3847_v23, %s3615_s13  ;;  %s4213_s13 = sld [smem:[#allocation3_spill]] }
 0x244   : > { %944 = vrot.lane.b32.xlu1 %v3847_v23, %s3616_s15 }
 0x246   : > { %p3347_p8 = scmp.ne.s32.totalorder %s4213_s13, 1 }
 0x247   : > { %vm3014_vm9 = vcmask (!%p3347_p8), 261127  }
 0x2ae   : > { %v3854_v27 = vpop.permute.xlu1 %859  ;;  %v3862_v29 = vpop.permute.xlu0 %865 }
 0x2af   : > { %946 = vrot.lane.b32.xlu1 %v3854_v27, %s3616_s15 }
 0x2b2   : > { %v3858_v28 = vpop.permute.xlu1 %862 }
 0x2b3   : > { %948 = vrot.lane.b32.xlu1 %v3858_v28, %s3616_s15 }
 0x2b6   : > { %v945_v30 = vpop.permute.xlu1 %944 }
 0x2b7   : > { %950 = vrot.lane.b32.xlu1 %v3862_v29, %s3616_s15 }
 0x321   : > { %v947_v34 = vpop.permute.xlu1 %946 }
 0x325   : > { %v949_v37 = vpop.permute.xlu1 %948 }
 0x326   : > { %v956_v40 = vcombine.low %v945_v30, %v949_v37  ;;  %v957_v44 = vcombine.high %v945_v30, %v949_v37 }
 0x328   : > { %v964_v47 = vrot.slane %v956_v40, %v3870_v41  ;;  %v971_v51 = vrot.slane %v957_v44, %v3870_v41 }
 0x329   : > { %v951_v42 = vpop.permute.xlu1 %950 }
 0x32a   : > { %v972_v45 = vcombine.low %v947_v34, %v951_v42  ;;  %v973_v46 = vcombine.high %v947_v34, %v951_v42 }
 0x32c   : > { %v980_v48 = vrot.slane %v972_v45, %v3870_v41  ;;  %v987_v49 = vrot.slane %v973_v46, %v3870_v41  ;;  %v3619_v45 = vmov 0  }
 0x32e   : > { %v988_v52 = vcombine.low %v964_v47, %v980_v48  ;;  %v989_v53 = vcombine.high %v964_v47, %v980_v48  ;;  %v1004_v56 = vcombine.low %v971_v51, %v987_v49  ;;  %v1005_v62 = vcombine.high %v971_v51, %v987_v49 }
 0x330   : > { %v996_v54 = vrot.slane %v988_v52, %v3876_v50  ;;  %v1003_v55 = vrot.slane %v989_v53, %v3876_v50  ;;  %v1012_v61 = vrot.slane %v1004_v56, %v3876_v50  ;;  %v1019_v2 = vrot.slane %v1005_v62, %v3876_v50 }
 0x331   : > { %v868_v62 = vcombine.low %v3847_v23, %v3858_v28 }
 0x332   : > { %v1024_v57 = vpack.c.bf16 %v996_v54, %v996_v54  ;;  %v1020_v58 = vcombine.high %v996_v54, %v3611_v9  ;;  %v1021_v60 = vcombine.high %v1003_v55, %v3611_v9  ;;  %v1026_v63 = vpack.c.bf16 %v1003_v55, %v1003_v55 }
 0x333   : > { %v1022_v1 = vcombine.high %v1012_v61, %v3611_v9  ;;  %v1028_v3 = vpack.c.bf16 %v1012_v61, %v1012_v61  ;;  %v1023_v5 = vcombine.high %v1019_v2, %v3611_v9  ;;  %v1030_v6 = vpack.c.bf16 %v1019_v2, %v1019_v2 }
 0x334   : > { %1182 = vxpose.xlu1.c.b16.start.end [1/1] (short) (narrow) %v1024_v57, 16  ;;  %v1025_v59 = vpack.c.bf16 %v1020_v58, %v1020_v58  ;;  %v1027_v0 = vpack.c.bf16 %v1021_v60, %v1021_v60  ;;  %v876_v2 = vrot.slane %v868_v62, %v3870_v41 }
 0x335   : > { %v1029_v4 = vpack.c.bf16 %v1022_v1, %v1022_v1  ;;  %v1031_v7 = vpack.c.bf16 %v1023_v5, %v1023_v5  ;;  %v885_v1 = vcombine.high %v3854_v27, %v3862_v29 }
 0x336   : > { %1198 = vxpose.xlu0.c.b16.start.end [1/1] (short) (narrow) %v1025_v59, 16 }
 0x337   : > { %v899_v5 = vrot.slane %v885_v1, %v3870_v41 }
 0x338   : > { %1214 = vxpose.xlu1.c.b16.start.end [1/1] (short) (narrow) %v1026_v63, 16  ;;  %v869_v63 = vcombine.high %v3847_v23, %v3858_v28 }
 0x33a   : > { %1230 = vxpose.xlu0.c.b16.start.end [1/1] (short) (narrow) %v1027_v0, 16  ;;  %v884_v0 = vcombine.low %v3854_v27, %v3862_v29 }
 0x33c   : > { %1246 = vxpose.xlu1.c.b16.start.end [1/1] (short) (narrow) %v1028_v3, 16  ;;  %v883_v3 = vrot.slane %v869_v63, %v3870_v41 }
 0x33e   : > { %1262 = vxpose.xlu0.c.b16.start.end [1/1] (short) (narrow) %v1029_v4, 16  ;;  %v892_v4 = vrot.slane %v884_v0, %v3870_v41 }
 0x340   : > { %1278 = vxpose.xlu1.c.b16.start.end [1/1] (short) (narrow) %v1030_v6, 16  ;;  %v900_v6 = vcombine.low %v876_v2, %v892_v4 }
 0x342   : > { %1294 = vxpose.xlu0.c.b16.start.end [1/1] (short) (narrow) %v1031_v7, 16  ;;  %v901_v7 = vcombine.high %v876_v2, %v892_v4 }
 0x39a   : > { %v1190_v8 = vpop.trf.xlu1 }
 0x39c   : > { %v1206_v10 = vpop.trf.xlu0 }
 0x39e   : > { %v1222_v11 = vpop.trf.xlu1 }
 0x3a0   : > { %v1238_v12 = vpop.trf.xlu0 }
 0x3a2   : > { %v1254_v13 = vpop.trf.xlu1 }
 0x3a3   : > { %v1310_v15 = vcombine.low %v1190_v8, %v1254_v13  ;;  %v916_v8 = vcombine.low %v883_v3, %v899_v5 }
 0x3a4   : > { %v1270_v14 = vpop.trf.xlu0 }
 0x3a5   : > { %v1344_v17 = vcombine.low %v1206_v10, %v1270_v14  ;;  %v1317_v20 = vrot.slane %v1310_v15, %v3870_v41  ;;  %v917_v10 = vcombine.high %v883_v3, %v899_v5  ;;  %v924_v13 = vrot.slane %v916_v8, %v3876_v50 }
 0x3a6   : > { %v1286_v16 = vpop.trf.xlu1 }
 0x3a7   : > { %v1318_v18 = vcombine.low %v1222_v11, %v1286_v16  ;;  %v1351_v24 = vrot.slane %v1344_v17, %v3870_v41 }
 0x3a8   : > { %v1302_v19 = vpop.trf.xlu0 }
 0x3a9   : > { %v1325_v21 = vrot.slane %v1318_v18, %v3870_v41  ;;  %v1352_v22 = vcombine.low %v1238_v12, %v1302_v19  ;;  %v915_v12 = vrot.slane %v901_v7, %v3876_v50  ;;  %v934_v18 = vcombine.high %v924_v13, %v3611_v9 }
 0x3ab   : > { %v1326_v25 = vcombine.low %v1317_v20, %v1325_v21  ;;  %v1359_v26 = vrot.slane %v1352_v22, %v3870_v41  ;;  %v1327_v30 = vcombine.high %v1317_v20, %v1325_v21  ;;  %v933_v17 = vcombine.high %v915_v12, %v3611_v9 }
 0x3ad   : > { %v1360_v32 = vcombine.low %v1351_v24, %v1359_v26  ;;  %v1361_v33 = vcombine.high %v1351_v24, %v1359_v26  ;;  %v1334_v34 = vrot.slane %v1326_v25, %v3876_v50  ;;  %v1341_v42 = vrot.slane %v1327_v30, %v3876_v50 }
 0x3af   : > { %v1368_v36 = vrot.slane %v1360_v32, %v3876_v50  ;;  %v1375_v37 = vrot.slane %v1361_v33, %v3876_v50  ;;  %v1382_v39 = vshrl.u32 %v1334_v34, 16  ;;  %v1398_v48 = vshrl.u32 %v1341_v42, 16 }
 0x3b0   : > { %v1342_v49 = vcombine.high %v1334_v34, %v3619_v45  ;;  %v1343_v56 = vcombine.high %v1341_v42, %v3619_v45 }
 0x3b1   : > { %v1380_v38 = vpack.i.b16 %v1368_v36, %v1334_v34  ;;  %v1383_v40 = vshrl.u32 %v1368_v36, 16  ;;  %v1399_v44 = vshrl.u32 %v1375_v37, 16  ;;  %v1376_v46 = vcombine.high %v1368_v36, %v3619_v45 }
 0x3b2   : > { %v1396_v47 = vpack.i.b16 %v1375_v37, %v1341_v42  ;;  %v1377_v53 = vcombine.high %v1375_v37, %v3619_v45  ;;  %v1390_v55 = vshrl.u32 %v1342_v49, 16  ;;  %v1406_v60 = vshrl.u32 %v1343_v56, 16 }
 0x3b3   : > { %1410 = vxpose.xlu1.c.b16.start.end [1/1] (short) (narrow) %v1380_v38, 16  ;;  %v1384_v43 = vpack.i.b16 %v1383_v40, %v1382_v39  ;;  %v1400_v51 = vpack.i.b16 %v1399_v44, %v1398_v48  ;;  %v1391_v52 = vshrl.u32 %v1376_v46, 16  ;;  %v1388_v54 = vpack.i.b16 %v1376_v46, %v1342_v49 }
 0x3b4   : > { %v1407_v58 = vshrl.u32 %v1377_v53, 16  ;;  %v1404_v59 = vpack.i.b16 %v1377_v53, %v1343_v56 }
 0x3b5   : > { %1426 = vxpose.xlu0.c.b16.start.end [1/1] (short) (narrow) %v1384_v43, 16  ;;  %v1392_v57 = vpack.i.b16 %v1391_v52, %v1390_v55 }
 0x3b6   : > { %v1408_v61 = vpack.i.b16 %v1407_v58, %v1406_v60 }
 0x3b7   : > { %1474 = vxpose.xlu1.c.b16.start.end [1/1] (short) (narrow) %v1396_v47, 16 }
 0x3b9   : > { %1490 = vxpose.xlu0.c.b16.start.end [1/1] (short) (narrow) %v1400_v51, 16 }
 0x3bb   : > { %1442 = vxpose.xlu1.c.b16.start.end [1/1] (short) (narrow) %v1388_v54, 16 }
 0x3bd   : > { %1458 = vxpose.xlu0.c.b16.start.end [1/1] (short) (narrow) %v1392_v57, 16 }
 0x3bf   : > { %1506 = vxpose.xlu1.c.b16.start.end [1/1] (short) (narrow) %v1404_v59, 16 }
 0x3c1   : > { %1522 = vxpose.xlu0.c.b16.start.end [1/1] (short) (narrow) %v1408_v61, 16 }
 0x3c3   : > { %1032 = vrot.lane.b32.xlu1 %v3847_v23, %s3620_s29 }
 0x3c7   : > { %1036 = vrot.lane.b32.xlu1 %v3858_v28, %s3620_s29  ;;  %v908_v28 = vrot.slane %v900_v6, %v3876_v50 }
 0x3c9   : > { %v932_v16 = vcombine.high %v908_v28, %v3611_v9  ;;  %v3314_v25 = vpack.c.bf16 %v924_v13, %v908_v28 }
 0x3ca   : > { %1034 = vrot.lane.b32.xlu0 %v3854_v27, %s3620_s29  ;;  %v931_v27 = vrot.slane %v917_v10, %v3876_v50 }
 0x3cb   : > { %v3316_v22 = vpack.c.bf16 %v934_v18, %v932_v16  ;;  %v1127_v39 = vrot.slane %v3314_v25, %v3870_v41 }
 0x3cc   : > { %v935_v19 = vcombine.high %v931_v27, %v3611_v9  ;;  %v3315_v26 = vpack.c.bf16 %v931_v27, %v915_v12 }
 0x3cd   : > { %v1152_v34 = vrot.slane %v3316_v22, %v3870_v41 }
 0x3ce   : > { %v3317_v24 = vpack.c.bf16 %v935_v19, %v933_v17  ;;  %v1135_v40 = vrot.slane %v3315_v26, %v3870_v41  ;;  %v856_v17 = vand.u32 127, %v853_v31 }
 0x3d0   : > { %v1160_v36 = vrot.slane %v3317_v24, %v3870_v41  ;;  %v1136_v52 = vcombine.low %v1127_v39, %v1135_v40  ;;  %vm857_vm5 = vcmp.le.s32.totalorder %v856_v17, %v3867_v35 }
 0x3d2   : > { %v1161_v51 = vcombine.low %v1152_v34, %v1160_v36  ;;  %v1143_v58 = vrot.slane %v1136_v52, %v3876_v50 }
 0x3d4   : > { %v1168_v56 = vrot.slane %v1161_v51, %v3876_v50  ;;  %v1144_v5 = vcombine.high %v1143_v58, %v3619_v45  ;;  %v1173_v28 = vshrl.u32 %v1143_v58, 16 }
 0x3d6   : > { %v1169_v2 = vcombine.high %v1168_v56, %v3619_v45  ;;  %v1172_v4 = vpack.i.b16 %v1168_v56, %v1143_v58 }
 0x3d8   : > { %v1178_v8 = vpack.i.b16 %v1169_v2, %v1144_v5 }
 0x419   : > { %v1418_v11 = vpop.trf.xlu1 }
 0x41b   : > { %v1434_v14 = vpop.trf.xlu0 }
 0x41d   : > { %v1482_v15 = vpop.trf.xlu1 }
 0x41e   : > { %v1538_v32 = vcombine.low %v1418_v11, %v1482_v15  ;;  %v1174_v11 = vshrl.u32 %v1168_v56, 16  ;;  %v1179_v15 = vshrl.u32 %v1144_v5, 16 }
 0x41f   : > { %v1498_v20 = vpop.trf.xlu0 }
 0x420   : > { %v1563_v37 = vcombine.low %v1434_v14, %v1498_v20  ;;  %v1545_v43 = vrot.slane %v1538_v32, %v3870_v41  ;;  %v1175_v13 = vpack.i.b16 %v1174_v11, %v1173_v28  ;;  %v1180_v14 = vshrl.u32 %v1169_v2, 16 }
 0x421   : > { %v1450_v21 = vpop.trf.xlu1 }
 0x422   : > { %v1570_v47 = vrot.slane %v1563_v37, %v3870_v41  ;;  %v1181_v16 = vpack.i.b16 %v1180_v14, %v1179_v15 }
 0x423   : > { %v1466_v30 = vpop.trf.xlu0 }
 0x425   : > { %v1514_v33 = vpop.trf.xlu1 }
 0x426   : > { %v1546_v38 = vcombine.low %v1450_v21, %v1514_v33 }
 0x427   : > { %v1530_v42 = vpop.trf.xlu0 }
 0x428   : > { %v1553_v44 = vrot.slane %v1546_v38, %v3870_v41  ;;  %v1571_v46 = vcombine.low %v1466_v30, %v1530_v42 }
 0x42a   : > { %v1554_v48 = vcombine.low %v1545_v43, %v1553_v44  ;;  %v1578_v49 = vrot.slane %v1571_v46, %v3870_v41 }
 0x42c   : > { %v1561_v53 = vrot.slane %v1554_v48, %v3876_v50  ;;  %v1579_v54 = vcombine.low %v1570_v47, %v1578_v49 }
 0x42e   : > { %v1586_v55 = vrot.slane %v1579_v54, %v3876_v50  ;;  %v1562_v57 = vcombine.high %v1561_v53, %v3619_v45  ;;  %v1591_v61 = vshrl.u32 %v1561_v53, 16 }
 0x430   : > { %v1590_v59 = vpack.i.b16 %v1586_v55, %v1561_v53  ;;  %v1587_v60 = vcombine.high %v1586_v55, %v3619_v45  ;;  %v1592_v62 = vshrl.u32 %v1586_v55, 16  ;;  %v1597_v10 = vshrl.u32 %v1562_v57, 16 }
 0x432   : > { %v1606_v63 = vsel %vm1604_vm3, %v1590_v59, 0  ;;  %v1596_v0 = vpack.i.b16 %v1587_v60, %v1562_v57  ;;  %v1593_v1 = vpack.i.b16 %v1592_v62, %v1591_v61  ;;  %v1598_v6 = vshrl.u32 %v1587_v60, 16 }
 0x433   : > { %3398 = vmatpush3.bf16.msra.mxu1 %v1606_v63 }
 0x434   : > { %v1698_v3 = vsel %vm1604_vm3, %v1596_v0, 0  ;;  %3403 = vmatprep.subr.bf16.mxu1 %v3611_v9  ;;  %v1652_v7 = vsel %vm1604_vm3, %v1593_v1, 0  ;;  %v1599_v12 = vpack.i.b16 %v1598_v6, %v1597_v10 }
 0x435   : > { %3410 = vmatpush3.bf16.msra.mxu0 %v1698_v3  ;;  %v1033_v47 = vpop.permute.xlu1 %1032 }
 0x436   : > { %3400 = vmatmul.mubr.msk.bf16.vlgmr.msra.gmra.mrb[4].mxu1 %vm1600_vm4, %v1172_v4  ;;  %3421 = vmatprep.subr.bf16.mxu0 %v3611_v9  ;;  %v1744_v27 = vsel %vm1604_vm3, %v1599_v12, 0 }
 0x437   : > { %3404 = vmatpush3.bf16.msra.mxu1 %v1652_v7  ;;  %3405 = vmatprep.mubr.msk.bf16.mxu1 %vm3612_vm2, %v3611_v9 }
 0x438   : > { %3412 = vmatmul.mubr.msk.bf16.vlgmr.msra.gmra.mrb[0].mxu0 %vm1600_vm4, %v1178_v8  ;;  %3415 = vmatprep.subr.bf16.mxu1 %v3611_v9 }
 0x439   : > { %3423 = vmatprep.mubr.msk.bf16.mxu0 %vm3612_vm2, %v3611_v9  ;;  %v1037_v48 = vpop.permute.xlu1 %1036 }
 0x43a   : > { %v1044_v51 = vcombine.low %v1033_v47, %v1037_v48  ;;  %v1045_v54 = vcombine.high %v1033_v47, %v1037_v48 }
 0x43c   : > { %v1035_v52 = vpop.permute.xlu0 %1034  ;;  %v1059_v58 = vrot.slane %v1045_v54, %v3870_v41 }
 0x43e   : > { %3406 = vmatmul.mubr.msk.bf16.vlgmr.msra.gmra.mrb[8].mxu1 %vm1600_vm4, %v1175_v13 }
 0x43f   : > { %3416 = vmatpush3.bf16.msra.mxu1 %v1744_v27  ;;  %3417 = vmatprep.mubr.msk.bf16.mxu1 %vm3612_vm2, %v3611_v9 }
 0x440   : > { %3427 = vmatprep.subr.bf16.mxu1 %v3611_v9 }
 0x446   : > { %3418 = vmatmul.mubr.msk.bf16.vlgmr.msra.gmra.mrb[12].mxu1 %vm1600_vm4, %v1181_v16 }
 0x447   : > { %3429 = vmatprep.mubr.msk.bf16.mxu1 %vm3612_vm2, %v3611_v9 }
 0x509   : > { %v1642_v18 = vpop.f32.mrb[4].mxu1 }
 0x50a   : > { %v3965_v19 = vsel %vm857_vm5, %v1642_v18, -1e+30  ;;  %v3401_v20 = vpop.f32.mrb[5].mxu1 }
 0x50b   : > { %v1645_v21 = vpop.f32.mrb[6].mxu1  ;;  %v1734_v22 = vpop.f32.mrb[0].mxu0  ;;  %v1792_v24 = vsel %vm1600_vm4, %v3965_v19, -inf }
 0x50c   : > { %v3413_v25 = vpop.f32.mrb[1].mxu0  ;;  %1793 = vmax.xlane.f32.xlu1 %v1792_v24  ;;  %v3402_v26 = vpop.f32.mrb[7].mxu1  ;;  %v3981_v44 = vsel %vm857_vm5, %v1734_v22, -1e+30 }
 0x50d   : > { %v1737_v30 = vpop.f32.mrb[2].mxu0  ;;  %v1798_v46 = vsel %vm1600_vm4, %v3981_v44, -inf }
 0x50e   : > { %v3414_v32 = vpop.f32.mrb[3].mxu0 }
 0x511   : > { %v1688_v33 = vpop.f32.mrb[8].mxu1 }
 0x512   : > { %v3971_v31 = vsel %vm857_vm5, %v1688_v33, -1e+30  ;;  %v3407_v34 = vpop.f32.mrb[9].mxu1 }
 0x513   : > { %v1691_v36 = vpop.f32.mrb[10].mxu1  ;;  %v1795_v6 = vsel %vm1600_vm4, %v3971_v31, -inf }
 0x514   : > { %v3408_v37 = vpop.f32.mrb[11].mxu1 }
 0x519   : > { %v1780_v38 = vpop.f32.mrb[12].mxu1 }
 0x51a   : > { %v3975_v39 = vsel %vm857_vm5, %v1780_v38, -1e+30  ;;  %v3419_v40 = vpop.f32.mrb[13].mxu1 }
 0x51b   : > { %v1783_v42 = vpop.f32.mrb[14].mxu1  ;;  %v1801_v11 = vsel %vm1600_vm4, %v3975_v39, -inf }
 0x51c   : > { %v3420_v43 = vpop.f32.mrb[15].mxu1 }
 0x51d   : > { %1038 = vrot.lane.b32.xlu1 %v3862_v29, %s3620_s29  ;;  %v1052_v29 = vrot.slane %v1044_v51, %v3870_v41 }
 0x541   : > { %1799 = vmax.xlane.f32.xlu1 %v1798_v46 }
 0x599   : > { %v3985_v49 = vpop.xlane.xlu1 %1793 }
 0x59d   : > { %v1039_v53 = vpop.permute.xlu1 %1038 }
 0x59e   : > { %v1060_v55 = vcombine.low %v1035_v52, %v1039_v53  ;;  %v1061_v56 = vcombine.high %v1035_v52, %v1039_v53 }
 0x5a0   : > { %v1068_v35 = vrot.slane %v1060_v55, %v3870_v41  ;;  %v1075_v57 = vrot.slane %v1061_v56, %v3870_v41 }
 0x5a2   : > { %v1076_v59 = vcombine.low %v1052_v29, %v1068_v35  ;;  %v1092_v61 = vcombine.low %v1059_v58, %v1075_v57  ;;  %v1093_v2 = vcombine.high %v1059_v58, %v1075_v57  ;;  %v1077_v7 = vcombine.high %v1052_v29, %v1068_v35 }
 0x5a3   : > { %v1804_v57 = vsub.f32 %v3965_v19, %v3985_v49 }
 0x5a4   : > { %v1084_v60 = vrot.slane %v1076_v59, %v3876_v50  ;;  %v1100_v1 = vrot.slane %v1092_v61, %v3876_v50  ;;  %v1107_v4 = vrot.slane %v1093_v2, %v3876_v50  ;;  %v1091_v8 = vrot.slane %v1077_v7, %v3876_v50 }
 0x5a6   : > { %v1112_v62 = vpack.c.bf16 %v1084_v60, %v1084_v60  ;;  %v1108_v63 = vcombine.high %v1084_v60, %v3611_v9  ;;  %v1116_v3 = vpack.c.bf16 %v1100_v1, %v1100_v1  ;;  %v1118_v5 = vpack.c.bf16 %v1107_v4, %v1107_v4 }
 0x5a7   : > { %v1114_v10 = vpack.c.bf16 %v1091_v8, %v1091_v8  ;;  %v1109_v28 = vcombine.high %v1091_v8, %v3611_v9  ;;  %v1110_v13 = vcombine.high %v1100_v1, %v3611_v9  ;;  %v1111_v14 = vcombine.high %v1107_v4, %v3611_v9 }
 0x5a8   : > { %1840 = vxpose.xlu0.c.b16.start.end [1/1] (short) (narrow) %v1112_v62, 16  ;;  %v1113_v0 = vpack.c.bf16 %v1108_v63, %v1108_v63  ;;  %v1808_v1 = vmul.f32 1.442695, %v1804_v57 }
 0x5a9   : > { %v1115_v12 = vpack.c.bf16 %v1109_v28, %v1109_v28  ;;  %v1117_v27 = vpack.c.bf16 %v1110_v13, %v1110_v13  ;;  %v1119_v15 = vpack.c.bf16 %v1111_v14, %v1111_v14 }
 0x5aa   : > { %1856 = vxpose.xlu1.c.b16.start.end [1/1] (short) (narrow) %v1113_v0, 16  ;;  %3550 = vpow2.f32 %v1808_v1 }
 0x5ae   : > { %1904 = vxpose.xlu1.c.b16.start.end [1/1] (short) (narrow) %v1116_v3, 16 }
 0x5b2   : > { %1936 = vxpose.xlu1.c.b16.start.end [1/1] (short) (narrow) %v1118_v5, 16 }
 0x5b5   : > { %1796 = vmax.xlane.f32.xlu0 %v1795_v6 }
 0x5ce   : > { %v1800_v16 = vpop.xlane.xlu1 %1799 }
 0x5cf   : > { %v1806_v2 = vsub.f32 %v3981_v44, %v1800_v16 }
 0x5d1   : > { %v1812_v7 = vmul.f32 1.442695, %v1806_v2 }
 0x5e2   : > { %1872 = vxpose.xlu0.c.b16.start.end [1/1] (short) (narrow) %v1114_v10, 16  ;;  %v3551_v10 = vpop.eup %3550 }
 0x5ef   : > { %1802 = vmax.xlane.f32.xlu0 %v1801_v11  ;;  %v1816_v11 = vsel %vm1600_vm4, %v3551_v10, 0.0 }
 0x60e   : > { %v1848_v17 = vpop.trf.xlu0 }
 0x610   : > { %v1864_v18 = vpop.trf.xlu1 }
 0x614   : > { %v1912_v21 = vpop.trf.xlu1 }
 0x615   : > { %v1968_v26 = vcombine.low %v1848_v17, %v1912_v21 }
 0x617   : > { %v1975_v33 = vrot.slane %v1968_v26, %v3870_v41 }
 0x618   : > { %v1944_v25 = vpop.trf.xlu1 }
 0x61c   : > { %1888 = vxpose.xlu0.c.b16.start.end [1/1] (short) (narrow) %v1115_v12, 16 }
 0x620   : > { %1920 = vxpose.xlu0.c.b16.start.end [1/1] (short) (narrow) %v1117_v27, 16 }
 0x624   : > { %1952 = vxpose.xlu0.c.b16.start.end [1/1] (short) (narrow) %v1119_v15, 16 }
 0x642   : > { %v1797_v20 = vpop.xlane.xlu0 %1796 }
 0x643   : > { %v1805_v61 = vsub.f32 %v3971_v31, %v1797_v20 }
 0x645   : > { %v1810_v5 = vmul.f32 1.442695, %v1805_v61 }
 0x647   : > { %3552 = vpow2.f32 %v1810_v5 }
 0x648   : > { %v1880_v22 = vpop.trf.xlu0  ;;  %3554 = vpow2.f32 %v1812_v7 }
 0x649   : > { %v1976_v30 = vcombine.low %v1880_v22, %v1944_v25 }
 0x64b   : > { %v1983_v34 = vrot.slane %v1976_v30, %v3870_v41 }
 0x64d   : > { %v1984_v38 = vcombine.low %v1975_v33, %v1983_v34  ;;  %v1985_v53 = vcombine.high %v1975_v33, %v1983_v34 }
 0x64f   : > { %v1992_v47 = vrot.slane %v1984_v38, %v3876_v50  ;;  %v1999_v0 = vrot.slane %v1985_v53, %v3876_v50 }
 0x651   : > { %v2040_v54 = vshrl.u32 %v1992_v47, 16  ;;  %v2000_v29 = vcombine.high %v1992_v47, %v3619_v45  ;;  %v2056_v6 = vshrl.u32 %v1999_v0, 16  ;;  %v3553_v44 = vpop.eup %3552  ;;  %v2001_v15 = vcombine.high %v1999_v0, %v3619_v45 }
 0x652   : > { %v3555_v28 = vpop.eup %3554 }
 0x653   : > { %v2048_v63 = vshrl.u32 %v2000_v29, 16  ;;  %v1822_v13 = vsel %vm1600_vm4, %v3555_v28, 0.0 }
 0x67c   : > { %v1803_v24 = vpop.xlane.xlu0 %1802 }
 0x67d   : > { %v1807_v19 = vsub.f32 %v3975_v39, %v1803_v24  ;;  %v1819_v39 = vsel %vm1600_vm4, %v3553_v44, 0.0 }
 0x67f   : > { %v1814_v8 = vmul.f32 1.442695, %v1807_v19 }
 0x681   : > { %3556 = vpow2.f32 %v1814_v8 }
 0x682   : > { %v1896_v32 = vpop.trf.xlu0 }
 0x686   : > { %v1928_v36 = vpop.trf.xlu0 }
 0x687   : > { %v2002_v37 = vcombine.low %v1864_v18, %v1928_v36  ;;  %v2064_v18 = vshrl.u32 %v2001_v15, 16 }
 0x689   : > { %v2009_v43 = vrot.slane %v2002_v37, %v3870_v41 }
 0x68a   : > { %v1960_v40 = vpop.trf.xlu0 }
 0x68b   : > { %v2010_v42 = vcombine.low %v1896_v32, %v1960_v40  ;;  %v3557_v12 = vpop.eup %3556 }
 0x68c   : > { %v1825_v27 = vsel %vm1600_vm4, %v3557_v12, 0.0 }
 0x68d   : > { %v2017_v46 = vrot.slane %v2010_v42, %v3870_v41 }
 0x68f   : > { %v2018_v48 = vcombine.low %v2009_v43, %v2017_v46  ;;  %v2019_v51 = vcombine.high %v2009_v43, %v2017_v46 }
 0x691   : > { %v2026_v52 = vrot.slane %v2018_v48, %v3876_v50  ;;  %v2033_v60 = vrot.slane %v2019_v51, %v3876_v50 }
 0x693   : > { %v2038_v55 = vpack.i.b16 %v2026_v52, %v1992_v47  ;;  %v2041_v56 = vshrl.u32 %v2026_v52, 16  ;;  %v2034_v35 = vcombine.high %v2026_v52, %v3619_v45  ;;  %v2057_v4 = vshrl.u32 %v2033_v60, 16 }
 0x694   : > { %v2054_v49 = vpack.i.b16 %v2033_v60, %v1999_v0  ;;  %v2035_v14 = vcombine.high %v2033_v60, %v3619_v45 }
 0x695   : > { %2068 = vxpose.xlu1.c.b16.start.end [1/1] (short) (narrow) %v2038_v55, 16  ;;  %v2042_v58 = vpack.i.b16 %v2041_v56, %v2040_v54  ;;  %v2049_v59 = vshrl.u32 %v2034_v35, 16  ;;  %v2046_v62 = vpack.i.b16 %v2034_v35, %v2000_v29  ;;  %v2058_v31 = vpack.i.b16 %v2057_v4, %v2056_v6 }
 0x696   : > { %v2065_v16 = vshrl.u32 %v2035_v14, 16  ;;  %v2062_v17 = vpack.i.b16 %v2035_v14, %v2001_v15 }
 0x697   : > { %2084 = vxpose.xlu0.c.b16.start.end [1/1] (short) (narrow) %v2042_v58, 16  ;;  %v2050_v3 = vpack.i.b16 %v2049_v59, %v2048_v63 }
 0x698   : > { %v2066_v20 = vpack.i.b16 %v2065_v16, %v2064_v18 }
 0x699   : > { %2100 = vxpose.xlu1.c.b16.start.end [1/1] (short) (narrow) %v2046_v62, 16 }
 0x69b   : > { %2116 = vxpose.xlu0.c.b16.start.end [1/1] (short) (narrow) %v2050_v3, 16 }
 0x69d   : > { %2132 = vxpose.xlu1.c.b16.start.end [1/1] (short) (narrow) %v2054_v49, 16 }
 0x69f   : > { %2148 = vxpose.xlu0.c.b16.start.end [1/1] (short) (narrow) %v2058_v31, 16 }
 0x6aa   : > { %1817 = vadd.xlane.f32.xlu1 %v1816_v11 }
 0x6ac   : > { %1820 = vadd.xlane.f32.xlu0 %v1819_v39 }
 0x6ae   : > { %1823 = vadd.xlane.f32.xlu1 %v1822_v13 }
 0x6b0   : > { %1826 = vadd.xlane.f32.xlu0 %v1825_v27 }
 0x6db   : > { %2164 = vxpose.xlu1.c.b16.start.end [1/1] (short) (narrow) %v2062_v17, 16 }
 0x6dd   : > { %2180 = vxpose.xlu0.c.b16.start.end [1/1] (short) (narrow) %v2066_v20, 16 }
 0x6fb   : > { %v2076_v21 = vpop.trf.xlu1 }
 0x6fd   : > { %v2092_v22 = vpop.trf.xlu0 }
 0x6ff   : > { %v2108_v24 = vpop.trf.xlu1 }
 0x701   : > { %v2124_v25 = vpop.trf.xlu0 }
 0x703   : > { %v2140_v26 = vpop.trf.xlu1 }
 0x704   : > { %v2196_v37 = vcombine.low %v2076_v21, %v2140_v26 }
 0x705   : > { %v2156_v30 = vpop.trf.xlu0 }
 0x706   : > { %v2221_v42 = vcombine.low %v2092_v22, %v2156_v30  ;;  %v2203_v51 = vrot.slane %v2196_v37, %v3870_v41 }
 0x708   : > { %v2228_v29 = vrot.slane %v2221_v42, %v3870_v41 }
 0x737   : > { %v1818_v32 = vpop.xlane.xlu1 %1817 }
 0x738   : > { %3558 = vrcp.f32 %v1818_v32 }
 0x739   : > { %v1821_v33 = vpop.xlane.xlu0 %1820 }
 0x73a   : > { %3560 = vrcp.f32 %v1821_v33 }
 0x73b   : > { %v1824_v34 = vpop.xlane.xlu1 %1823 }
 0x73c   : > { %3562 = vrcp.f32 %v1824_v34 }
 0x73d   : > { %v1827_v36 = vpop.xlane.xlu0 %1826 }
 0x73e   : > { %3564 = vrcp.f32 %v1827_v36 }
 0x741   : > { %v2172_v38 = vpop.trf.xlu1 }
 0x742   : > { %v3559_v40 = vpop.eup %3558  ;;  %v2204_v43 = vcombine.low %v2108_v24, %v2172_v38 }
 0x743   : > { %v2188_v46 = vpop.trf.xlu0  ;;  %v1832_v47 = vmul.f32 %v3559_v40, %v3551_v10 }
 0x744   : > { %v3561_v48 = vpop.eup %3560  ;;  %v2211_v52 = vrot.slane %v2204_v43, %v3870_v41  ;;  %v2229_v53 = vcombine.low %v2124_v25, %v2188_v46 }
 0x745   : > { %v1836_v54 = vpack.c.bf16 %v1832_v47, %v1832_v47  ;;  %v1833_v55 = vmul.f32 %v3561_v48, %v3553_v44 }
 0x746   : > { %v3563_v56 = vpop.eup %3562  ;;  %v2212_v35 = vcombine.low %v2203_v51, %v2211_v52  ;;  %v2236_v57 = vrot.slane %v2229_v53, %v3870_v41 }
 0x747   : > { %v2262_v58 = vsel %vm1600_vm4, %v1836_v54, 0  ;;  %v1837_v59 = vpack.c.bf16 %v1833_v55, %v1833_v55  ;;  %v1834_v60 = vmul.f32 %v3563_v56, %v3555_v28  ;;  %v3536_v55 = vld [vmem:[%s3771_s23] sm:$0xff]  }
 0x748   : > { %v3565_v61 = vpop.eup %3564  ;;  %v2219_v62 = vrot.slane %v2212_v35, %v3876_v50  ;;  %v2237_v63 = vcombine.low %v2228_v29, %v2236_v57  ;;  %3422 = vmatpush3.bf16.xpose.msra.mxu0 %v2262_v58 }
 0x749   : > { %v2308_v0 = vsel %vm1600_vm4, %v1837_v59, 0  ;;  %3433 = vmatprep.subr.bf16.mxu0 %v3611_v9  ;;  %v1835_v1 = vmul.f32 %v3565_v61, %v3557_v12  ;;  %v1838_v3 = vpack.c.bf16 %v1834_v60, %v1834_v60 }
 0x74a   : > { %v2244_v2 = vrot.slane %v2237_v63, %v3876_v50  ;;  %3428 = vmatpush3.bf16.xpose.msra.mxu1 %v2308_v0  ;;  %v2249_v4 = vshrl.u32 %v2219_v62, 16  ;;  %v2220_v8 = vcombine.high %v2219_v62, %v3619_v45 }
 0x74b   : > { %3439 = vmatprep.subr.bf16.mxu1 %v3611_v9  ;;  %v1839_v49 = vpack.c.bf16 %v1835_v1, %v1835_v1  ;;  %v2354_v31 = vsel %vm1600_vm4, %v1838_v3, 0 }
 0x74c   : > { %v2248_v5 = vpack.i.b16 %v2244_v2, %v2219_v62  ;;  %v2250_v19 = vshrl.u32 %v2244_v2, 16  ;;  %v2245_v7 = vcombine.high %v2244_v2, %v3619_v45  ;;  %v2255_v11 = vshrl.u32 %v2220_v8, 16  ;;  %v3537_v62 = vld [vmem:[%s3771_s23 + $0x8] sm:$0xff]   ;;  %s3621_s23 = smov 16  }
 0x74d   : > { %v2400_v10 = vsel %vm1600_vm4, %v1839_v49, 0 }
 0x74e   : > { %v2251_v6 = vpack.i.b16 %v2250_v19, %v2249_v4  ;;  %v2256_v44 = vshrl.u32 %v2245_v7, 16  ;;  %v2254_v28 = vpack.i.b16 %v2245_v7, %v2220_v8 }
 0x74f   : > { %3424 = vmatmul.mubr.msk.bf16.vlgmr.msra.gmra.mrb[4].mxu0 %vm1600_vm4, %v2248_v5 }
 0x750   : > { %3434 = vmatpush3.bf16.xpose.msra.mxu0 %v2354_v31  ;;  %3435 = vmatprep.mubr.msk.bf16.mxu0 %vm3612_vm2, %v3611_v9  ;;  %v2257_v39 = vpack.i.b16 %v2256_v44, %v2255_v11 }
 0x751   : > { %3430 = vmatmul.mubr.msk.bf16.vlgmr.msra.gmra.mrb[16].mxu1 %vm1600_vm4, %v2251_v6  ;;  %3445 = vmatprep.subr.bf16.mxu0 %v3611_v9 }
 0x752   : > { %3440 = vmatpush3.bf16.xpose.msra.mxu1 %v2400_v10  ;;  %3441 = vmatprep.mubr.msk.bf16.mxu1 %vm3612_vm2, %v3611_v9 }
 0x753   : > { %3453 = vmatprep.subr.bf16.mxu1 %v3611_v9 }
 0x757   : > { %3436 = vmatmul.mubr.msk.bf16.vlgmr.msra.gmra.mrb[8].mxu0 %vm1600_vm4, %v2254_v28 }
 0x758   : > { %3449 = vmatprep.mubr.msk.bf16.mxu0 %vm3612_vm2, %v3611_v9  ;;  %3446 = vmatpush3.bf16.msra.mxu0 %v3536_v55  ;;  %v3541_v55 = vld [vmem:[%s3802_s7 + $0x8] sm:$0xff]  }
 0x759   : > { %3442 = vmatmul.mubr.msk.bf16.vlgmr.msra.gmra.mrb[20].mxu1 %vm1600_vm4, %v2257_v39  ;;  %3447 = vmatprep.subr.bf16.mxu0 %v3611_v9 }
 0x75a   : > { %3457 = vmatprep.mubr.msk.bf16.mxu1 %vm3612_vm2, %v3611_v9 }
 0x75c   : > { %3448 = vmatpush3.bf16.msra.mxu0 %v3537_v62 }
 0x75d   : > { %3461 = vmatprep.subr.bf16.mxu0 %v3611_v9 }
 0x822   : > { %v2298_v45 = vpop.f32.mrb[4].mxu0 }
 0x823   : > { %2442 = vxpose.xlu1.b32.start.end [1/1] (short) (narrow) %v2298_v45, 8  ;;  %v3425_v12 = vpop.f32.mrb[5].mxu0 }
 0x824   : > { %v2301_v13 = vpop.f32.mrb[6].mxu0  ;;  %v2344_v27 = vpop.f32.mrb[16].mxu1 }
 0x825   : > { %v3426_v14 = vpop.f32.mrb[7].mxu0  ;;  %2474 = vxpose.xlu0.b32.start.end [1/1] (short) (narrow) %v2344_v27, 8  ;;  %v3431_v15 = vpop.f32.mrb[17].mxu1  ;;  %v3328_v27 = vld [vmem:[%s4207_s3] ss:$0 sm:$0xff] }
 0x826   : > { %v2347_v16 = vpop.f32.mrb[18].mxu1 }
 0x827   : > { %v3432_v17 = vpop.f32.mrb[19].mxu1 }
 0x82a   : > { %v2390_v18 = vpop.f32.mrb[8].mxu0 }
 0x82b   : > { %v3437_v20 = vpop.f32.mrb[9].mxu0  ;;  %2506 = vxpose.xlu0.b32.start.end [1/1] (short) (narrow) %v2390_v18, 8  ;;  %v3570_v18 = vld [vmem:[#allocation2] sm:$0xff] }
 0x82c   : > { %v2393_v21 = vpop.f32.mrb[10].mxu0  ;;  %v2436_v22 = vpop.f32.mrb[20].mxu1 }
 0x82d   : > { %v3438_v24 = vpop.f32.mrb[11].mxu0  ;;  %v3443_v25 = vpop.f32.mrb[21].mxu1 }
 0x82e   : > { %v2439_v26 = vpop.f32.mrb[22].mxu1  ;;  %v3354_v24 = vpack.c.bf16 %v3847_v23, %v3847_v23  ;;  %v3538_v23 = vld [vmem:[%s3788_s28] sm:$0xff]  }
 0x82f   : > { %2538 = vxpose.xlu0.b32.start.end [1/1] (short) (narrow) %v2436_v22, 8  ;;  %v3444_v30 = vpop.f32.mrb[23].mxu1  ;;  %3454 = vmatpush3.bf16.msra.mxu1 %v3538_v23 }
 0x830   : > { %3455 = vmatprep.subr.bf16.mxu1 %v3611_v9 }
 0x8a3   : > { %v2458_v34 = vpop.trf.xlu1 }
 0x8a5   : > { %v2490_v32 = vpop.trf.xlu0 }
 0x8ab   : > { %v2522_v33 = vpop.trf.xlu0 }
 0x8ac   : > { %v2570_v36 = vcombine.low %v2458_v34, %v2522_v33  ;;  %v2571_v37 = vcombine.high %v2458_v34, %v2522_v33 }
 0x8ae   : > { %v2578_v43 = vrot.slane %v2570_v36, %v3870_v41  ;;  %v2585_v46 = vrot.slane %v2571_v37, %v3870_v41  ;;  %v3539_v36 = vld [vmem:[%s3788_s28 + $0x8] sm:$0xff]   ;;  %v3540_v37 = vld [vmem:[%s3802_s7] sm:$0xff]  }
 0x8af   : > { %v2554_v38 = vpop.trf.xlu0  ;;  %3456 = vmatpush3.bf16.msra.mxu1 %v3539_v36 }
 0x8b0   : > { %v2586_v40 = vcombine.low %v2490_v32, %v2554_v38  ;;  %v2587_v42 = vcombine.high %v2490_v32, %v2554_v38 }
 0x8b2   : > { %v2594_v47 = vrot.slane %v2586_v40, %v3870_v41  ;;  %v2601_v48 = vrot.slane %v2587_v42, %v3870_v41 }
 0x8b4   : > { %v2602_v51 = vcombine.low %v2578_v43, %v2594_v47  ;;  %v2603_v52 = vcombine.high %v2578_v43, %v2594_v47  ;;  %v2618_v53 = vcombine.low %v2585_v46, %v2601_v48  ;;  %v2619_v54 = vcombine.high %v2585_v46, %v2601_v48  ;;  %v3332_v47 = vld [vmem:[%s4209_s17] ss:$0 sm:$0xff] }
 0x8b6   : > { %v2610_v56 = vrot.slane %v2602_v51, %v3876_v50  ;;  %v2617_v29 = vrot.slane %v2603_v52, %v3876_v50  ;;  %v2626_v35 = vrot.slane %v2618_v53, %v3876_v50  ;;  %v2633_v57 = vrot.slane %v2619_v54, %v3876_v50  ;;  %v3333_v51 = vld [vmem:[%s4210_s24] ss:$0 sm:$0xff] }
 0x8b8   : > { %v2638_v58 = vcombine.low %v2610_v56, %v2617_v29  ;;  %v3326_v59 = vcombine.high %v2610_v56, %v2617_v29  ;;  %v2654_v60 = vcombine.low %v2626_v35, %v2633_v57  ;;  %v3327_v61 = vcombine.high %v2626_v35, %v2633_v57  ;;  %v3542_v56 = vld [vmem:[%s3802_s7 + $0x10] sm:$0xff]   ;;  %v3543_v29 = vld [vmem:[%s3802_s7 + $0x18] sm:$0xff]   ;;  %v3544_v35 = vld [vmem:[%s3802_s7 + $0x20] sm:$0xff]  }
 0x8b9   : > { %v3545_v57 = vld [vmem:[%s3802_s7 + $0x28] sm:$0xff]  }
 0x8ba   : > { %v2645_v63 = vrot.slane %v2638_v58, %v3870_v41  ;;  %v2653_v0 = vrot.slane %v3326_v59, %v3870_v41  ;;  %v2661_v1 = vrot.slane %v2654_v60, %v3870_v41  ;;  %v2669_v2 = vrot.slane %v3327_v61, %v3870_v41  ;;  %v3546_v58 = vld [vmem:[%s3802_s7 + $0x30] sm:$0xff]   ;;  %v3547_v59 = vld [vmem:[%s3802_s7 + $0x38] sm:$0xff]   ;;  %v3334_v60 = vld [vmem:[%s4212_s11] ss:$0 sm:$0xff] }
 0x8bc   : > { %v2671_v3 = vcombine.high %v2645_v63, %v2653_v0  ;;  %v2687_v4 = vcombine.high %v2661_v1, %v2669_v2  ;;  %v2670_v5 = vcombine.low %v2645_v63, %v2653_v0  ;;  %v2686_v19 = vcombine.low %v2661_v1, %v2669_v2 }
 0x8be   : > { %v2685_v49 = vrot.slane %v2671_v3, %v3876_v50  ;;  %v2701_v6 = vrot.slane %v2687_v4, %v3876_v50  ;;  %v2678_v7 = vrot.slane %v2670_v5, %v3876_v50  ;;  %v2694_v31 = vrot.slane %v2686_v19, %v3876_v50 }
 0x8c0   : > { %v2704_v8 = vcombine.low %v2685_v49, %v2701_v6  ;;  %v2703_v10 = vcombine.high %v2678_v7, %v2694_v31  ;;  %v2702_v44 = vcombine.low %v2678_v7, %v2694_v31  ;;  %v2705_v41 = vcombine.high %v2685_v49, %v2701_v6 }
 0x8c2   : > { %2711 = vrot.lane.b32.xlu0 %v2704_v8, %s3621_s23  ;;  %2707 = vrot.lane.b32.xlu1 %v2703_v10, %s3622_s26  ;;  %v3338_v8 = vld [vmem:[%s713_s20] ss:$0 sm:$0xff]  ;;  %s4214_s23 = sld [smem:[#allocation16_spill]] (!%p3347_p8) }
 0x8c6   : > { %2715 = vrot.lane.b32.xlu1 %v2705_v41, %s3623_s16 }
 0x8c8   : > { %s4215_s26 = scalar_lea.vmem (!%p3347_p8), %s4214_s23, %s4228_s19 }
 0x934   : > { %v2708_v11 = vpop.permute.xlu1 %2707  ;;  %v2712_v28 = vpop.permute.xlu0 %2711 }
 0x935   : > { %v2718_v39 = vsel %vm1600_vm4, %v2702_v44, %v2708_v11 }
 0x936   : > { %v2720_v12 = vsel %vm2719_vm6, %v2718_v39, %v2712_v28 }
 0x938   : > { %v2716_v45 = vpop.permute.xlu1 %2715 }
 0x939   : > { %v2722_v50 = vsel %vm2721_vm7, %v2720_v12, %v2716_v45 }
 0x93a   : > { %v2723_v13 = vpack.c.bf16 %v2722_v50, %v2722_v50 }
 0x93c   : > { %3450 = vmatmul.mubr.msk.bf16.vlgmr.msra.gmra.mrb[12].mxu0 %vm744_vm1, %v2723_v13 }
 0x93d   : > { %3477 = vmatprep.mubr.msk.bf16.mxu0 %vm3612_vm2, %v3611_v9  ;;  %3462 = vmatpush3.bf16.msra.mxu0 %v3540_v37 }
 0x93e   : > { %3463 = vmatprep.subr.bf16.mxu0 %v3611_v9 }
 0x941   : > { %3464 = vmatpush3.bf16.msra.mxu0 %v3541_v55 }
 0x942   : > { %3465 = vmatprep.subr.bf16.mxu0 %v3611_v9 }
 0x945   : > { %3466 = vmatpush3.bf16.msra.mxu0 %v3542_v56 }
 0x946   : > { %3467 = vmatprep.subr.bf16.mxu0 %v3611_v9 }
 0x949   : > { %3468 = vmatpush3.bf16.msra.mxu0 %v3543_v29 }
 0x94a   : > { %3469 = vmatprep.subr.bf16.mxu0 %v3611_v9 }
 0x94d   : > { %3470 = vmatpush3.bf16.msra.mxu0 %v3544_v35 }
 0x94e   : > { %3471 = vmatprep.subr.bf16.mxu0 %v3611_v9 }
 0x951   : > { %3472 = vmatpush3.bf16.msra.mxu0 %v3545_v57 }
 0x952   : > { %3473 = vmatprep.subr.bf16.mxu0 %v3611_v9 }
 0x955   : > { %3474 = vmatpush3.bf16.msra.mxu0 %v3546_v58 }
 0x956   : > { %3475 = vmatprep.subr.bf16.mxu0 %v3611_v9 }
 0x959   : > { %3476 = vmatpush3.bf16.msra.mxu0 %v3547_v59 }
 0xa0f   : > { %v2784_v14 = vpop.f32.mrb[12].mxu0 }
 0xa10   : > { %v2785_v15 = vadd.f32 %v3328_v27, %v2784_v14  ;;  %v3451_v16 = vpop.f32.mrb[13].mxu0 }
 0xa11   : > { %v2787_v17 = vpop.f32.mrb[14].mxu0 }
 0xa12   : > { %v4081_v20 = vadd.f32 %v3570_v18, %v2785_v15  ;;  %v3452_v21 = vpop.f32.mrb[15].mxu0 }
 0xa14   : > { %v2793_v22 = vsel %vm744_vm1, %v4081_v20, 0.0 }
 0xa15   : > { %2794 = vadd.xlane.f32.xlu1 %v2793_v22 }
 0xa26   : > { %844 = vrot.lane.b32.xlu1 %v3354_v24, %s3616_s15 }
 0xaa2   : > { %v2795_v25 = vpop.xlane.xlu1 %2794 }
 0xaa3   : > { %v2796_v26 = vmul.f32 0.03125, %v2795_v25 }
 0xaa5   : > { %v2797_v30 = vsub.f32 %v4081_v20, %v2796_v26 }
 0xaa6   : > { %v845_v32 = vpop.permute.xlu1 %844 }
 0xaa7   : > { %848 = vst.msk [vmem:[%s3809_s9] sm:$0xf] %vm847_vm8, %v845_v32  ;;  %v2798_v33 = vmul.f32 %v2797_v30, %v2797_v30 }
 0xaa9   : > { %v2799_v34 = vsel %vm744_vm1, %v2798_v33, 0.0 }
 0xaaa   : > { %2800 = vadd.xlane.f32.xlu0 %v2799_v34 }
 0xac0   : > { %849 = vrot.lane.b32.xlu0 %v3354_v24, %s3620_s29 }
 0xb37   : > { %v2801_v38 = vpop.xlane.xlu0 %2800 }
 0xb38   : > { %v2802_v40 = vmul.f32 0.03125, %v2801_v38 }
 0xb3a   : > { %v2803_v42 = vadd.f32 1e-05, %v2802_v40 }
 0xb3b   : > { %v850_v43 = vpop.permute.xlu0 %849 }
 0xb3c   : > { %3566 = vrsqrt.f32 %v2803_v42  ;;  %852 = vst.msk [vmem:[%s3814_s10] sm:$0xf] %vm847_vm8, %v850_v43 }
 0xb46   : > { %v3567_v46 = vpop.eup %3566 }
 0xb47   : > { %v2805_v48 = vmul.f32 %v3567_v46, %v2797_v30 }
 0xb49   : > { %v2812_v52 = vmul.f32 %v3332_v47, %v2805_v48 }
 0xb4b   : > { %v2819_v53 = vadd.f32 %v3333_v51, %v2812_v52 }
 0xb4d   : > { %v2820_v54 = vpack.c.bf16 %v2819_v53, %v2819_v53 }
 0xb4f   : > { %3458 = vmatmul.mubr.msk.bf16.vlgmr.msra.gmra.mrb[24].mxu1 %vm744_vm1, %v2820_v54 }
 0xc22   : > { %v2881_v61 = vpop.f32.mrb[24].mxu1 }
 0xc23   : > { %v2882_v62 = vadd.f32 %v3334_v60, %v2881_v61  ;;  %v3459_v63 = vpop.f32.mrb[25].mxu1 }
 0xc24   : > { %v2884_v0 = vpop.f32.mrb[26].mxu1 }
 0xc25   : > { %v2888_v1 = vmul.f32 0.044715, %v2882_v62  ;;  %v3460_v2 = vpop.f32.mrb[27].mxu1  ;;  %v2887_v9 = vmul.f32 0.5, %v2882_v62 }
 0xc27   : > { %v2889_v3 = vmul.f32 %v2888_v1, %v2882_v62 }
 0xc29   : > { %v2890_v4 = vmul.f32 %v2889_v3, %v2882_v62 }
 0xc2b   : > { %v2891_v5 = vadd.f32 %v2890_v4, %v2882_v62 }
 0xc2d   : > { %v2892_v19 = vmul.f32 0.7978846, %v2891_v5 }
 0xc2f   : > { %3568 = vtanh.f32 %v2892_v19 }
 0xc39   : > { %v3569_v49 = vpop.eup %3568 }
 0xc3a   : > { %v2894_v6 = vadd.f32 1.0, %v3569_v49 }
 0xc3c   : > { %v2895_v7 = vmul.f32 %v2894_v6, %v2887_v9 }
 0xc3e   : > { %v2896_v31 = vpack.c.bf16 %v2895_v7, %v2895_v7 }
 0xc40   : > { %3478 = vmatmul.mubr.bf16.vlgmr.msra.gmra.mrb[16].mxu0 %v2896_v31 }
 0xd12   : > { %3013 = sbr.rel (%p3347_p8) target bundleno = 3354 (0xd1a), region = 80 }
 0xd13   : > { %v3002_v10 = vpop.f32.mrb[16].mxu0 }
 0xd14   : > { %v3003_v44 = vadd.f32 %v3338_v8, %v3002_v10  ;;  %v3479_v41 = vpop.f32.mrb[17].mxu0 }
 0xd15   : > { %v3005_v11 = vpop.f32.mrb[18].mxu0 }
 0xd16   : > { %v3008_v28 = vadd.f32 %v3003_v44, %v4081_v20  ;;  %v3480_v39 = vpop.f32.mrb[19].mxu0 }
 0xd18   : > { %3009 = vst.msk [vmem:[#allocation2] sm:$0xff] %vm744_vm1, %v3008_v28 }
 0xd19   : > { %3015 = vst.msk [vmem:[%s4215_s26 - $0x7] sm:$0x80] %vm3014_vm9, %v3008_v28 }
 0xd1a PF: > { %s4216_s25 = sld [smem:[#allocation6_spill]]  ;;  %s4217_s18 = sld [smem:[#allocation4_spill]] }
 0xd1b   : > { %s4218_s19 = sld [smem:[#allocation5_spill]]  ;;  %s4219_s20 = sld [smem:[#allocation7_spill]] }
 0xd1c   : > { %s4220_s21 = sld [smem:[#allocation8_spill]] }
 0xd20   : > { %s26_s22 = sadd.s32 1, %s4216_s25  }
 0xd21   : > { %p23_p9 = scmp.ge.s32.totalorder %s26_s22, 6  }
 0xd23   :  { %25 = sbr.rel (!%p23_p9) target bundleno = 11 (0xb), region = 170 }

// kernel: closed_call.57
= control target key start
LH: loop header
LB: loop body
LE: loop exit
PB: predicated region body
PF: predicated region fallthrough
CT: control target
= control target key end

     0   :  { %s2878_s30 = smov 0   ;;  %s2882_s19 = smov 0   ;;  %s3270_s0 = inlined_call_operand.<no memory space> [shape: s32[1], index: 0, kind: input, shape index: {}]   ;;  %s3271_s1 = inlined_call_operand.vmem [shape: f32[2,1,32], index: 1, kind: input, shape index: {}]   ;;  %s3272_s2 = inlined_call_operand.vmem [shape: f32[2,1,32], index: 2, kind: input, shape index: {}]   ;;  %s3273_s3 = inlined_call_operand.vmem [shape: f32[2,1,32], index: 3, kind: input, shape index: {}]   ;;  %s3274_s4 = inlined_call_operand.vmem [shape: bf16[2,32,96], index: 4, kind: input, shape index: {}]   ;;  %s3275_s5 = inlined_call_operand.vmem [shape: f32[2,1,96], index: 5, kind: input, shape index: {}]   ;;  %s3276_s6 = inlined_call_operand.vmem [shape: bf16[2,32,32], index: 6, kind: input, shape index: {}]   ;;  %s3277_s7 = inlined_call_operand.vmem [shape: f32[2,1,32], index: 7, kind: input, shape index: {}]   ;;  %s3278_s8 = inlined_call_operand.vmem [shape: f32[2,1,32], index: 8, kind: input, shape index: {}]   ;;  %s3279_s9 = inlined_call_operand.vmem [shape: f32[2,1,32], index: 9, kind: input, shape index: {}]   ;;  %s3280_s10 = inlined_call_operand.vmem [shape: bf16[2,32,128], index: 10, kind: input, shape index: {}]   ;;  %s3281_s11 = inlined_call_operand.vmem [shape: f32[2,1,128], index: 11, kind: input, shape index: {}]   ;;  %s3282_s12 = inlined_call_operand.vmem [shape: bf16[2,128,32], index: 12, kind: input, shape index: {}]   ;;  %s3283_s13 = inlined_call_operand.vmem [shape: f32[2,1,32], index: 13, kind: input, shape index: {}]   ;;  %s3284_s14 = inlined_call_operand.vmem [shape: bf16[2,2,12,32], index: 14, kind: input, shape index: {}]   ;;  %s3285_s15 = inlined_call_operand.vmem [shape: bf16[2,2,12,32], index: 15, kind: input, shape index: {}]   ;;  %s3286_s16 = inlined_call_operand.vmem [shape: f32[2,1,32], index: 16, kind: output, shape index: {0}]   ;;  %s3287_s17 = inlined_call_operand.vmem [shape: bf16[2,2,1,32], index: 17, kind: output, shape index: {1}]   ;;  %s3288_s18 = inlined_call_operand.vmem [shape: bf16[2,2,1,32], index: 18, kind: output, shape index: {2}]  }
   0x1   :  { %3294 = sst [smem:[#allocation12_spill]] %s3270_s0  ;;  %s2880_s0 = smov 0  }
   0x2   :  { %3295 = sst [smem:[#allocation13_spill]] %s3271_s1  ;;  %s3309_s29 = sld [smem:[#allocation12_spill]] }
   0x3   :  { %3296 = sst [smem:[#allocation14_spill]] %s3272_s2  ;;  %s2884_s1 = smov 0  }
   0x4   :  { %3297 = sst [smem:[#allocation15_spill]] %s3274_s4  ;;  %s2886_s20 = smov 0  }
   0x5   :  { %3298 = sst [smem:[#allocation16_spill]] %s3275_s5 }
   0x6   :  { %3299 = sst [smem:[#allocation17_spill]] %s3276_s6 }
   0x7   :  { %3300 = sst [smem:[#allocation18_spill]] %s3279_s9 }
   0x8   :  { %3301 = sst [smem:[#allocation19_spill]] %s3280_s10 }
   0x9   :  { %3302 = sst [smem:[#allocation20_spill]] %s3281_s11 }
   0xa   :  { %3303 = sst [smem:[#allocation21_spill]] %s3282_s12 }
   0xb   :  { %3304 = sst [smem:[#allocation22_spill]] %s3283_s13 }
   0xc   :  { %3305 = sst [smem:[#allocation23_spill]] %s3284_s14 }
   0xd   :  { %3306 = sst [smem:[#allocation24_spill]] %s3285_s15 }
   0xe   :  { %3307 = sst [smem:[#allocation25_spill]] %s3287_s17 }
   0xf   :  { %3308 = sst [smem:[#allocation26_spill]] %s3288_s18 }
  0x10   :  { %24 = sst [smem:[#allocation3]] %s3309_s29 }
  0x11 LB: > { %3310 = sst [smem:[#allocation4_spill]] %s2747_s30  ;;  %s39_s21 = sadd.s32 1, %s2755_s19  ;;  %s2763_s20 = sphi %s2886_s20, %s30_s20   ;;  %s2759_s1 = sphi %s2884_s1, %s3357_s1   ;;  %s2755_s19 = sphi %s2882_s19, %s3356_s19   ;;  %s2751_s0 = sphi %s2880_s0, %s3355_s0   ;;  %s2747_s30 = sphi %s2878_s30, %s3354_s30  }
  0x12   : > { %3311 = sst [smem:[#allocation5_spill]] %s2755_s19  ;;  %s42_s22 = sadd.s32 1, %s2759_s1 }
  0x13   : > { %3312 = sst [smem:[#allocation6_spill]] %s2759_s1  ;;  %p40_p0 = scmp.ge.s32.totalorder %s39_s21, 2 }
  0x14   : > { %3313 = sst [smem:[#allocation7_spill]] %s2763_s20  ;;  %p2453_p1 = scmp.ge.s32.totalorder %s2763_s20, 1 }
  0x15   : > { %p668_p2 = scmp.lt.s32.totalorder %s2763_s20, 5  ;;  %s3359_s21 = smov (%p40_p0, %s39_s21), 0 }
  0x16   : > { %3314 = sst [smem:[#allocation8_spill]] %s3359_s21  ;;  %s3361_s22 = smov (!%p40_p0, %s42_s22), %s2759_s1 }
  0x17   : > { %p669_p3 = pnand %p2453_p1, %p668_p2  ;;  %p44_p4 = scmp.ge.s32.totalorder %s3361_s22, 2 }
  0x19   : > { %s3363_s22 = smov (%p44_p4, %s3361_s22), 0  ;;  %672 = sbr.rel (%p669_p3) target bundleno = 3023 (0xbcf), region = 84 }
  0x1a   : > { %3315 = sst [smem:[#allocation9_spill]] %s3363_s22 }
  0x20   : > { %p794_p5 = scmp.lt.s32.totalorder %s2751_s0, 1  ;;  %p797_p6 = scmp.lt.s32.totalorder %s2747_s30, 1 }
  0x21   : > { %s2911_s2 = sld [smem:[#allocation3]]  ;;  %s3317_s26 = sld [smem:[#allocation13_spill]] }
  0x22   : > { %s3365_s0 = smov (!%p794_p5, %s2751_s0), 1  ;;  %s3320_s4 = sld [smem:[#allocation15_spill]] }
  0x23   : > { %s2916_s23 = scalar_select %p797_p6, %s2747_s30, 1 }
  0x24   : > { %s2462_s28 = sshll.u32 %s3365_s0, 1  ;;  %s3321_s6 = sld [smem:[#allocation17_spill]] }
  0x25   : > { %s2502_s20 = sshll.u32 %s2916_s23, 4  ;;  %s3324_s10 = sld [smem:[#allocation19_spill]] }
  0x26   : > { %s3326_s12 = sld [smem:[#allocation21_spill]]  ;;  %s2468_s17 = sshll.u32 %s2916_s23, 1 }
  0x27   : > { %3316 = sst [smem:[#allocation10_spill]] %s2911_s2  ;;  %s796_s27 = scalar_lea.vmem %s3317_s26, %s3365_s0 }
  0x28   : > { %s2939_s26 = scalar_lea.vmem %s3320_s4, %s2502_s20  ;;  %s2463_s2 = sshll.u32 %s2916_s23, 2 }
  0x29   : > { %s861_s4 = scalar_lea.vmem %s3286_s16, %s3365_s0  ;;  %s867_s14 = sadd.s32 %s2468_s17, %s3365_s0 }
  0x2a   : > { %s2944_s21 = scalar_lea.vmem %s3321_s6, %s2502_s20  ;;  %s3328_s11 = sld [smem:[#allocation23_spill]] }
  0x2b   : > { %3322 = sst [smem:[#allocation11_spill]] %s2944_s21  ;;  %s2961_s5 = scalar_lea.vmem %s3324_s10, %s2502_s20 }
  0x2c   : > { %s2505_s21 = sshll.u32 %s2916_s23, 6  ;;  %s847_s20 = sadd.s32 %s2463_s2, %s2462_s28 }
  0x2d   : > { %s2971_s24 = scalar_lea.vmem %s3326_s12, %s2505_s21  ;;  %s2464_s10 = sshll.u32 %s847_s20, 2 }
  0x2e   : > { %s3329_s19 = sld [smem:[#allocation24_spill]]  ;;  %s3330_s18 = sld [smem:[#allocation25_spill]] }
  0x2f   : > { %s3331_s15 = sld [smem:[#allocation26_spill]]  ;;  %s3332_s20 = sld [smem:[#allocation4_spill]] }
  0x30   : > { %s2987_s9 = scalar_lea.vmem %s3328_s11, %s2464_s10 }
  0x34   : > { %s2992_s12 = scalar_lea.vmem %s3329_s19, %s2464_s10  ;;  %s2997_s13 = scalar_lea.vmem %s3330_s18, %s867_s14 }
  0x35   : > { %s3002_s2 = scalar_lea.vmem %s3331_s15, %s867_s14  ;;  %p2470_p7 = scmp.ne.s32.totalorder %s3332_s20, 0 }
  0x36   : > { %v884_v0 = vld [vmem:[%s796_s27] sm:$0x1] (!%p2470_p7)  ;;  %vm885_vm0 = vcmask (!%p2470_p7), 253952  }
  0x37   : > { %883 = sbr.rel (%p2470_p7) target bundleno = 62 (0x3e), region = 88  ;;  %886 = vst.msk [vmem:[#allocation2] sm:$0x1] (!%p2470_p7), %vm885_vm0, %v884_v0 }
  0x3e PF: > { %v3005_v1 = vld [vmem:[#allocation2] sm:$0x1]  ;;  %vm890_vm1 = vcmask 253952   ;;  %v2765_v9 = vmov 0.0   ;;  %vm2766_vm2 = vmmov 0   ;;  %v2688_v10 = vld [vmem:[%s2939_s26 + $0x8] sm:$0xff]   ;;  %s3336_s22 = scalar_lea.vmem %s3273_s3, %s2916_s23  ;;  %v974_v22 = vlaneseq }
  0x3f   : > { %v891_v2 = vsel %vm890_vm1, %v3005_v1, 0.0  ;;  %v2687_v8 = vld [vmem:[%s2939_s26] sm:$0xff]   ;;  %2540 = vmatprep.subr.bf16.mxu1 %v2765_v9  ;;  %2544 = vmatprep.mubr.msk.bf16.mxu1 %vm2766_vm2, %v2765_v9  ;;  %s2767_s6 = smov 32   ;;  %s3333_s10 = sld [smem:[#allocation10_spill]]  ;;  %vm925_vm3 = vcmask 261120   ;;  %v2768_v27 = vmov 0  }
  0x40   : > { %892 = vadd.xlane.f32.xlu0 %v891_v2  ;;  %2541 = vmatpush3.bf16.msra.mxu1 %v2687_v8  ;;  %v2689_v11 = vld [vmem:[%s2987_s9] sm:$0x3f]   ;;  %s3334_s26 = sld [smem:[#allocation14_spill]]  ;;  %v3036_v23 = vshrl.u32 %v974_v22, 7  ;;  %s3337_s29 = sld [smem:[#allocation16_spill]]  ;;  %vm1197_vm9 = vcmask 1043456  }
  0x41   : > { %2560 = vmatprep.subr.bf16.mxu0 %v2765_v9  ;;  %2542 = vmatprep.subr.bf16.mxu1 %v2765_v9  ;;  %v889_v18 = vld [vmem:[%s3336_s22] sm:$0x1]  ;;  %s2769_s1 = smov 112   ;;  %s2770_s25 = smov 120   ;;  %v2774_v53 = vmov 1983009808  }
  0x42   : > { %2562 = vmatprep.mubr.msk.bf16.mxu0 %vm2766_vm2, %v2765_v9  ;;  %1032 = vrot.lane.b32.xlu1 %v2689_v11, %s2767_s6  ;;  %v1002_v24 = vadd.s32 8, %v3036_v23  ;;  %v1017_v37 = vsub.s32 0, %v3036_v23  ;;  %s2771_s30 = smov 104   ;;  %s2772_s28 = smov 96   ;;  %v2690_v51 = vld [vmem:[%s2992_s12] sm:$0x3f]   ;;  %v1062_v54 = vunpack.c.l.s4 %v2774_v53 }
  0x43   : > { %s2773_s15 = smov 64   ;;  %v2775_v57 = vmov 1934713408   ;;  %vm1193_vm10 = vcmask 64512   ;;  %vm1385_vm12 = vcmask 90112   ;;  %vm1510_vm13 = vcmask 97280  }
  0x44   : > { %2543 = vmatpush3.bf16.msra.mxu1 %v2688_v10  ;;  %v1063_v56 = vunpack.c.0.s8 %v1062_v54  ;;  %v1078_v58 = vunpack.c.l.s4 %v2775_v57  ;;  %s3341_s12 = sld [smem:[#allocation11_spill]]  ;;  %s2776_s20 = smov 8   ;;  %vm1884_vm14 = vcmask 130048   ;;  %vm1886_vm15 = vcmask 195584  }
  0x45   : > { %2548 = vmatprep.subr.bf16.mxu1 %v2765_v9  ;;  %v3040_v25 = vstv %s3333_s10  ;;  %s2777_s6 = smov 16   ;;  %s2778_s10 = smov 24   ;;  %vm989_vm0 = vsmask.f32 256 }
  0x46   : > { %s3335_s18 = scalar_lea.vmem %s3334_s26, %s2916_s23  ;;  %vm1004_vm4 = vcmp.eq.s32.totalorder %v3036_v23, %v3040_v25  ;;  %vm1005_vm5 = vcmp.eq.s32.totalorder %v1002_v24, %v3040_v25  ;;  %s3338_s19 = scalar_lea.vmem %s3337_s29, %s2916_s23  ;;  %v3081_v60 = vsub.s32 %v1063_v56, %v3036_v23  ;;  %v1079_v62 = vunpack.c.0.s8 %v1078_v58 }
  0x47   : > { %v888_v16 = vld [vmem:[%s3335_s18] sm:$0x1]  ;;  %vm1019_vm6 = vmpackc.low %vm1004_vm4, %vm1004_vm4  ;;  %s3342_s26 = scalar_lea.vmem %s3277_s7, %s2916_s23  ;;  %s3345_s18 = scalar_lea.vmem %s3278_s8, %s2916_s23 }
  0x48   : > { %vm1020_vm7 = vmpackc.low %vm1005_vm5, %vm1005_vm5  ;;  %v912_v26 = vld [vmem:[%s3338_s19] sm:$0x1]  ;;  %v1021_v28 = vsel %vm1019_vm6, 65537, %v2768_v27  ;;  %s3346_s22 = sld [smem:[#allocation18_spill]]  ;;  %s3348_s29 = sld [smem:[#allocation20_spill]] }
  0x49   : > { %v1022_v29 = vsel %vm1020_vm7, 65537, %v2768_v27 }
  0x4a   : > { %v2474_v34 = vcombine.low %v1021_v28, %v1022_v29  ;;  %v1048_v29 = vand.u32 127, %v974_v22 }
  0x4c   : > { %vm3057_vm8 = vcmp.ne.s16.totalorder %v2474_v34, 0  ;;  %vm1049_vm11 = vcmp.le.s32.totalorder %v1048_v29, %v3040_v25 }
  0x4e   : > { %s3347_s9 = scalar_lea.vmem %s3346_s22, %s2916_s23  ;;  %s3349_s19 = scalar_lea.vmem %s3348_s29, %s2916_s23 }
  0xb4   : > { %v1033_v39 = vpop.permute.xlu1 %1032 }
  0xcd   : > { %v893_v3 = vpop.xlane.xlu0 %892 }
  0xce   : > { %v895_v4 = vmul.f32 0.03125, %v893_v3  ;;  %v3085_v3 = vsub.s32 %v1079_v62, %v3036_v23 }
  0xd0   : > { %v896_v5 = vsub.f32 %v3005_v1, %v895_v4 }
  0xd2   : > { %v897_v6 = vmul.f32 %v896_v5, %v896_v5 }
  0xd4   : > { %v898_v7 = vsel %vm890_vm1, %v897_v6, 0.0 }
  0xd5   : > { %899 = vadd.xlane.f32.xlu0 %v898_v7 }
 0x162   : > { %v900_v12 = vpop.xlane.xlu0 %899 }
 0x163   : > { %v901_v13 = vmul.f32 0.03125, %v900_v12 }
 0x165   : > { %v902_v14 = vadd.f32 1e-05, %v901_v13 }
 0x167   : > { %2703 = vrsqrt.f32 %v902_v14 }
 0x171   : > { %v2704_v15 = vpop.eup %2703 }
 0x172   : > { %v904_v17 = vmul.f32 %v2704_v15, %v896_v5 }
 0x174   : > { %v905_v19 = vmul.f32 %v904_v17, %v888_v16 }
 0x176   : > { %v906_v20 = vadd.f32 %v905_v19, %v889_v18 }
 0x178   : > { %v907_v21 = vpack.c.bf16 %v906_v20, %v906_v20 }
 0x17a   : > { %2545 = vmatmul.mubr.msk.bf16.vlgmr.msra.gmra.mrb[0].mxu1 %vm925_vm3, %v907_v21 }
 0x17b   : > { %2550 = vmatprep.mubr.msk.bf16.mxu1 %vm2766_vm2, %v2765_v9 }
 0x24d   : > { %v963_v30 = vpop.f32.mrb[0].mxu1 }
 0x24e   : > { %v964_v31 = vadd.f32 %v963_v30, %v912_v26  ;;  %v2546_v32 = vpop.f32.mrb[1].mxu1 }
 0x24f   : > { %v966_v33 = vpop.f32.mrb[2].mxu1 }
 0x250   : > { %v2547_v35 = vpop.f32.mrb[3].mxu1  ;;  %v3052_v36 = vpack.c.bf16 %v964_v31, %v964_v31 }
 0x252   : > { %v1013_v38 = vpack.i.b16 %v3052_v36, %v3052_v36 }
 0x254   : > { %v3061_v41 = vrot.slane %v1013_v38, %v1017_v37 }
 0x256   : > { %v1035_v42 = vsel %vm3057_vm8, %v3061_v41, %v1033_v39 }
 0x257   : > { %1087 = vrot.lane.b32.xlu0 %v1035_v42, %s2769_s1  ;;  %1085 = vrot.lane.b32.xlu1 %v1035_v42, %s2770_s25 }
 0x25b   : > { %1054 = vrot.lane.b32.xlu0 %v964_v31, %s2769_s1  ;;  %1089 = vrot.lane.b32.xlu1 %v1035_v42, %s2771_s30 }
 0x25f   : > { %1117 = vrot.lane.b32.xlu1 %v1035_v42, %s2772_s28 }
 0x2c9   : > { %v1086_v43 = vpop.permute.xlu1 %1085  ;;  %v1088_v44 = vpop.permute.xlu0 %1087 }
 0x2ca   : > { %1119 = vrot.lane.b32.xlu1 %v1086_v43, %s2772_s28 }
 0x2cd   : > { %v1090_v45 = vpop.permute.xlu1 %1089  ;;  %v1055_v47 = vpop.permute.xlu0 %1054 }
 0x2ce   : > { %1121 = vrot.lane.b32.xlu1 %v1088_v44, %s2772_s28  ;;  %v1060_v61 = vcombine.low %v964_v31, %v1055_v47 }
 0x2d0   : > { %v1067_v2 = vrot.slane %v1060_v61, %v3081_v60 }
 0x2d1   : > { %v1118_v46 = vpop.permute.xlu1 %1117 }
 0x2d2   : > { %1123 = vrot.lane.b32.xlu1 %v1090_v45, %s2772_s28  ;;  %1129 = vxpose.xlu0.c.b16.start.end [1/1] (short) (narrow) %v1118_v46, 16 }
 0x2d6   : > { %1051 = vrot.lane.b32.xlu1 %v964_v31, %s2770_s25 }
 0x2da   : > { %1057 = vrot.lane.b32.xlu1 %v964_v31, %s2771_s30 }
 0x338   : > { %v1137_v48 = vpop.trf.xlu0 }
 0x339   : > { %v1199_v49 = vsel %vm1197_vm9, %v1137_v48, 0 }
 0x33a   : > { %2549 = vmatpush3.bf16.msra.mxu1 %v1199_v49 }
 0x33b   : > { %2554 = vmatprep.subr.bf16.mxu1 %v2765_v9 }
 0x33c   : > { %v1120_v50 = vpop.permute.xlu1 %1119 }
 0x33d   : > { %1145 = vxpose.xlu1.c.b16.start.end [1/1] (short) (narrow) %v1120_v50, 16 }
 0x340   : > { %v1122_v52 = vpop.permute.xlu1 %1121 }
 0x341   : > { %1043 = vrot.lane.b32.xlu1 %v2690_v51, %s2773_s15  ;;  %1161 = vxpose.xlu0.c.b16.start.end [1/1] (short) (narrow) %v1122_v52, 16 }
 0x344   : > { %v1124_v55 = vpop.permute.xlu1 %1123 }
 0x345   : > { %1177 = vxpose.xlu0.c.b16.start.end [1/1] (short) (narrow) %v1124_v55, 16 }
 0x348   : > { %v1052_v59 = vpop.permute.xlu1 %1051 }
 0x34c   : > { %v1058_v63 = vpop.permute.xlu1 %1057 }
 0x34d   : > { %v1068_v0 = vcombine.low %v1052_v59, %v1058_v63 }
 0x34f   : > { %v1075_v4 = vrot.slane %v1068_v0, %v3081_v60 }
 0x351   : > { %v1076_v5 = vcombine.low %v1067_v2, %v1075_v4 }
 0x353   : > { %v1083_v6 = vrot.slane %v1076_v5, %v3085_v3 }
 0x355   : > { %v1098_v7 = vpack.c.bf16 %v1083_v6, %v1083_v6 }
 0x357   : > { %v1105_v8 = vrot.slane %v1098_v7, %v3085_v3 }
 0x359   : > { %v1109_v10 = vpack.i.b16 %v2768_v27, %v1105_v8  ;;  %v1110_v11 = vshrl.u32 %v1105_v8, 16  ;;  %v1106_v15 = vcombine.high %v1105_v8, %v2768_v27 }
 0x35b   : > { %2551 = vmatmul.mubr.msk.bf16.vlgmr.msra.gmra.mrb[4].mxu1 %vm1193_vm10, %v1109_v10  ;;  %v1112_v14 = vpack.i.b16 %v2768_v27, %v1110_v11  ;;  %v1114_v18 = vpack.i.b16 %v2768_v27, %v1106_v15  ;;  %v1115_v19 = vshrl.u32 %v1106_v15, 16 }
 0x35c   : > { %2556 = vmatprep.mubr.msk.bf16.mxu1 %vm2766_vm2, %v2765_v9 }
 0x35d   : > { %v1116_v24 = vpack.i.b16 %v2768_v27, %v1115_v19 }
 0x3a3   : > { %v1153_v12 = vpop.trf.xlu1 }
 0x3a4   : > { %v1245_v13 = vsel %vm1197_vm9, %v1153_v12, 0 }
 0x3a5   : > { %2555 = vmatpush3.bf16.msra.mxu1 %v1245_v13 }
 0x3a6   : > { %2566 = vmatprep.subr.bf16.mxu1 %v2765_v9 }
 0x3a7   : > { %v1169_v16 = vpop.trf.xlu0 }
 0x3a8   : > { %2557 = vmatmul.mubr.msk.bf16.vlgmr.msra.gmra.mrb[8].mxu1 %vm1193_vm10, %v1112_v14  ;;  %v1291_v17 = vsel %vm1197_vm9, %v1169_v16, 0 }
 0x3a9   : > { %2561 = vmatpush3.bf16.msra.mxu0 %v1291_v17  ;;  %2568 = vmatprep.mubr.msk.bf16.mxu1 %vm2766_vm2, %v2765_v9 }
 0x3aa   : > { %2572 = vmatprep.subr.bf16.mxu0 %v2765_v9 }
 0x3ab   : > { %v1185_v20 = vpop.trf.xlu0 }
 0x3ac   : > { %v1337_v21 = vsel %vm1197_vm9, %v1185_v20, 0  ;;  %2563 = vmatmul.mubr.msk.bf16.vlgmr.msra.gmra.mrb[0].mxu0 %vm1193_vm10, %v1114_v18 }
 0x3ad   : > { %2567 = vmatpush3.bf16.msra.mxu1 %v1337_v21  ;;  %2574 = vmatprep.mubr.msk.bf16.mxu0 %vm2766_vm2, %v2765_v9 }
 0x3ae   : > { %2578 = vmatprep.subr.bf16.mxu1 %v2765_v9 }
 0x3b0   : > { %2569 = vmatmul.mubr.msk.bf16.vlgmr.msra.gmra.mrb[12].mxu1 %vm1193_vm10, %v1116_v24 }
 0x3b1   : > { %2580 = vmatprep.mubr.msk.bf16.mxu1 %vm2766_vm2, %v2765_v9 }
 0x3b3   : > { %v1044_v26 = vpop.permute.xlu1 %1043 }
 0x3b4   : > { %v1046_v28 = vsel %vm3057_vm8, %v3061_v41, %v1044_v26 }
 0x3b5   : > { %1092 = vrot.lane.b32.xlu0 %v1046_v28, %s2770_s25  ;;  %s3350_s25 = sld [smem:[#allocation22_spill]] }
 0x427   : > { %v1093_v53 = vpop.permute.xlu0 %1092 }
 0x42e   : > { %v1235_v27 = vpop.f32.mrb[4].mxu1 }
 0x42f   : > { %v1381_v30 = vsel %vm1049_vm11, %v1235_v27, -1e+30  ;;  %v2552_v31 = vpop.f32.mrb[5].mxu1 }
 0x430   : > { %v1238_v32 = vpop.f32.mrb[6].mxu1  ;;  %v1386_v33 = vsel %vm1385_vm12, %v1381_v30, -inf }
 0x431   : > { %1387 = vmax.xlane.f32.xlu0 %v1386_v33  ;;  %v2553_v34 = vpop.f32.mrb[7].mxu1 }
 0x447   : > { %1096 = vrot.lane.b32.xlu0 %v1046_v28, %s2771_s30  ;;  %s3351_s30 = scalar_lea.vmem %s3350_s25, %s2916_s23 }
 0x44b   : > { %1434 = vrot.lane.b32.xlu0 %v1046_v28, %s2773_s15 }
 0x47b   : > { %v1281_v35 = vpop.f32.mrb[8].mxu1 }
 0x47c   : > { %v1382_v22 = vsel %vm1049_vm11, %v1281_v35, -1e+30  ;;  %v2558_v37 = vpop.f32.mrb[9].mxu1 }
 0x47d   : > { %v1284_v38 = vpop.f32.mrb[10].mxu1  ;;  %v1389_v39 = vsel %vm1385_vm12, %v1382_v22, -inf }
 0x47e   : > { %1390 = vmax.xlane.f32.xlu1 %v1389_v39  ;;  %v2559_v40 = vpop.f32.mrb[11].mxu1 }
 0x47f   : > { %v1327_v41 = vpop.f32.mrb[0].mxu0 }
 0x480   : > { %v1383_v42 = vsel %vm1049_vm11, %v1327_v41, -1e+30  ;;  %v2564_v43 = vpop.f32.mrb[1].mxu0 }
 0x481   : > { %v1330_v44 = vpop.f32.mrb[2].mxu0  ;;  %v1392_v45 = vsel %vm1385_vm12, %v1383_v42, -inf }
 0x482   : > { %v2565_v46 = vpop.f32.mrb[3].mxu0  ;;  %1393 = vmax.xlane.f32.xlu0 %v1392_v45 }
 0x483   : > { %v1373_v47 = vpop.f32.mrb[12].mxu1 }
 0x484   : > { %v1384_v48 = vsel %vm1049_vm11, %v1373_v47, -1e+30  ;;  %v2570_v49 = vpop.f32.mrb[13].mxu1 }
 0x485   : > { %v1376_v50 = vpop.f32.mrb[14].mxu1  ;;  %v1395_v51 = vsel %vm1385_vm12, %v1384_v48, -inf }
 0x486   : > { %1396 = vmax.xlane.f32.xlu0 %v1395_v51  ;;  %v2571_v52 = vpop.f32.mrb[15].mxu1 }
 0x48f   : > { %1094 = vrot.lane.b32.xlu1 %v1046_v28, %s2769_s1 }
 0x49c   : > { %1436 = vrot.lane.b32.xlu0 %v1093_v53, %s2773_s15 }
 0x4be   : > { %v1388_v54 = vpop.xlane.xlu0 %1387 }
 0x4bf   : > { %v1398_v55 = vsub.f32 %v1381_v30, %v1388_v54 }
 0x4c1   : > { %v1402_v56 = vmul.f32 1.442695, %v1398_v55 }
 0x4c2   : > { %v1097_v59 = vpop.permute.xlu0 %1096 }
 0x4c3   : > { %2705 = vpow2.f32 %v1402_v56 }
 0x4c6   : > { %v1435_v0 = vpop.permute.xlu0 %1434 }
 0x4cd   : > { %v2706_v57 = vpop.eup %2705 }
 0x4ce   : > { %v1410_v58 = vsel %vm1385_vm12, %v2706_v57, 0.0 }
 0x4cf   : > { %1411 = vadd.xlane.f32.xlu0 %v1410_v58 }
 0x50b   : > { %v1391_v25 = vpop.xlane.xlu1 %1390 }
 0x50c   : > { %v1399_v61 = vsub.f32 %v1382_v22, %v1391_v25 }
 0x50e   : > { %v1404_v62 = vmul.f32 1.442695, %v1399_v61 }
 0x50f   : > { %v1095_v63 = vpop.permute.xlu1 %1094  ;;  %v1394_v2 = vpop.xlane.xlu0 %1393 }
 0x510   : > { %2707 = vpow2.f32 %v1404_v62  ;;  %1438 = vrot.lane.b32.xlu0 %v1095_v63, %s2773_s15  ;;  %v1400_v4 = vsub.f32 %v1383_v42, %v1394_v2 }
 0x512   : > { %v1406_v7 = vmul.f32 1.442695, %v1400_v4 }
 0x513   : > { %v1397_v11 = vpop.xlane.xlu0 %1396 }
 0x514   : > { %2709 = vpow2.f32 %v1406_v7  ;;  %v1401_v12 = vsub.f32 %v1384_v48, %v1397_v11 }
 0x516   : > { %v1408_v13 = vmul.f32 1.442695, %v1401_v12 }
 0x517   : > { %v1437_v16 = vpop.permute.xlu0 %1436 }
 0x518   : > { %2711 = vpow2.f32 %v1408_v13 }
 0x51a   : > { %v2708_v5 = vpop.eup %2707 }
 0x51b   : > { %v1413_v6 = vsel %vm1385_vm12, %v2708_v5, 0.0 }
 0x51c   : > { %1414 = vadd.xlane.f32.xlu1 %v1413_v6 }
 0x51e   : > { %v2710_v8 = vpop.eup %2709 }
 0x51f   : > { %v1416_v10 = vsel %vm1385_vm12, %v2710_v8, 0.0 }
 0x522   : > { %v2712_v14 = vpop.eup %2711 }
 0x523   : > { %v1419_v15 = vsel %vm1385_vm12, %v2712_v14, 0.0 }
 0x52d   : > { %1440 = vrot.lane.b32.xlu1 %v1097_v59, %s2773_s15 }
 0x52f   : > { %1417 = vadd.xlane.f32.xlu0 %v1416_v10  ;;  %v2692_v10 = vld [vmem:[%s3341_s12 + $0x8] sm:$0xff]  }
 0x551   : > { %1420 = vadd.xlane.f32.xlu1 %v1419_v15 }
 0x55c   : > { %1446 = vxpose.xlu0.c.b16.start.end [1/1] (short) (narrow) %v1435_v0, 16  ;;  %v1412_v17 = vpop.xlane.xlu0 %1411 }
 0x55d   : > { %2713 = vrcp.f32 %v1412_v17 }
 0x567   : > { %v2714_v18 = vpop.eup %2713 }
 0x568   : > { %v1426_v19 = vmul.f32 %v2714_v18, %v2706_v57 }
 0x56a   : > { %v1430_v20 = vpack.c.bf16 %v1426_v19, %v1426_v19 }
 0x56c   : > { %v1515_v21 = vsel %vm1510_vm13, %v1430_v20, 0 }
 0x56d   : > { %2573 = vmatpush3.bf16.xpose.msra.mxu0 %v1515_v21 }
 0x56e   : > { %2584 = vmatprep.subr.bf16.mxu0 %v2765_v9 }
 0x57e   : > { %1462 = vxpose.xlu1.c.b16.start.end [1/1] (short) (narrow) %v1437_v16, 16 }
 0x582   : > { %v1439_v24 = vpop.permute.xlu0 %1438 }
 0x583   : > { %1478 = vxpose.xlu0.c.b16.start.end [1/1] (short) (narrow) %v1439_v24, 16 }
 0x5a9   : > { %v1415_v26 = vpop.xlane.xlu1 %1414 }
 0x5aa   : > { %2715 = vrcp.f32 %v1415_v26 }
 0x5ad   : > { %v1441_v28 = vpop.permute.xlu1 %1440 }
 0x5ae   : > { %1494 = vxpose.xlu0.c.b16.start.end [1/1] (short) (narrow) %v1441_v28, 16 }
 0x5b4   : > { %v2716_v29 = vpop.eup %2715 }
 0x5b5   : > { %v1427_v27 = vmul.f32 %v2716_v29, %v2708_v5  ;;  %v2691_v5 = vld [vmem:[%s3341_s12] sm:$0xff]  }
 0x5b7   : > { %v1431_v30 = vpack.c.bf16 %v1427_v27, %v1427_v27 }
 0x5b9   : > { %v1561_v31 = vsel %vm1510_vm13, %v1431_v30, 0 }
 0x5ba   : > { %2579 = vmatpush3.bf16.xpose.msra.mxu1 %v1561_v31 }
 0x5bb   : > { %2590 = vmatprep.subr.bf16.mxu1 %v2765_v9 }
 0x5bc   : > { %v1418_v32 = vpop.xlane.xlu0 %1417 }
 0x5bd   : > { %2717 = vrcp.f32 %v1418_v32 }
 0x5c2   : > { %v1454_v33 = vpop.trf.xlu0 }
 0x5c3   : > { %2575 = vmatmul.mubr.msk.bf16.vlgmr.msra.gmra.mrb[4].mxu0 %vm1510_vm13, %v1454_v33 }
 0x5c4   : > { %2586 = vmatprep.mubr.msk.bf16.mxu0 %vm2766_vm2, %v2765_v9 }
 0x5c7   : > { %v2718_v34 = vpop.eup %2717 }
 0x5c8   : > { %v1428_v35 = vmul.f32 %v2718_v34, %v2710_v8 }
 0x5ca   : > { %v1432_v22 = vpack.c.bf16 %v1428_v35, %v1428_v35  ;;  %v2779_v35 = vmov 1966171168  }
 0x5cc   : > { %v1607_v37 = vsel %vm1510_vm13, %v1432_v22, 0  ;;  %v972_v22 = vunpack.c.l.s4 %v2779_v35 }
 0x5cd   : > { %2585 = vmatpush3.bf16.xpose.msra.mxu0 %v1607_v37 }
 0x5ce   : > { %2596 = vmatprep.subr.bf16.mxu0 %v2765_v9  ;;  %v973_v37 = vunpack.c.0.s8 %v972_v22 }
 0x5de   : > { %v1421_v38 = vpop.xlane.xlu1 %1420 }
 0x5df   : > { %2719 = vrcp.f32 %v1421_v38  ;;  %v976_v38 = vsub.s32 %v973_v37, %v3036_v23 }
 0x5e4   : > { %v1470_v39 = vpop.trf.xlu1 }
 0x5e5   : > { %2581 = vmatmul.mubr.msk.bf16.vlgmr.msra.gmra.mrb[16].mxu1 %vm1510_vm13, %v1470_v39  ;;  %v977_v39 = vrot.slane %v3052_v36, %v976_v38 }
 0x5e6   : > { %2592 = vmatprep.mubr.msk.bf16.mxu1 %vm2766_vm2, %v2765_v9 }
 0x5e9   : > { %v2720_v40 = vpop.eup %2719  ;;  %v1486_v41 = vpop.trf.xlu0 }
 0x5ea   : > { %v1429_v42 = vmul.f32 %v2720_v40, %v2712_v14  ;;  %2587 = vmatmul.mubr.msk.bf16.vlgmr.msra.gmra.mrb[8].mxu0 %vm1510_vm13, %v1486_v41  ;;  %v984_v40 = vrot.slane %v977_v39, %v976_v38 }
 0x5eb   : > { %2600 = vmatprep.mubr.msk.bf16.mxu0 %vm2766_vm2, %v2765_v9  ;;  %2597 = vmatpush3.bf16.msra.mxu0 %v2691_v5  ;;  %v2700_v5 = vld [vmem:[%s2971_s24 + $0x28] sm:$0xff]  }
 0x5ec   : > { %v1433_v43 = vpack.c.bf16 %v1429_v42, %v1429_v42  ;;  %2598 = vmatprep.subr.bf16.mxu0 %v2765_v9 }
 0x5ee   : > { %v1653_v44 = vsel %vm1510_vm13, %v1433_v43, 0  ;;  %v991_v43 = vld [vmem:[%s2997_s13] sm:$0x1] }
 0x5ef   : > { %2591 = vmatpush3.bf16.xpose.msra.mxu1 %v1653_v44  ;;  %2599 = vmatpush3.bf16.msra.mxu0 %v2692_v10 }
 0x5f0   : > { %2604 = vmatprep.subr.bf16.mxu1 %v2765_v9  ;;  %2612 = vmatprep.subr.bf16.mxu0 %v2765_v9 }
 0x614   : > { %v1502_v45 = vpop.trf.xlu0 }
 0x615   : > { %2593 = vmatmul.mubr.msk.bf16.vlgmr.msra.gmra.mrb[20].mxu1 %vm1510_vm13, %v1502_v45 }
 0x616   : > { %2608 = vmatprep.mubr.msk.bf16.mxu1 %vm2766_vm2, %v2765_v9 }
 0x696   : > { %v1551_v46 = vpop.f32.mrb[4].mxu0 }
 0x697   : > { %v2576_v47 = vpop.f32.mrb[5].mxu0  ;;  %1695 = vxpose.xlu1.b32.start.end [1/1] (short) (narrow) %v1551_v46, 8 }
 0x698   : > { %v1554_v48 = vpop.f32.mrb[6].mxu0  ;;  %v2693_v47 = vld [vmem:[%s2961_s5] sm:$0xff]  }
 0x699   : > { %v2577_v49 = vpop.f32.mrb[7].mxu0  ;;  %2605 = vmatpush3.bf16.msra.mxu1 %v2693_v47  ;;  %v2694_v48 = vld [vmem:[%s2961_s5 + $0x8] sm:$0xff]  }
 0x69a   : > { %2606 = vmatprep.subr.bf16.mxu1 %v2765_v9  ;;  %v2695_v49 = vld [vmem:[%s2971_s24] sm:$0xff]  }
 0x69d   : > { %2607 = vmatpush3.bf16.msra.mxu1 %v2694_v48 }
 0x6b8   : > { %v1597_v50 = vpop.f32.mrb[16].mxu1 }
 0x6b9   : > { %1727 = vxpose.xlu0.b32.start.end [1/1] (short) (narrow) %v1597_v50, 8  ;;  %v2582_v51 = vpop.f32.mrb[17].mxu1 }
 0x6ba   : > { %v1600_v52 = vpop.f32.mrb[18].mxu1 }
 0x6bb   : > { %v2583_v53 = vpop.f32.mrb[19].mxu1  ;;  %v997_v52 = vld [vmem:[%s3002_s2] sm:$0x1] }
 0x6bd   : > { %v1643_v54 = vpop.f32.mrb[8].mxu0 }
 0x6be   : > { %1759 = vxpose.xlu0.b32.start.end [1/1] (short) (narrow) %v1643_v54, 8  ;;  %v2588_v55 = vpop.f32.mrb[9].mxu0 }
 0x6bf   : > { %v1646_v56 = vpop.f32.mrb[10].mxu0 }
 0x6c0   : > { %v2589_v57 = vpop.f32.mrb[11].mxu0 }
 0x6c1   : > { %v1950_v57 = vld [vmem:[%s3345_s18] sm:$0x1] }
 0x6e8   : > { %v1689_v58 = vpop.f32.mrb[20].mxu1 }
 0x6e9   : > { %1791 = vxpose.xlu0.b32.start.end [1/1] (short) (narrow) %v1689_v58, 8  ;;  %v2594_v25 = vpop.f32.mrb[21].mxu1 }
 0x6ea   : > { %v1692_v59 = vpop.f32.mrb[22].mxu1  ;;  %v1951_v25 = vld [vmem:[%s3347_s9] sm:$0x1] }
 0x6eb   : > { %v2595_v61 = vpop.f32.mrb[23].mxu1 }
 0x717   : > { %v1711_v0 = vpop.trf.xlu1 }
 0x739   : > { %v1743_v62 = vpop.trf.xlu0 }
 0x73e   : > { %v1775_v63 = vpop.trf.xlu0 }
 0x73f   : > { %v1823_v2 = vcombine.low %v1711_v0, %v1775_v63  ;;  %v2696_v63 = vld [vmem:[%s2971_s24 + $0x8] sm:$0xff]   ;;  %v2697_v0 = vld [vmem:[%s2971_s24 + $0x10] sm:$0xff]  }
 0x741   : > { %v1830_v7 = vrot.slane %v1823_v2, %v3081_v60  ;;  %v2698_v2 = vld [vmem:[%s2971_s24 + $0x18] sm:$0xff]  }
 0x769   : > { %v1807_v4 = vpop.trf.xlu0 }
 0x76a   : > { %v1831_v6 = vcombine.low %v1743_v62, %v1807_v4  ;;  %v2699_v4 = vld [vmem:[%s2971_s24 + $0x20] sm:$0xff]  }
 0x76c   : > { %v1838_v8 = vrot.slane %v1831_v6, %v3081_v60  ;;  %v2701_v6 = vld [vmem:[%s2971_s24 + $0x30] sm:$0xff]  }
 0x76e   : > { %v1839_v11 = vcombine.low %v1830_v7, %v1838_v8  ;;  %v2702_v7 = vld [vmem:[%s2971_s24 + $0x38] sm:$0xff]   ;;  %v1972_v8 = vld [vmem:[%s3349_s19] sm:$0x1] }
 0x770   : > { %v1846_v12 = vrot.slane %v1839_v11, %v3085_v3 }
 0x772   : > { %v1853_v13 = vrot.slane %v1846_v12, %v3081_v60 }
 0x774   : > { %v1861_v14 = vrot.slane %v1853_v13, %v3085_v3  ;;  %v1854_v15 = vcombine.high %v1853_v13, %v2765_v9 }
 0x776   : > { %v1869_v16 = vcombine.high %v1861_v14, %v2765_v9  ;;  %v1868_v17 = vrot.slane %v1854_v15, %v3085_v3  ;;  %v1893_v3 = vld [vmem:[%s3342_s26] sm:$0x1] }
 0x778   : > { %1872 = vrot.lane.b32.xlu1 %v1869_v16, %s2776_s20  ;;  %1876 = vrot.lane.b32.xlu0 %v1868_v17, %s2777_s6  ;;  %v1870_v18 = vcombine.high %v1868_v17, %v2765_v9 }
 0x77c   : > { %1880 = vrot.lane.b32.xlu1 %v1870_v18, %s2778_s10 }
 0x7ea   : > { %v1873_v19 = vpop.permute.xlu1 %1872  ;;  %v1877_v20 = vpop.permute.xlu0 %1876 }
 0x7eb   : > { %v1883_v60 = vsel %vm1193_vm10, %v1861_v14, %v1873_v19 }
 0x7ec   : > { %v1885_v21 = vsel %vm1884_vm14, %v1883_v60, %v1877_v20 }
 0x7ee   : > { %v1881_v24 = vpop.permute.xlu1 %1880 }
 0x7ef   : > { %v1887_v26 = vsel %vm1886_vm15, %v1885_v21, %v1881_v24 }
 0x7f0   : > { %v1888_v28 = vpack.c.bf16 %v1887_v26, %v1887_v26  ;;  %v2054_v26 = vld [vmem:[%s3351_s30] sm:$0x1] }
 0x7f2   : > { %2601 = vmatmul.mubr.msk.bf16.vlgmr.msra.gmra.mrb[12].mxu0 %vm925_vm3, %v1888_v28 }
 0x7f3   : > { %2628 = vmatprep.mubr.msk.bf16.mxu0 %vm2766_vm2, %v2765_v9  ;;  %vm3192_vm2 = vmand %vm890_vm1, %vm989_vm0  ;;  %2613 = vmatpush3.bf16.msra.mxu0 %v2695_v49 }
 0x7f4   : > { %2614 = vmatprep.subr.bf16.mxu0 %v2765_v9 }
 0x7f7   : > { %2615 = vmatpush3.bf16.msra.mxu0 %v2696_v63 }
 0x7f8   : > { %2616 = vmatprep.subr.bf16.mxu0 %v2765_v9 }
 0x7fb   : > { %2617 = vmatpush3.bf16.msra.mxu0 %v2697_v0 }
 0x7fc   : > { %2618 = vmatprep.subr.bf16.mxu0 %v2765_v9 }
 0x7ff   : > { %2619 = vmatpush3.bf16.msra.mxu0 %v2698_v2 }
 0x800   : > { %2620 = vmatprep.subr.bf16.mxu0 %v2765_v9 }
 0x803   : > { %2621 = vmatpush3.bf16.msra.mxu0 %v2699_v4 }
 0x804   : > { %2622 = vmatprep.subr.bf16.mxu0 %v2765_v9 }
 0x807   : > { %2623 = vmatpush3.bf16.msra.mxu0 %v2700_v5 }
 0x808   : > { %2624 = vmatprep.subr.bf16.mxu0 %v2765_v9 }
 0x80b   : > { %2625 = vmatpush3.bf16.msra.mxu0 %v2701_v6 }
 0x80c   : > { %2626 = vmatprep.subr.bf16.mxu0 %v2765_v9 }
 0x80f   : > { %2627 = vmatpush3.bf16.msra.mxu0 %v2702_v7 }
 0x8c5   : > { %v1943_v29 = vpop.f32.mrb[12].mxu0 }
 0x8c6   : > { %v1944_v27 = vadd.f32 %v1943_v29, %v1893_v3  ;;  %v2602_v30 = vpop.f32.mrb[13].mxu0 }
 0x8c7   : > { %v1946_v31 = vpop.f32.mrb[14].mxu0 }
 0x8c8   : > { %v3184_v32 = vadd.f32 %v1944_v27, %v3005_v1  ;;  %v2603_v33 = vpop.f32.mrb[15].mxu0 }
 0x8ca   : > { %v1952_v34 = vsel %vm890_vm1, %v3184_v32, 0.0 }
 0x8cb   : > { %1953 = vadd.xlane.f32.xlu1 %v1952_v34 }
 0x8dc   : > { %985 = vrot.lane.b32.xlu1 %v984_v40, %s2772_s28  ;;  %s3352_s28 = sld [smem:[#allocation4_spill]] }
 0x8e2   : > { %p2499_p8 = scmp.ne.s32.totalorder %s3352_s28, 1 }
 0x958   : > { %v1954_v1 = vpop.xlane.xlu1 %1953 }
 0x959   : > { %v1955_v41 = vmul.f32 0.03125, %v1954_v1 }
 0x95b   : > { %v1956_v44 = vsub.f32 %v3184_v32, %v1955_v41 }
 0x95c   : > { %v986_v23 = vpop.permute.xlu1 %985 }
 0x95d   : > { %v992_v36 = vsel %vm3192_vm2, %v986_v23, %v991_v43  ;;  %v1957_v45 = vmul.f32 %v1956_v44, %v1956_v44 }
 0x95e   : > { %993 = vst [vmem:[%s2997_s13] sm:$0x1] %v992_v36 }
 0x95f   : > { %v1958_v46 = vsel %vm890_vm1, %v1957_v45, 0.0 }
 0x960   : > { %1959 = vadd.xlane.f32.xlu0 %v1958_v46 }
 0x976   : > { %994 = vrot.lane.b32.xlu0 %v984_v40, %s2773_s15 }
 0x9ed   : > { %v1960_v50 = vpop.xlane.xlu0 %1959 }
 0x9ee   : > { %v1961_v51 = vmul.f32 0.03125, %v1960_v50 }
 0x9f0   : > { %v1962_v53 = vadd.f32 1e-05, %v1961_v51 }
 0x9f1   : > { %v995_v54 = vpop.permute.xlu0 %994 }
 0x9f2   : > { %2721 = vrsqrt.f32 %v1962_v53  ;;  %v998_v55 = vsel %vm3192_vm2, %v995_v54, %v997_v52 }
 0x9f3   : > { %999 = vst [vmem:[%s3002_s2] sm:$0x1] %v998_v55 }
 0x9fc   : > { %v2722_v56 = vpop.eup %2721 }
 0x9fd   : > { %v1964_v58 = vmul.f32 %v2722_v56, %v1956_v44 }
 0x9ff   : > { %v1965_v59 = vmul.f32 %v1964_v58, %v1950_v57 }
 0xa01   : > { %v1966_v61 = vadd.f32 %v1965_v59, %v1951_v25 }
 0xa03   : > { %v1967_v62 = vpack.c.bf16 %v1966_v61, %v1966_v61 }
 0xa05   : > { %2609 = vmatmul.mubr.msk.bf16.vlgmr.msra.gmra.mrb[24].mxu1 %vm925_vm3, %v1967_v62 }
 0xad8   : > { %v2022_v10 = vpop.f32.mrb[24].mxu1 }
 0xad9   : > { %v2023_v11 = vadd.f32 %v2022_v10, %v1972_v8  ;;  %v2610_v12 = vpop.f32.mrb[25].mxu1 }
 0xada   : > { %v2025_v13 = vpop.f32.mrb[26].mxu1 }
 0xadb   : > { %v2029_v14 = vmul.f32 0.044715, %v2023_v11  ;;  %v2611_v15 = vpop.f32.mrb[27].mxu1  ;;  %v2028_v9 = vmul.f32 0.5, %v2023_v11 }
 0xadd   : > { %v2030_v16 = vmul.f32 %v2029_v14, %v2023_v11 }
 0xadf   : > { %v2031_v17 = vmul.f32 %v2030_v16, %v2023_v11 }
 0xae1   : > { %v2032_v18 = vadd.f32 %v2031_v17, %v2023_v11 }
 0xae3   : > { %v2033_v19 = vmul.f32 0.7978846, %v2032_v18 }
 0xae5   : > { %2723 = vtanh.f32 %v2033_v19 }
 0xaef   : > { %v2724_v60 = vpop.eup %2723 }
 0xaf0   : > { %v2035_v20 = vadd.f32 1.0, %v2724_v60 }
 0xaf2   : > { %v2036_v21 = vmul.f32 %v2035_v20, %v2028_v9 }
 0xaf4   : > { %v2037_v24 = vpack.c.bf16 %v2036_v21, %v2036_v21 }
 0xaf6   : > { %2629 = vmatmul.mubr.bf16.vlgmr.msra.gmra.mrb[16].mxu0 %v2037_v24 }
 0xbc8   : > { %2148 = sbr.rel (%p2499_p8) target bundleno = 3023 (0xbcf), region = 92 }
 0xbc9   : > { %v2137_v28 = vpop.f32.mrb[16].mxu0 }
 0xbca   : > { %v2138_v3 = vadd.f32 %v2137_v28, %v2054_v26  ;;  %v2630_v29 = vpop.f32.mrb[17].mxu0 }
 0xbcb   : > { %v2140_v27 = vpop.f32.mrb[18].mxu0 }
 0xbcc   : > { %v2143_v30 = vadd.f32 %v2138_v3, %v3184_v32  ;;  %v2631_v31 = vpop.f32.mrb[19].mxu0 }
 0xbce   : > { %2144 = vst.msk [vmem:[#allocation2] sm:$0x1] %vm890_vm1, %v2143_v30  ;;  %2149 = vst.msk [vmem:[%s861_s4] sm:$0x1] (!%p2499_p8), %vm890_vm1, %v2143_v30 }
 0xbcf PF: > { %s3353_s23 = sld [smem:[#allocation7_spill]]  ;;  %s3354_s30 = sld [smem:[#allocation5_spill]] }
 0xbd0   : > { %s3355_s0 = sld [smem:[#allocation6_spill]]  ;;  %s3356_s19 = sld [smem:[#allocation8_spill]] }
 0xbd1   : > { %s3357_s1 = sld [smem:[#allocation9_spill]] }
 0xbd5   : > { %s30_s20 = sadd.s32 1, %s3353_s23  }
 0xbd6   : > { %p27_p9 = scmp.ge.s32.totalorder %s30_s20, 6  }
 0xbd8   :  { %29 = sbr.rel (!%p27_p9) target bundleno = 17 (0x11), region = 188 }

</bundles_post_ra>
